<compile_context>
chip_gen: v7x
topology: tpu7x:2x2x1
jax: 0.10.0
libtpu: 0.0.40
codegen_flags: <defaults>
</compile_context>

<pallas_src>
import functools
import numpy as np
import jax
import jax.numpy as jnp
from jax import lax
from jax.experimental import pallas as pl
from jax.experimental.pallas import tpu as pltpu


def _round_up(x, m):
    return ((x + m - 1) // m) * m


# ------------------------------ fused kernel -------------------------------- #
def _seq2seq_kernel(tf_ref,
                    src_emb_ref, trg_emb_ref, emb_tbl_ref,
                    w_ih_ref, w_hh_ref, b_enc_ref,
                    wa_h_ref, wa_e_ref, ba_ref, v_ref,
                    wx_e_ref, wx_c_ref, wh_ref, bx_ref, bh_ref,
                    wo_e_ref, wo_c_ref, wo_h_ref, bo_ref,
                    out_ref,
                    enc_sc, emb_sc, *, v_true):
    S, B, _E_enc = src_emb_ref.shape
    T = trg_emb_ref.shape[0]
    H = w_hh_ref.shape[0]
    A = wa_h_ref.shape[1]
    V_pad = wo_h_ref.shape[1]
    f32 = jnp.float32
    bf16 = jnp.bfloat16

    # outputs[0] stays zeros, exactly like the reference module; rows 1..T-1 are
    # always overwritten below, so only the first row is zero-filled.
    out_ref[0] = jnp.zeros((B, V_pad), f32)

    # ---- hoisted loop-invariant broadcasts (JAX does not CSE broadcast_in_dim) ----
    b_enc_b = jnp.broadcast_to(b_enc_ref[...], (B, 4 * H))
    bx_b = jnp.broadcast_to(bx_ref[...], (B, 3 * H))
    bh_b = jnp.broadcast_to(bh_ref[...], (B, 3 * H))
    bo_b = jnp.broadcast_to(bo_ref[...], (B, V_pad))
    v_b = jnp.broadcast_to(v_ref[...].reshape(1, 1, A), (S, B, A))

    # ---------------- encoder: single-layer LSTM over S steps ----------------
    def enc_body(t, carry):
        h, c = carry
        x = src_emb_ref[t]                                              # (B, E_enc) bf16
        gates = (jnp.dot(x, w_ih_ref[...], preferred_element_type=f32)
                 + jnp.dot(h.astype(bf16), w_hh_ref[...], preferred_element_type=f32)
                 + b_enc_b)                                             # (B, 4H) f32
        i_g = jax.nn.sigmoid(gates[:, 0 * H:1 * H])
        f_g = jax.nn.sigmoid(gates[:, 1 * H:2 * H])
        g_g = jnp.tanh(gates[:, 2 * H:3 * H])
        o_g = jax.nn.sigmoid(gates[:, 3 * H:4 * H])
        c_new = f_g * c + i_g * g_g
        h_new = o_g * jnp.tanh(c_new)
        enc_sc[t] = h_new
        return h_new, c_new

    h0 = jnp.zeros((B, H), f32)
    c0 = jnp.zeros((B, H), f32)
    enc_unroll = True if S <= 16 else 4
    h_enc, _cell = lax.fori_loop(0, S, enc_body, (h0, c0), unroll=enc_unroll)
    # TODO(synk): encoder cell state is produced but, as in the reference module,
    # never consumed by the GRU-with-attention decoder.

    enc_all = enc_sc[...]                                               # (S, B, H) f32
    # step-invariant attention key projection (+ bias), hoisted out of the decode loop
    e_proj = jnp.dot(enc_all.reshape(S * B, H).astype(bf16), wa_e_ref[...],
                     preferred_element_type=f32).reshape(S, B, A)
    e_proj_b = e_proj + jnp.broadcast_to(ba_ref[...].reshape(1, 1, A), (S, B, A))

    col = lax.broadcasted_iota(jnp.int32, (B, V_pad), 1)
    vocab_ok = col < v_true

    emb_sc[...] = trg_emb_ref[0]                                        # decoder input at t=0

    # ------------ decoder: additive attention + GRU cell + output head ----------
    def dec_body(t, h):
        emb = emb_sc[...]                                               # (B, E_dec) bf16
        h_bf = h.astype(bf16)

        # additive attention: softmax_s( v . tanh(W_e enc_s + W_h h + b) )
        h_proj = jnp.dot(h_bf, wa_h_ref[...], preferred_element_type=f32)   # (B, A)
        energy = jnp.tanh(e_proj_b + h_proj[None, :, :])                     # (S, B, A)
        scores = jnp.sum(energy * v_b, axis=-1, keepdims=True)               # (S, B, 1)
        m = jnp.max(scores, axis=0, keepdims=True)
        ex = jnp.exp(scores - m)
        denom = jnp.sum(ex, axis=0, keepdims=True)
        attn = ex * pl.reciprocal(denom, approx=True)                        # (S, B, 1)
        context = jnp.sum(attn * enc_all, axis=0)                            # (B, H) f32
        ctx_bf = context.astype(bf16)

        # GRU cell over [emb; context] (PyTorch gate order r, z, n), split direct dots
        gx = (jnp.dot(emb, wx_e_ref[...], preferred_element_type=f32)
              + jnp.dot(ctx_bf, wx_c_ref[...], preferred_element_type=f32)
              + bx_b)                                                        # (B, 3H)
        gh = jnp.dot(h_bf, wh_ref[...], preferred_element_type=f32) + bh_b
        r = jax.nn.sigmoid(gx[:, 0 * H:1 * H] + gh[:, 0 * H:1 * H])
        z = jax.nn.sigmoid(gx[:, 1 * H:2 * H] + gh[:, 1 * H:2 * H])
        n = jnp.tanh(gx[:, 2 * H:3 * H] + r * gh[:, 2 * H:3 * H])
        h_new = (1.0 - z) * n + z * h

        # output head on [h_new; context; emb], split direct dots (no concat buffer)
        logits = (jnp.dot(h_new.astype(bf16), wo_h_ref[...], preferred_element_type=f32)
                  + jnp.dot(ctx_bf, wo_c_ref[...], preferred_element_type=f32)
                  + jnp.dot(emb, wo_e_ref[...], preferred_element_type=f32)
                  + bo_b)                                                    # (B, V_pad)
        out_ref[t] = logits

        # next decoder input: greedy argmax path only runs when NOT teacher forcing
        @pl.when(tf_ref[t] == 0)
        def _():
            masked = jnp.where(vocab_ok, logits, -1e30)
            mx = jnp.max(masked, axis=1, keepdims=True)
            top1 = jnp.min(jnp.where(masked >= mx, col, V_pad), axis=1, keepdims=True)
            onehot = (col == top1).astype(bf16)                              # (B, V_pad)
            emb_sc[...] = jnp.dot(onehot, emb_tbl_ref[...],
                                  preferred_element_type=f32).astype(bf16)

        @pl.when(tf_ref[t] != 0)
        def _():
            emb_sc[...] = trg_emb_ref[t]

        return h_new

    dec_unroll = True if T <= 16 else 2
    lax.fori_loop(1, T, dec_body, h_enc, unroll=dec_unroll)


def _seq2seq_pallas(tf_mask, src_emb, trg_emb, emb_tbl, w_ih, w_hh, b_enc,
                    wa_h, wa_e, ba, v_a, wx_e, wx_c, wh, bx, bh,
                    wo_e, wo_c, wo_h, bo, *, shards, v_true):
    S, B_pad, E_enc = src_emb.shape
    T = trg_emb.shape[0]
    E_dec = trg_emb.shape[2]
    H = w_hh.shape[0]
    V_pad = wo_h.shape[1]
    B_blk = B_pad // shards

    def bmap(i, tf):            # batched 3-D tensors: shard along batch axis
        return (0, i, 0)

    def rep(i, tf):             # weights / biases: same full block every iteration
        return (0, 0)

    def full2(a):
        return pl.BlockSpec(a.shape, rep)

    in_specs = [
        pl.BlockSpec((S, B_blk, E_enc), bmap),        # src_emb
        pl.BlockSpec((T, B_blk, E_dec), bmap),        # trg_emb
        full2(emb_tbl), full2(w_ih), full2(w_hh), full2(b_enc),
        full2(wa_h), full2(wa_e), full2(ba), full2(v_a),
        full2(wx_e), full2(wx_c), full2(wh), full2(bx), full2(bh),
        full2(wo_e), full2(wo_c), full2(wo_h), full2(bo),
    ]
    out_spec = pl.BlockSpec((T, B_blk, V_pad), bmap)

    # VMEM budget sized from actual residency (weights + blocks + logits + scratch),
    # x2 headroom for the pipeline's double buffering; clamped for v7x's 64 MiB.
    def nbytes(x):
        return x.size * x.dtype.itemsize
    resident = sum(nbytes(x) for x in (src_emb, trg_emb, emb_tbl, w_ih, w_hh, b_enc,
                                       wa_h, wa_e, ba, v_a, wx_e, wx_c, wh, bx, bh,
                                       wo_e, wo_c, wo_h, bo))
    resident += T * B_blk * V_pad * 4                 # resident logits block
    resident += S * B_blk * H * 4 + B_blk * E_dec * 2  # scratch
    vmem_limit = int(min(max(2 * resident + (4 << 20), 16 << 20), 60 << 20))

    kernel = functools.partial(_seq2seq_kernel, v_true=v_true)
    grid_spec = pltpu.PrefetchScalarGridSpec(
        num_scalar_prefetch=1,
        grid=(shards,),
        in_specs=in_specs,
        out_specs=out_spec,
        scratch_shapes=[pltpu.VMEM((S, B_blk, H), jnp.float32),      # encoder states
                        pltpu.VMEM((B_blk, E_dec), jnp.bfloat16)],   # next decoder input
    )
    return pl.pallas_call(
        kernel,
        out_shape=jax.ShapeDtypeStruct((T, B_pad, V_pad), jnp.float32),
        grid_spec=grid_spec,
        compiler_params=pltpu.CompilerParams(
            dimension_semantics=("parallel",),
            vmem_limit_bytes=vmem_limit),
    )(tf_mask, src_emb, trg_emb, emb_tbl, w_ih, w_hh, b_enc,
      wa_h, wa_e, ba, v_a, wx_e, wx_c, wh, bx, bh, wo_e, wo_c, wo_h, bo)


# ------------------------------ Seq2Seq glue -------------------------------- #
@jax.jit
def _seq2seq_jit(params, src, trg, tf_mask):
    enc_p, dec_p = params['enc'], params['dec']
    S, B = src.shape
    H = enc_p['w_hh'].shape[0]
    V = dec_p['wo'].shape[1]
    E_dec = dec_p['embedding'].shape[1]

    if B <= 8:                      # single shard: 8 sublanes is one tile
        B_pad, shards = 8, 1
    else:                           # shard batch halves across TCs (2 on v7x)
        B_pad, shards = _round_up(B, 16), 2
    V_pad = _round_up(V, 128)       # lane-dense logits
    pad_b = B_pad - B
    bf = jnp.bfloat16

    src_emb = jnp.pad(enc_p['embedding'][src],
                      ((0, 0), (0, pad_b), (0, 0))).astype(bf)          # (S, B_pad, E_enc)
    trg_emb = jnp.pad(dec_p['embedding'][trg],
                      ((0, 0), (0, pad_b), (0, 0))).astype(bf)          # (T, B_pad, E_dec)
    emb_tbl = jnp.pad(dec_p['embedding'],
                      ((0, V_pad - V), (0, 0))).astype(bf)              # (V_pad, E_dec)

    w_ih = enc_p['w_ih'].astype(bf)
    w_hh = enc_p['w_hh'].astype(bf)
    b_enc = enc_p['b'].astype(jnp.float32)

    wa_h = dec_p['wa_h'].astype(bf)
    wa_e = dec_p['wa_e'].astype(bf)
    ba = dec_p['ba'].astype(jnp.float32)
    v_a = dec_p['v'].astype(jnp.float32)

    wx = dec_p['wx']                       # rows: [emb (E); context (H)]
    wx_e = wx[0:E_dec].astype(bf)
    wx_c = wx[E_dec:E_dec + H].astype(bf)
    wh = dec_p['wh'].astype(bf)
    bx = dec_p['bx'].astype(jnp.float32)
    bh = dec_p['bh'].astype(jnp.float32)

    wo = dec_p['wo']                       # rows: [h (H); context (H); emb (E)]
    wo_h = jnp.pad(wo[0:H], ((0, 0), (0, V_pad - V))).astype(bf)
    wo_c = jnp.pad(wo[H:2 * H], ((0, 0), (0, V_pad - V))).astype(bf)
    wo_e = jnp.pad(wo[2 * H:2 * H + E_dec], ((0, 0), (0, V_pad - V))).astype(bf)
    bo = jnp.pad(dec_p['bo'], ((0, 0), (0, V_pad - V))).astype(jnp.float32)

    out = _seq2seq_pallas(tf_mask.astype(jnp.int32),
                          src_emb, trg_emb, emb_tbl, w_ih, w_hh, b_enc,
                          wa_h, wa_e, ba, v_a, wx_e, wx_c, wh, bx, bh,
                          wo_e, wo_c, wo_h, bo,
                          shards=shards, v_true=V)
    return out[:, :B, :V]                                               # (T, B, V)


def seq2seq_forward(params, src, trg, teacher_forcing_ratio=0.5, seed=0):
    max_len = int(trg.shape[0])
    rng = np.random.RandomState(seed)      # deterministic stand-in for random.random()
    tf_mask = jnp.asarray((rng.rand(max_len) < teacher_forcing_ratio).astype(np.int32))
    return _seq2seq_jit(params, src, trg, tf_mask)


if __name__ == "__main__":
    key = jax.random.PRNGKey(0)
    SRC_LEN, TRG_LEN, B = 6, 8, 2
    E, H, A = 16, 32, 32            # emb dim, hid dim (enc hid == dec hid), attention dim
    SRC_VOCAB, TRG_VOCAB = 30, 25   # decoder.output_dim == TRG_VOCAB
    ks = jax.random.split(key, 20)
    sc = 0.1
    params = {
        'enc': {
            'embedding': jax.random.normal(ks[0], (SRC_VOCAB, E), jnp.float32) * sc,
            'w_ih': jax.random.normal(ks[1], (E, 4 * H), jnp.float32) * sc,
            'w_hh': jax.random.normal(ks[2], (H, 4 * H), jnp.float32) * sc,
            'b': jax.random.normal(ks[3], (1, 4 * H), jnp.float32) * sc,
        },
        'dec': {
            'embedding': jax.random.normal(ks[4], (TRG_VOCAB, E), jnp.float32) * sc,
            'wa_h': jax.random.normal(ks[5], (H, A), jnp.float32) * sc,
            'wa_e': jax.random.normal(ks[6], (H, A), jnp.float32) * sc,
            'ba': jax.random.normal(ks[7], (1, A), jnp.float32) * sc,
            'v': jax.random.normal(ks[8], (1, A), jnp.float32) * sc,
            'wx': jax.random.normal(ks[9], (E + H, 3 * H), jnp.float32) * sc,
            'wh': jax.random.normal(ks[10], (H, 3 * H), jnp.float32) * sc,
            'bx': jax.random.normal(ks[11], (1, 3 * H), jnp.float32) * sc,
            'bh': jax.random.normal(ks[12], (1, 3 * H), jnp.float32) * sc,
            'wo': jax.random.normal(ks[13], (2 * H + E, TRG_VOCAB), jnp.float32) * sc,
            'bo': jax.random.normal(ks[14], (1, TRG_VOCAB), jnp.float32) * sc,
        },
    }
    src = jax.random.randint(ks[15], (SRC_LEN, B), 0, SRC_VOCAB)
    trg = jax.random.randint(ks[16], (TRG_LEN, B), 0, TRG_VOCAB)

    outputs = seq2seq_forward(params, src, trg, teacher_forcing_ratio=0.5)
    jax.block_until_ready(outputs)
    assert outputs.shape == (TRG_LEN, B, TRG_VOCAB)
    assert outputs.dtype == jnp.float32
    print("KERNEL_OK")
</pallas_src>

<mosaic_0001>
module attributes {stable_mosaic.version = 11 : i64} {
  func.func @_seq2seq_kernel(%arg0: i32, %arg1: memref<8xi32, #tpu.memory_space<smem>>, %arg2: memref<6x8x16xbf16, #tpu.memory_space<vmem>>, %arg3: memref<8x8x16xbf16, #tpu.memory_space<vmem>>, %arg4: memref<128x16xbf16, #tpu.memory_space<vmem>>, %arg5: memref<16x128xbf16, #tpu.memory_space<vmem>>, %arg6: memref<32x128xbf16, #tpu.memory_space<vmem>>, %arg7: memref<1x128xf32, #tpu.memory_space<vmem>>, %arg8: memref<32x32xbf16, #tpu.memory_space<vmem>>, %arg9: memref<32x32xbf16, #tpu.memory_space<vmem>>, %arg10: memref<1x32xf32, #tpu.memory_space<vmem>>, %arg11: memref<1x32xf32, #tpu.memory_space<vmem>>, %arg12: memref<16x96xbf16, #tpu.memory_space<vmem>>, %arg13: memref<32x96xbf16, #tpu.memory_space<vmem>>, %arg14: memref<32x96xbf16, #tpu.memory_space<vmem>>, %arg15: memref<1x96xf32, #tpu.memory_space<vmem>>, %arg16: memref<1x96xf32, #tpu.memory_space<vmem>>, %arg17: memref<16x128xbf16, #tpu.memory_space<vmem>>, %arg18: memref<32x128xbf16, #tpu.memory_space<vmem>>, %arg19: memref<32x128xbf16, #tpu.memory_space<vmem>>, %arg20: memref<1x128xf32, #tpu.memory_space<vmem>>, %arg21: memref<8x8x128xf32, #tpu.memory_space<vmem>>, %arg22: memref<6x8x32xf32, #tpu.memory_space<vmem>>, %arg23: memref<8x16xbf16, #tpu.memory_space<vmem>>) attributes {dimension_semantics = [#tpu.dimension_semantics<parallel>], iteration_bounds = array<i64: 1>, scalar_prefetch = 1 : i64, scratch_operands = 2 : i64, tpu.core_type = #tpu.core_type<tc>, window_params = [{transform_indices = @transform_0, window_bounds = array<i64: 6, 8, 16>}, {transform_indices = @transform_1, window_bounds = array<i64: 8, 8, 16>}, {pipeline_mode = #tpu.pipeline_mode<synchronous>, transform_indices = @transform_2, window_bounds = array<i64: 128, 16>}, {pipeline_mode = #tpu.pipeline_mode<synchronous>, transform_indices = @transform_3, window_bounds = array<i64: 16, 128>}, {pipeline_mode = #tpu.pipeline_mode<synchronous>, transform_indices = @transform_4, window_bounds = array<i64: 32, 128>}, {pipeline_mode = #tpu.pipeline_mode<synchronous>, transform_indices = @transform_5, window_bounds = array<i64: 1, 128>}, {pipeline_mode = #tpu.pipeline_mode<synchronous>, transform_indices = @transform_6, window_bounds = array<i64: 32, 32>}, {pipeline_mode = #tpu.pipeline_mode<synchronous>, transform_indices = @transform_7, window_bounds = array<i64: 32, 32>}, {pipeline_mode = #tpu.pipeline_mode<synchronous>, transform_indices = @transform_8, window_bounds = array<i64: 1, 32>}, {pipeline_mode = #tpu.pipeline_mode<synchronous>, transform_indices = @transform_9, window_bounds = array<i64: 1, 32>}, {pipeline_mode = #tpu.pipeline_mode<synchronous>, transform_indices = @transform_10, window_bounds = array<i64: 16, 96>}, {pipeline_mode = #tpu.pipeline_mode<synchronous>, transform_indices = @transform_11, window_bounds = array<i64: 32, 96>}, {pipeline_mode = #tpu.pipeline_mode<synchronous>, transform_indices = @transform_12, window_bounds = array<i64: 32, 96>}, {pipeline_mode = #tpu.pipeline_mode<synchronous>, transform_indices = @transform_13, window_bounds = array<i64: 1, 96>}, {pipeline_mode = #tpu.pipeline_mode<synchronous>, transform_indices = @transform_14, window_bounds = array<i64: 1, 96>}, {pipeline_mode = #tpu.pipeline_mode<synchronous>, transform_indices = @transform_15, window_bounds = array<i64: 16, 128>}, {pipeline_mode = #tpu.pipeline_mode<synchronous>, transform_indices = @transform_16, window_bounds = array<i64: 32, 128>}, {pipeline_mode = #tpu.pipeline_mode<synchronous>, transform_indices = @transform_17, window_bounds = array<i64: 32, 128>}, {pipeline_mode = #tpu.pipeline_mode<synchronous>, transform_indices = @transform_18, window_bounds = array<i64: 1, 128>}, {transform_indices = @transform_19, window_bounds = array<i64: 8, 8, 128>}]} {
    %cst = arith.constant 0.000000e+00 : f32
    %0 = vector.broadcast %cst : f32 to vector<8x128xf32>
    %c0 = arith.constant 0 : index
    %c0_0 = arith.constant 0 : index
    %c0_1 = arith.constant 0 : index
    %1 = vector.load %arg21[%c0, %c0_0, %c0_1] : memref<8x8x128xf32, #tpu.memory_space<vmem>>, vector<1x8x128xf32>
    %2 = vector.shape_cast %1 : vector<1x8x128xf32> to vector<8x128xf32>
    %3 = vector.shape_cast %0 : vector<8x128xf32> to vector<1x8x128xf32>
    tpu.vector_store %arg21[%c0, %c0_0, %c0_1], %3 {strides = array<i32>} : memref<8x8x128xf32, #tpu.memory_space<vmem>>, vector<1x8x128xf32>,
    %c0_2 = arith.constant 0 : index
    %c0_3 = arith.constant 0 : index
    %4 = vector.load %arg7[%c0_2, %c0_3] : memref<1x128xf32, #tpu.memory_space<vmem>>, vector<1x128xf32>
    %5 = vector.shape_cast %4 : vector<1x128xf32> to vector<1x128xf32>
    %6 = vector.broadcast %5 : vector<1x128xf32> to vector<8x128xf32>
    %c0_4 = arith.constant 0 : index
    %c0_5 = arith.constant 0 : index
    %7 = vector.load %arg15[%c0_4, %c0_5] : memref<1x96xf32, #tpu.memory_space<vmem>>, vector<1x96xf32>
    %8 = vector.shape_cast %7 : vector<1x96xf32> to vector<1x96xf32>
    %9 = vector.broadcast %8 : vector<1x96xf32> to vector<8x96xf32>
    %c0_6 = arith.constant 0 : index
    %c0_7 = arith.constant 0 : index
    %10 = vector.load %arg16[%c0_6, %c0_7] : memref<1x96xf32, #tpu.memory_space<vmem>>, vector<1x96xf32>
    %11 = vector.shape_cast %10 : vector<1x96xf32> to vector<1x96xf32>
    %12 = vector.broadcast %11 : vector<1x96xf32> to vector<8x96xf32>
    %c0_8 = arith.constant 0 : index
    %c0_9 = arith.constant 0 : index
    %13 = vector.load %arg20[%c0_8, %c0_9] : memref<1x128xf32, #tpu.memory_space<vmem>>, vector<1x128xf32>
    %14 = vector.shape_cast %13 : vector<1x128xf32> to vector<1x128xf32>
    %15 = vector.broadcast %14 : vector<1x128xf32> to vector<8x128xf32>
    %c0_10 = arith.constant 0 : index
    %c0_11 = arith.constant 0 : index
    %16 = vector.load %arg11[%c0_10, %c0_11] : memref<1x32xf32, #tpu.memory_space<vmem>>, vector<1x32xf32>
    %17 = vector.shape_cast %16 : vector<1x32xf32> to vector<1x1x32xf32>
    %18 = vector.shape_cast %17 : vector<1x1x32xf32> to vector<1x1x32xf32>
    %19 = vector.broadcast %18 : vector<1x1x32xf32> to vector<6x8x32xf32>
    %cst_12 = arith.constant 0.000000e+00 : f32
    %20 = vector.broadcast %cst_12 : f32 to vector<8x32xf32>
    %cst_13 = arith.constant 0.000000e+00 : f32
    %21 = vector.broadcast %cst_13 : f32 to vector<8x32xf32>
    %c0_i32 = arith.constant 0 : i32
    %22 = arith.index_cast %c0_i32 : i32 to index
    %c0_14 = arith.constant 0 : index
    %c0_15 = arith.constant 0 : index
    %23 = vector.load %arg2[%22, %c0_14, %c0_15] : memref<6x8x16xbf16, #tpu.memory_space<vmem>>, vector<1x8x16xbf16>
    %24 = vector.shape_cast %23 : vector<1x8x16xbf16> to vector<8x16xbf16>
    %c0_16 = arith.constant 0 : index
    %c0_17 = arith.constant 0 : index
    %25 = vector.load %arg5[%c0_16, %c0_17] : memref<16x128xbf16, #tpu.memory_space<vmem>>, vector<16x128xbf16>
    %cst_18 = arith.constant dense<0.000000e+00> : vector<8x128xf32>
    %26 = tpu.matmul %24, %25, %cst_18 {dimension_numbers = #tpu.dot_dimension_numbers<[1], [0], [0], [1], [0, 0, 1, 1], [], []>} : vector<8x16xbf16>, vector<16x128xbf16>, vector<8x128xf32> -> vector<8x128xf32>
    %27 = arith.truncf %20 : vector<8x32xf32> to vector<8x32xbf16>
    %c0_19 = arith.constant 0 : index
    %c0_20 = arith.constant 0 : index
    %28 = vector.load %arg6[%c0_19, %c0_20] : memref<32x128xbf16, #tpu.memory_space<vmem>>, vector<32x128xbf16>
    %cst_21 = arith.constant dense<0.000000e+00> : vector<8x128xf32>
    %29 = tpu.matmul %27, %28, %cst_21 {dimension_numbers = #tpu.dot_dimension_numbers<[1], [0], [0], [1], [0, 0, 1, 1], [], []>} : vector<8x32xbf16>, vector<32x128xbf16>, vector<8x128xf32> -> vector<8x128xf32>
    %30 = arith.addf %26, %29 : vector<8x128xf32>
    %31 = arith.addf %30, %6 : vector<8x128xf32>
    %32 = vector.extract_strided_slice %31 {offsets = [0, 0], sizes = [8, 32], strides = [1, 1]} : vector<8x128xf32> to vector<8x32xf32>
    %33 = arith.negf %32 : vector<8x32xf32>
    %34 = math.exp %33 : vector<8x32xf32>
    %cst_22 = arith.constant 1.000000e+00 : f32
    %35 = vector.broadcast %cst_22 : f32 to vector<8x32xf32>
    %36 = arith.addf %35, %34 : vector<8x32xf32>
    %37 = arith.divf %35, %36 : vector<8x32xf32>
    %38 = vector.extract_strided_slice %31 {offsets = [0, 32], sizes = [8, 32], strides = [1, 1]} : vector<8x128xf32> to vector<8x32xf32>
    %39 = arith.negf %38 : vector<8x32xf32>
    %40 = math.exp %39 : vector<8x32xf32>
    %cst_23 = arith.constant 1.000000e+00 : f32
    %41 = vector.broadcast %cst_23 : f32 to vector<8x32xf32>
    %42 = arith.addf %41, %40 : vector<8x32xf32>
    %43 = arith.divf %41, %42 : vector<8x32xf32>
    %44 = vector.extract_strided_slice %31 {offsets = [0, 64], sizes = [8, 32], strides = [1, 1]} : vector<8x128xf32> to vector<8x32xf32>
    %45 = math.tanh %44 : vector<8x32xf32>
    %46 = vector.extract_strided_slice %31 {offsets = [0, 96], sizes = [8, 32], strides = [1, 1]} : vector<8x128xf32> to vector<8x32xf32>
    %47 = arith.negf %46 : vector<8x32xf32>
    %48 = math.exp %47 : vector<8x32xf32>
    %cst_24 = arith.constant 1.000000e+00 : f32
    %49 = vector.broadcast %cst_24 : f32 to vector<8x32xf32>
    %50 = arith.addf %49, %48 : vector<8x32xf32>
    %51 = arith.divf %49, %50 : vector<8x32xf32>
    %52 = arith.mulf %43, %21 : vector<8x32xf32>
    %53 = arith.mulf %37, %45 : vector<8x32xf32>
    %54 = arith.addf %52, %53 : vector<8x32xf32>
    %55 = math.tanh %54 : vector<8x32xf32>
    %56 = arith.mulf %51, %55 : vector<8x32xf32>
    %57 = arith.index_cast %c0_i32 : i32 to index
    %c0_25 = arith.constant 0 : index
    %c0_26 = arith.constant 0 : index
    %58 = vector.load %arg22[%57, %c0_25, %c0_26] : memref<6x8x32xf32, #tpu.memory_space<vmem>>, vector<1x8x32xf32>
    %59 = vector.shape_cast %58 : vector<1x8x32xf32> to vector<8x32xf32>
    %60 = vector.shape_cast %56 : vector<8x32xf32> to vector<1x8x32xf32>
    tpu.vector_store %arg22[%57, %c0_25, %c0_26], %60 {strides = array<i32>} : memref<6x8x32xf32, #tpu.memory_space<vmem>>, vector<1x8x32xf32>,
    %c1_i32 = arith.constant 1 : i32
    %61 = arith.index_cast %c1_i32 : i32 to index
    %c0_27 = arith.constant 0 : index
    %c0_28 = arith.constant 0 : index
    %62 = vector.load %arg2[%61, %c0_27, %c0_28] : memref<6x8x16xbf16, #tpu.memory_space<vmem>>, vector<1x8x16xbf16>
    %63 = vector.shape_cast %62 : vector<1x8x16xbf16> to vector<8x16xbf16>
    %c0_29 = arith.constant 0 : index
    %c0_30 = arith.constant 0 : index
    %64 = vector.load %arg5[%c0_29, %c0_30] : memref<16x128xbf16, #tpu.memory_space<vmem>>, vector<16x128xbf16>
    %cst_31 = arith.constant dense<0.000000e+00> : vector<8x128xf32>
    %65 = tpu.matmul %63, %64, %cst_31 {dimension_numbers = #tpu.dot_dimension_numbers<[1], [0], [0], [1], [0, 0, 1, 1], [], []>} : vector<8x16xbf16>, vector<16x128xbf16>, vector<8x128xf32> -> vector<8x128xf32>
    %66 = arith.truncf %56 : vector<8x32xf32> to vector<8x32xbf16>
    %c0_32 = arith.constant 0 : index
    %c0_33 = arith.constant 0 : index
    %67 = vector.load %arg6[%c0_32, %c0_33] : memref<32x128xbf16, #tpu.memory_space<vmem>>, vector<32x128xbf16>
    %cst_34 = arith.constant dense<0.000000e+00> : vector<8x128xf32>
    %68 = tpu.matmul %66, %67, %cst_34 {dimension_numbers = #tpu.dot_dimension_numbers<[1], [0], [0], [1], [0, 0, 1, 1], [], []>} : vector<8x32xbf16>, vector<32x128xbf16>, vector<8x128xf32> -> vector<8x128xf32>
    %69 = arith.addf %65, %68 : vector<8x128xf32>
    %70 = arith.addf %69, %6 : vector<8x128xf32>
    %71 = vector.extract_strided_slice %70 {offsets = [0, 0], sizes = [8, 32], strides = [1, 1]} : vector<8x128xf32> to vector<8x32xf32>
    %72 = arith.negf %71 : vector<8x32xf32>
    %73 = math.exp %72 : vector<8x32xf32>
    %cst_35 = arith.constant 1.000000e+00 : f32
    %74 = vector.broadcast %cst_35 : f32 to vector<8x32xf32>
    %75 = arith.addf %74, %73 : vector<8x32xf32>
    %76 = arith.divf %74, %75 : vector<8x32xf32>
    %77 = vector.extract_strided_slice %70 {offsets = [0, 32], sizes = [8, 32], strides = [1, 1]} : vector<8x128xf32> to vector<8x32xf32>
    %78 = arith.negf %77 : vector<8x32xf32>
    %79 = math.exp %78 : vector<8x32xf32>
    %cst_36 = arith.constant 1.000000e+00 : f32
    %80 = vector.broadcast %cst_36 : f32 to vector<8x32xf32>
    %81 = arith.addf %80, %79 : vector<8x32xf32>
    %82 = arith.divf %80, %81 : vector<8x32xf32>
    %83 = vector.extract_strided_slice %70 {offsets = [0, 64], sizes = [8, 32], strides = [1, 1]} : vector<8x128xf32> to vector<8x32xf32>
    %84 = math.tanh %83 : vector<8x32xf32>
    %85 = vector.extract_strided_slice %70 {offsets = [0, 96], sizes = [8, 32], strides = [1, 1]} : vector<8x128xf32> to vector<8x32xf32>
    %86 = arith.negf %85 : vector<8x32xf32>
    %87 = math.exp %86 : vector<8x32xf32>
    %cst_37 = arith.constant 1.000000e+00 : f32
    %88 = vector.broadcast %cst_37 : f32 to vector<8x32xf32>
    %89 = arith.addf %88, %87 : vector<8x32xf32>
    %90 = arith.divf %88, %89 : vector<8x32xf32>
    %91 = arith.mulf %82, %54 : vector<8x32xf32>
    %92 = arith.mulf %76, %84 : vector<8x32xf32>
    %93 = arith.addf %91, %92 : vector<8x32xf32>
    %94 = math.tanh %93 : vector<8x32xf32>
    %95 = arith.mulf %90, %94 : vector<8x32xf32>
    %96 = arith.index_cast %c1_i32 : i32 to index
    %c0_38 = arith.constant 0 : index
    %c0_39 = arith.constant 0 : index
    %97 = vector.load %arg22[%96, %c0_38, %c0_39] : memref<6x8x32xf32, #tpu.memory_space<vmem>>, vector<1x8x32xf32>
    %98 = vector.shape_cast %97 : vector<1x8x32xf32> to vector<8x32xf32>
    %99 = vector.shape_cast %95 : vector<8x32xf32> to vector<1x8x32xf32>
    tpu.vector_store %arg22[%96, %c0_38, %c0_39], %99 {strides = array<i32>} : memref<6x8x32xf32, #tpu.memory_space<vmem>>, vector<1x8x32xf32>,
    %c2_i32 = arith.constant 2 : i32
    %100 = arith.index_cast %c2_i32 : i32 to index
    %c0_40 = arith.constant 0 : index
    %c0_41 = arith.constant 0 : index
    %101 = vector.load %arg2[%100, %c0_40, %c0_41] : memref<6x8x16xbf16, #tpu.memory_space<vmem>>, vector<1x8x16xbf16>
    %102 = vector.shape_cast %101 : vector<1x8x16xbf16> to vector<8x16xbf16>
    %c0_42 = arith.constant 0 : index
    %c0_43 = arith.constant 0 : index
    %103 = vector.load %arg5[%c0_42, %c0_43] : memref<16x128xbf16, #tpu.memory_space<vmem>>, vector<16x128xbf16>
    %cst_44 = arith.constant dense<0.000000e+00> : vector<8x128xf32>
    %104 = tpu.matmul %102, %103, %cst_44 {dimension_numbers = #tpu.dot_dimension_numbers<[1], [0], [0], [1], [0, 0, 1, 1], [], []>} : vector<8x16xbf16>, vector<16x128xbf16>, vector<8x128xf32> -> vector<8x128xf32>
    %105 = arith.truncf %95 : vector<8x32xf32> to vector<8x32xbf16>
    %c0_45 = arith.constant 0 : index
    %c0_46 = arith.constant 0 : index
    %106 = vector.load %arg6[%c0_45, %c0_46] : memref<32x128xbf16, #tpu.memory_space<vmem>>, vector<32x128xbf16>
    %cst_47 = arith.constant dense<0.000000e+00> : vector<8x128xf32>
    %107 = tpu.matmul %105, %106, %cst_47 {dimension_numbers = #tpu.dot_dimension_numbers<[1], [0], [0], [1], [0, 0, 1, 1], [], []>} : vector<8x32xbf16>, vector<32x128xbf16>, vector<8x128xf32> -> vector<8x128xf32>
    %108 = arith.addf %104, %107 : vector<8x128xf32>
    %109 = arith.addf %108, %6 : vector<8x128xf32>
    %110 = vector.extract_strided_slice %109 {offsets = [0, 0], sizes = [8, 32], strides = [1, 1]} : vector<8x128xf32> to vector<8x32xf32>
    %111 = arith.negf %110 : vector<8x32xf32>
    %112 = math.exp %111 : vector<8x32xf32>
    %cst_48 = arith.constant 1.000000e+00 : f32
    %113 = vector.broadcast %cst_48 : f32 to vector<8x32xf32>
    %114 = arith.addf %113, %112 : vector<8x32xf32>
    %115 = arith.divf %113, %114 : vector<8x32xf32>
    %116 = vector.extract_strided_slice %109 {offsets = [0, 32], sizes = [8, 32], strides = [1, 1]} : vector<8x128xf32> to vector<8x32xf32>
    %117 = arith.negf %116 : vector<8x32xf32>
    %118 = math.exp %117 : vector<8x32xf32>
    %cst_49 = arith.constant 1.000000e+00 : f32
    %119 = vector.broadcast %cst_49 : f32 to vector<8x32xf32>
    %120 = arith.addf %119, %118 : vector<8x32xf32>
    %121 = arith.divf %119, %120 : vector<8x32xf32>
    %122 = vector.extract_strided_slice %109 {offsets = [0, 64], sizes = [8, 32], strides = [1, 1]} : vector<8x128xf32> to vector<8x32xf32>
    %123 = math.tanh %122 : vector<8x32xf32>
    %124 = vector.extract_strided_slice %109 {offsets = [0, 96], sizes = [8, 32], strides = [1, 1]} : vector<8x128xf32> to vector<8x32xf32>
    %125 = arith.negf %124 : vector<8x32xf32>
    %126 = math.exp %125 : vector<8x32xf32>
    %cst_50 = arith.constant 1.000000e+00 : f32
    %127 = vector.broadcast %cst_50 : f32 to vector<8x32xf32>
    %128 = arith.addf %127, %126 : vector<8x32xf32>
    %129 = arith.divf %127, %128 : vector<8x32xf32>
    %130 = arith.mulf %121, %93 : vector<8x32xf32>
    %131 = arith.mulf %115, %123 : vector<8x32xf32>
    %132 = arith.addf %130, %131 : vector<8x32xf32>
    %133 = math.tanh %132 : vector<8x32xf32>
    %134 = arith.mulf %129, %133 : vector<8x32xf32>
    %135 = arith.index_cast %c2_i32 : i32 to index
    %c0_51 = arith.constant 0 : index
    %c0_52 = arith.constant 0 : index
    %136 = vector.load %arg22[%135, %c0_51, %c0_52] : memref<6x8x32xf32, #tpu.memory_space<vmem>>, vector<1x8x32xf32>
    %137 = vector.shape_cast %136 : vector<1x8x32xf32> to vector<8x32xf32>
    %138 = vector.shape_cast %134 : vector<8x32xf32> to vector<1x8x32xf32>
    tpu.vector_store %arg22[%135, %c0_51, %c0_52], %138 {strides = array<i32>} : memref<6x8x32xf32, #tpu.memory_space<vmem>>, vector<1x8x32xf32>,
    %c3_i32 = arith.constant 3 : i32
    %139 = arith.index_cast %c3_i32 : i32 to index
    %c0_53 = arith.constant 0 : index
    %c0_54 = arith.constant 0 : index
    %140 = vector.load %arg2[%139, %c0_53, %c0_54] : memref<6x8x16xbf16, #tpu.memory_space<vmem>>, vector<1x8x16xbf16>
    %141 = vector.shape_cast %140 : vector<1x8x16xbf16> to vector<8x16xbf16>
    %c0_55 = arith.constant 0 : index
    %c0_56 = arith.constant 0 : index
    %142 = vector.load %arg5[%c0_55, %c0_56] : memref<16x128xbf16, #tpu.memory_space<vmem>>, vector<16x128xbf16>
    %cst_57 = arith.constant dense<0.000000e+00> : vector<8x128xf32>
    %143 = tpu.matmul %141, %142, %cst_57 {dimension_numbers = #tpu.dot_dimension_numbers<[1], [0], [0], [1], [0, 0, 1, 1], [], []>} : vector<8x16xbf16>, vector<16x128xbf16>, vector<8x128xf32> -> vector<8x128xf32>
    %144 = arith.truncf %134 : vector<8x32xf32> to vector<8x32xbf16>
    %c0_58 = arith.constant 0 : index
    %c0_59 = arith.constant 0 : index
    %145 = vector.load %arg6[%c0_58, %c0_59] : memref<32x128xbf16, #tpu.memory_space<vmem>>, vector<32x128xbf16>
    %cst_60 = arith.constant dense<0.000000e+00> : vector<8x128xf32>
    %146 = tpu.matmul %144, %145, %cst_60 {dimension_numbers = #tpu.dot_dimension_numbers<[1], [0], [0], [1], [0, 0, 1, 1], [], []>} : vector<8x32xbf16>, vector<32x128xbf16>, vector<8x128xf32> -> vector<8x128xf32>
    %147 = arith.addf %143, %146 : vector<8x128xf32>
    %148 = arith.addf %147, %6 : vector<8x128xf32>
    %149 = vector.extract_strided_slice %148 {offsets = [0, 0], sizes = [8, 32], strides = [1, 1]} : vector<8x128xf32> to vector<8x32xf32>
    %150 = arith.negf %149 : vector<8x32xf32>
    %151 = math.exp %150 : vector<8x32xf32>
    %cst_61 = arith.constant 1.000000e+00 : f32
    %152 = vector.broadcast %cst_61 : f32 to vector<8x32xf32>
    %153 = arith.addf %152, %151 : vector<8x32xf32>
    %154 = arith.divf %152, %153 : vector<8x32xf32>
    %155 = vector.extract_strided_slice %148 {offsets = [0, 32], sizes = [8, 32], strides = [1, 1]} : vector<8x128xf32> to vector<8x32xf32>
    %156 = arith.negf %155 : vector<8x32xf32>
    %157 = math.exp %156 : vector<8x32xf32>
    %cst_62 = arith.constant 1.000000e+00 : f32
    %158 = vector.broadcast %cst_62 : f32 to vector<8x32xf32>
    %159 = arith.addf %158, %157 : vector<8x32xf32>
    %160 = arith.divf %158, %159 : vector<8x32xf32>
    %161 = vector.extract_strided_slice %148 {offsets = [0, 64], sizes = [8, 32], strides = [1, 1]} : vector<8x128xf32> to vector<8x32xf32>
    %162 = math.tanh %161 : vector<8x32xf32>
    %163 = vector.extract_strided_slice %148 {offsets = [0, 96], sizes = [8, 32], strides = [1, 1]} : vector<8x128xf32> to vector<8x32xf32>
    %164 = arith.negf %163 : vector<8x32xf32>
    %165 = math.exp %164 : vector<8x32xf32>
    %cst_63 = arith.constant 1.000000e+00 : f32
    %166 = vector.broadcast %cst_63 : f32 to vector<8x32xf32>
    %167 = arith.addf %166, %165 : vector<8x32xf32>
    %168 = arith.divf %166, %167 : vector<8x32xf32>
    %169 = arith.mulf %160, %132 : vector<8x32xf32>
    %170 = arith.mulf %154, %162 : vector<8x32xf32>
    %171 = arith.addf %169, %170 : vector<8x32xf32>
    %172 = math.tanh %171 : vector<8x32xf32>
    %173 = arith.mulf %168, %172 : vector<8x32xf32>
    %174 = arith.index_cast %c3_i32 : i32 to index
    %c0_64 = arith.constant 0 : index
    %c0_65 = arith.constant 0 : index
    %175 = vector.load %arg22[%174, %c0_64, %c0_65] : memref<6x8x32xf32, #tpu.memory_space<vmem>>, vector<1x8x32xf32>
    %176 = vector.shape_cast %175 : vector<1x8x32xf32> to vector<8x32xf32>
    %177 = vector.shape_cast %173 : vector<8x32xf32> to vector<1x8x32xf32>
    tpu.vector_store %arg22[%174, %c0_64, %c0_65], %177 {strides = array<i32>} : memref<6x8x32xf32, #tpu.memory_space<vmem>>, vector<1x8x32xf32>,
    %c4_i32 = arith.constant 4 : i32
    %178 = arith.index_cast %c4_i32 : i32 to index
    %c0_66 = arith.constant 0 : index
    %c0_67 = arith.constant 0 : index
    %179 = vector.load %arg2[%178, %c0_66, %c0_67] : memref<6x8x16xbf16, #tpu.memory_space<vmem>>, vector<1x8x16xbf16>
    %180 = vector.shape_cast %179 : vector<1x8x16xbf16> to vector<8x16xbf16>
    %c0_68 = arith.constant 0 : index
    %c0_69 = arith.constant 0 : index
    %181 = vector.load %arg5[%c0_68, %c0_69] : memref<16x128xbf16, #tpu.memory_space<vmem>>, vector<16x128xbf16>
    %cst_70 = arith.constant dense<0.000000e+00> : vector<8x128xf32>
    %182 = tpu.matmul %180, %181, %cst_70 {dimension_numbers = #tpu.dot_dimension_numbers<[1], [0], [0], [1], [0, 0, 1, 1], [], []>} : vector<8x16xbf16>, vector<16x128xbf16>, vector<8x128xf32> -> vector<8x128xf32>
    %183 = arith.truncf %173 : vector<8x32xf32> to vector<8x32xbf16>
    %c0_71 = arith.constant 0 : index
    %c0_72 = arith.constant 0 : index
    %184 = vector.load %arg6[%c0_71, %c0_72] : memref<32x128xbf16, #tpu.memory_space<vmem>>, vector<32x128xbf16>
    %cst_73 = arith.constant dense<0.000000e+00> : vector<8x128xf32>
    %185 = tpu.matmul %183, %184, %cst_73 {dimension_numbers = #tpu.dot_dimension_numbers<[1], [0], [0], [1], [0, 0, 1, 1], [], []>} : vector<8x32xbf16>, vector<32x128xbf16>, vector<8x128xf32> -> vector<8x128xf32>
    %186 = arith.addf %182, %185 : vector<8x128xf32>
    %187 = arith.addf %186, %6 : vector<8x128xf32>
    %188 = vector.extract_strided_slice %187 {offsets = [0, 0], sizes = [8, 32], strides = [1, 1]} : vector<8x128xf32> to vector<8x32xf32>
    %189 = arith.negf %188 : vector<8x32xf32>
    %190 = math.exp %189 : vector<8x32xf32>
    %cst_74 = arith.constant 1.000000e+00 : f32
    %191 = vector.broadcast %cst_74 : f32 to vector<8x32xf32>
    %192 = arith.addf %191, %190 : vector<8x32xf32>
    %193 = arith.divf %191, %192 : vector<8x32xf32>
    %194 = vector.extract_strided_slice %187 {offsets = [0, 32], sizes = [8, 32], strides = [1, 1]} : vector<8x128xf32> to vector<8x32xf32>
    %195 = arith.negf %194 : vector<8x32xf32>
    %196 = math.exp %195 : vector<8x32xf32>
    %cst_75 = arith.constant 1.000000e+00 : f32
    %197 = vector.broadcast %cst_75 : f32 to vector<8x32xf32>
    %198 = arith.addf %197, %196 : vector<8x32xf32>
    %199 = arith.divf %197, %198 : vector<8x32xf32>
    %200 = vector.extract_strided_slice %187 {offsets = [0, 64], sizes = [8, 32], strides = [1, 1]} : vector<8x128xf32> to vector<8x32xf32>
    %201 = math.tanh %200 : vector<8x32xf32>
    %202 = vector.extract_strided_slice %187 {offsets = [0, 96], sizes = [8, 32], strides = [1, 1]} : vector<8x128xf32> to vector<8x32xf32>
    %203 = arith.negf %202 : vector<8x32xf32>
    %204 = math.exp %203 : vector<8x32xf32>
    %cst_76 = arith.constant 1.000000e+00 : f32
    %205 = vector.broadcast %cst_76 : f32 to vector<8x32xf32>
    %206 = arith.addf %205, %204 : vector<8x32xf32>
    %207 = arith.divf %205, %206 : vector<8x32xf32>
    %208 = arith.mulf %199, %171 : vector<8x32xf32>
    %209 = arith.mulf %193, %201 : vector<8x32xf32>
    %210 = arith.addf %208, %209 : vector<8x32xf32>
    %211 = math.tanh %210 : vector<8x32xf32>
    %212 = arith.mulf %207, %211 : vector<8x32xf32>
    %213 = arith.index_cast %c4_i32 : i32 to index
    %c0_77 = arith.constant 0 : index
    %c0_78 = arith.constant 0 : index
    %214 = vector.load %arg22[%213, %c0_77, %c0_78] : memref<6x8x32xf32, #tpu.memory_space<vmem>>, vector<1x8x32xf32>
    %215 = vector.shape_cast %214 : vector<1x8x32xf32> to vector<8x32xf32>
    %216 = vector.shape_cast %212 : vector<8x32xf32> to vector<1x8x32xf32>
    tpu.vector_store %arg22[%213, %c0_77, %c0_78], %216 {strides = array<i32>} : memref<6x8x32xf32, #tpu.memory_space<vmem>>, vector<1x8x32xf32>,
    %c5_i32 = arith.constant 5 : i32
    %217 = arith.index_cast %c5_i32 : i32 to index
    %c0_79 = arith.constant 0 : index
    %c0_80 = arith.constant 0 : index
    %218 = vector.load %arg2[%217, %c0_79, %c0_80] : memref<6x8x16xbf16, #tpu.memory_space<vmem>>, vector<1x8x16xbf16>
    %219 = vector.shape_cast %218 : vector<1x8x16xbf16> to vector<8x16xbf16>
    %c0_81 = arith.constant 0 : index
    %c0_82 = arith.constant 0 : index
    %220 = vector.load %arg5[%c0_81, %c0_82] : memref<16x128xbf16, #tpu.memory_space<vmem>>, vector<16x128xbf16>
    %cst_83 = arith.constant dense<0.000000e+00> : vector<8x128xf32>
    %221 = tpu.matmul %219, %220, %cst_83 {dimension_numbers = #tpu.dot_dimension_numbers<[1], [0], [0], [1], [0, 0, 1, 1], [], []>} : vector<8x16xbf16>, vector<16x128xbf16>, vector<8x128xf32> -> vector<8x128xf32>
    %222 = arith.truncf %212 : vector<8x32xf32> to vector<8x32xbf16>
    %c0_84 = arith.constant 0 : index
    %c0_85 = arith.constant 0 : index
    %223 = vector.load %arg6[%c0_84, %c0_85] : memref<32x128xbf16, #tpu.memory_space<vmem>>, vector<32x128xbf16>
    %cst_86 = arith.constant dense<0.000000e+00> : vector<8x128xf32>
    %224 = tpu.matmul %222, %223, %cst_86 {dimension_numbers = #tpu.dot_dimension_numbers<[1], [0], [0], [1], [0, 0, 1, 1], [], []>} : vector<8x32xbf16>, vector<32x128xbf16>, vector<8x128xf32> -> vector<8x128xf32>
    %225 = arith.addf %221, %224 : vector<8x128xf32>
    %226 = arith.addf %225, %6 : vector<8x128xf32>
    %227 = vector.extract_strided_slice %226 {offsets = [0, 0], sizes = [8, 32], strides = [1, 1]} : vector<8x128xf32> to vector<8x32xf32>
    %228 = arith.negf %227 : vector<8x32xf32>
    %229 = math.exp %228 : vector<8x32xf32>
    %cst_87 = arith.constant 1.000000e+00 : f32
    %230 = vector.broadcast %cst_87 : f32 to vector<8x32xf32>
    %231 = arith.addf %230, %229 : vector<8x32xf32>
    %232 = arith.divf %230, %231 : vector<8x32xf32>
    %233 = vector.extract_strided_slice %226 {offsets = [0, 32], sizes = [8, 32], strides = [1, 1]} : vector<8x128xf32> to vector<8x32xf32>
    %234 = arith.negf %233 : vector<8x32xf32>
    %235 = math.exp %234 : vector<8x32xf32>
    %cst_88 = arith.constant 1.000000e+00 : f32
    %236 = vector.broadcast %cst_88 : f32 to vector<8x32xf32>
    %237 = arith.addf %236, %235 : vector<8x32xf32>
    %238 = arith.divf %236, %237 : vector<8x32xf32>
    %239 = vector.extract_strided_slice %226 {offsets = [0, 64], sizes = [8, 32], strides = [1, 1]} : vector<8x128xf32> to vector<8x32xf32>
    %240 = math.tanh %239 : vector<8x32xf32>
    %241 = vector.extract_strided_slice %226 {offsets = [0, 96], sizes = [8, 32], strides = [1, 1]} : vector<8x128xf32> to vector<8x32xf32>
    %242 = arith.negf %241 : vector<8x32xf32>
    %243 = math.exp %242 : vector<8x32xf32>
    %cst_89 = arith.constant 1.000000e+00 : f32
    %244 = vector.broadcast %cst_89 : f32 to vector<8x32xf32>
    %245 = arith.addf %244, %243 : vector<8x32xf32>
    %246 = arith.divf %244, %245 : vector<8x32xf32>
    %247 = arith.mulf %238, %210 : vector<8x32xf32>
    %248 = arith.mulf %232, %240 : vector<8x32xf32>
    %249 = arith.addf %247, %248 : vector<8x32xf32>
    %250 = math.tanh %249 : vector<8x32xf32>
    %251 = arith.mulf %246, %250 : vector<8x32xf32>
    %252 = arith.index_cast %c5_i32 : i32 to index
    %c0_90 = arith.constant 0 : index
    %c0_91 = arith.constant 0 : index
    %253 = vector.load %arg22[%252, %c0_90, %c0_91] : memref<6x8x32xf32, #tpu.memory_space<vmem>>, vector<1x8x32xf32>
    %254 = vector.shape_cast %253 : vector<1x8x32xf32> to vector<8x32xf32>
    %255 = vector.shape_cast %251 : vector<8x32xf32> to vector<1x8x32xf32>
    tpu.vector_store %arg22[%252, %c0_90, %c0_91], %255 {strides = array<i32>} : memref<6x8x32xf32, #tpu.memory_space<vmem>>, vector<1x8x32xf32>,
    %c6_i32 = arith.constant 6 : i32
    %c0_92 = arith.constant 0 : index
    %c0_93 = arith.constant 0 : index
    %c0_94 = arith.constant 0 : index
    %256 = vector.load %arg22[%c0_92, %c0_93, %c0_94] : memref<6x8x32xf32, #tpu.memory_space<vmem>>, vector<6x8x32xf32>
    %257 = vector.shape_cast %256 : vector<6x8x32xf32> to vector<48x32xf32>
    %258 = arith.truncf %257 : vector<48x32xf32> to vector<48x32xbf16>
    %c0_95 = arith.constant 0 : index
    %c0_96 = arith.constant 0 : index
    %259 = vector.load %arg9[%c0_95, %c0_96] : memref<32x32xbf16, #tpu.memory_space<vmem>>, vector<32x32xbf16>
    %cst_97 = arith.constant dense<0.000000e+00> : vector<48x32xf32>
    %260 = tpu.matmul %258, %259, %cst_97 {dimension_numbers = #tpu.dot_dimension_numbers<[1], [0], [0], [1], [0, 0, 1, 1], [], []>} : vector<48x32xbf16>, vector<32x32xbf16>, vector<48x32xf32> -> vector<48x32xf32>
    %261 = vector.shape_cast %260 : vector<48x32xf32> to vector<6x8x32xf32>
    %c0_98 = arith.constant 0 : index
    %c0_99 = arith.constant 0 : index
    %262 = vector.load %arg10[%c0_98, %c0_99] : memref<1x32xf32, #tpu.memory_space<vmem>>, vector<1x32xf32>
    %263 = vector.shape_cast %262 : vector<1x32xf32> to vector<1x1x32xf32>
    %264 = vector.shape_cast %263 : vector<1x1x32xf32> to vector<1x1x32xf32>
    %265 = vector.broadcast %264 : vector<1x1x32xf32> to vector<6x8x32xf32>
    %266 = arith.addf %261, %265 : vector<6x8x32xf32>
    %267 = tpu.iota {dimensions = array<i32: 1>} : vector<8x128xi32>
    %c25_i32 = arith.constant 25 : i32
    %268 = vector.broadcast %c25_i32 : i32 to vector<8x128xi32>
    %269 = arith.cmpi slt, %267, %268 : vector<8x128xi32>
    %c0_100 = arith.constant 0 : index
    %c0_101 = arith.constant 0 : index
    %c0_102 = arith.constant 0 : index
    %270 = vector.load %arg3[%c0_100, %c0_101, %c0_102] : memref<8x8x16xbf16, #tpu.memory_space<vmem>>, vector<1x8x16xbf16>
    %271 = vector.shape_cast %270 : vector<1x8x16xbf16> to vector<8x16xbf16>
    %c0_103 = arith.constant 0 : index
    %c0_104 = arith.constant 0 : index
    %272 = vector.load %arg23[%c0_103, %c0_104] : memref<8x16xbf16, #tpu.memory_space<vmem>>, vector<8x16xbf16>
    tpu.vector_store %arg23[%c0_103, %c0_104], %271 {strides = array<i32>} : memref<8x16xbf16, #tpu.memory_space<vmem>>, vector<8x16xbf16>,
    %c1_i32_105 = arith.constant 1 : i32
    %c0_106 = arith.constant 0 : index
    %c0_107 = arith.constant 0 : index
    %273 = vector.load %arg23[%c0_106, %c0_107] : memref<8x16xbf16, #tpu.memory_space<vmem>>, vector<8x16xbf16>
    %274 = arith.truncf %251 : vector<8x32xf32> to vector<8x32xbf16>
    %c0_108 = arith.constant 0 : index
    %c0_109 = arith.constant 0 : index
    %275 = vector.load %arg8[%c0_108, %c0_109] : memref<32x32xbf16, #tpu.memory_space<vmem>>, vector<32x32xbf16>
    %cst_110 = arith.constant dense<0.000000e+00> : vector<8x32xf32>
    %276 = tpu.matmul %274, %275, %cst_110 {dimension_numbers = #tpu.dot_dimension_numbers<[1], [0], [0], [1], [0, 0, 1, 1], [], []>} : vector<8x32xbf16>, vector<32x32xbf16>, vector<8x32xf32> -> vector<8x32xf32>
    %277 = vector.shape_cast %276 : vector<8x32xf32> to vector<1x8x32xf32>
    %278 = vector.broadcast %277 : vector<1x8x32xf32> to vector<6x8x32xf32>
    %279 = arith.addf %266, %278 : vector<6x8x32xf32>
    %280 = math.tanh %279 : vector<6x8x32xf32>
    %281 = arith.mulf %280, %19 : vector<6x8x32xf32>
    %cst_111 = arith.constant dense<0.000000e+00> : vector<6x8xf32>
    %282 = vector.multi_reduction <add>, %281, %cst_111 [2] : vector<6x8x32xf32> to vector<6x8xf32>
    %283 = vector.shape_cast %282 : vector<6x8xf32> to vector<6x8x1xf32>
    %cst_112 = arith.constant dense<0xFF800000> : vector<8x1xf32>
    %284 = vector.multi_reduction <maximumf>, %283, %cst_112 [0] : vector<6x8x1xf32> to vector<8x1xf32>
    %285 = vector.shape_cast %284 : vector<8x1xf32> to vector<1x8x1xf32>
    %286 = vector.broadcast %285 : vector<1x8x1xf32> to vector<6x8x1xf32>
    %287 = arith.subf %283, %286 : vector<6x8x1xf32>
    %288 = math.exp %287 : vector<6x8x1xf32>
    %cst_113 = arith.constant dense<0.000000e+00> : vector<8x1xf32>
    %289 = vector.multi_reduction <add>, %288, %cst_113 [0] : vector<6x8x1xf32> to vector<8x1xf32>
    %290 = vector.shape_cast %289 : vector<8x1xf32> to vector<1x8x1xf32>
    %291 = tpu.reciprocal %290 {approx = true} : vector<1x8x1xf32> -> vector<1x8x1xf32>
    %292 = vector.broadcast %291 : vector<1x8x1xf32> to vector<6x8x1xf32>
    %293 = arith.mulf %288, %292 : vector<6x8x1xf32>
    %294 = vector.broadcast %293 : vector<6x8x1xf32> to vector<6x8x32xf32>
    %295 = arith.mulf %294, %256 : vector<6x8x32xf32>
    %cst_114 = arith.constant dense<0.000000e+00> : vector<8x32xf32>
    %296 = vector.multi_reduction <add>, %295, %cst_114 [0] : vector<6x8x32xf32> to vector<8x32xf32>
    %297 = arith.truncf %296 : vector<8x32xf32> to vector<8x32xbf16>
    %c0_115 = arith.constant 0 : index
    %c0_116 = arith.constant 0 : index
    %298 = vector.load %arg12[%c0_115, %c0_116] : memref<16x96xbf16, #tpu.memory_space<vmem>>, vector<16x96xbf16>
    %cst_117 = arith.constant dense<0.000000e+00> : vector<8x96xf32>
    %299 = tpu.matmul %273, %298, %cst_117 {dimension_numbers = #tpu.dot_dimension_numbers<[1], [0], [0], [1], [0, 0, 1, 1], [], []>} : vector<8x16xbf16>, vector<16x96xbf16>, vector<8x96xf32> -> vector<8x96xf32>
    %c0_118 = arith.constant 0 : index
    %c0_119 = arith.constant 0 : index
    %300 = vector.load %arg13[%c0_118, %c0_119] : memref<32x96xbf16, #tpu.memory_space<vmem>>, vector<32x96xbf16>
    %cst_120 = arith.constant dense<0.000000e+00> : vector<8x96xf32>
    %301 = tpu.matmul %297, %300, %cst_120 {dimension_numbers = #tpu.dot_dimension_numbers<[1], [0], [0], [1], [0, 0, 1, 1], [], []>} : vector<8x32xbf16>, vector<32x96xbf16>, vector<8x96xf32> -> vector<8x96xf32>
    %302 = arith.addf %299, %301 : vector<8x96xf32>
    %303 = arith.addf %302, %9 : vector<8x96xf32>
    %c0_121 = arith.constant 0 : index
    %c0_122 = arith.constant 0 : index
    %304 = vector.load %arg14[%c0_121, %c0_122] : memref<32x96xbf16, #tpu.memory_space<vmem>>, vector<32x96xbf16>
    %cst_123 = arith.constant dense<0.000000e+00> : vector<8x96xf32>
    %305 = tpu.matmul %274, %304, %cst_123 {dimension_numbers = #tpu.dot_dimension_numbers<[1], [0], [0], [1], [0, 0, 1, 1], [], []>} : vector<8x32xbf16>, vector<32x96xbf16>, vector<8x96xf32> -> vector<8x96xf32>
    %306 = arith.addf %305, %12 : vector<8x96xf32>
    %307 = vector.extract_strided_slice %303 {offsets = [0, 0], sizes = [8, 32], strides = [1, 1]} : vector<8x96xf32> to vector<8x32xf32>
    %308 = vector.extract_strided_slice %306 {offsets = [0, 0], sizes = [8, 32], strides = [1, 1]} : vector<8x96xf32> to vector<8x32xf32>
    %309 = arith.addf %307, %308 : vector<8x32xf32>
    %310 = arith.negf %309 : vector<8x32xf32>
    %311 = math.exp %310 : vector<8x32xf32>
    %cst_124 = arith.constant 1.000000e+00 : f32
    %312 = vector.broadcast %cst_124 : f32 to vector<8x32xf32>
    %313 = arith.addf %312, %311 : vector<8x32xf32>
    %314 = arith.divf %312, %313 : vector<8x32xf32>
    %315 = vector.extract_strided_slice %303 {offsets = [0, 32], sizes = [8, 32], strides = [1, 1]} : vector<8x96xf32> to vector<8x32xf32>
    %316 = vector.extract_strided_slice %306 {offsets = [0, 32], sizes = [8, 32], strides = [1, 1]} : vector<8x96xf32> to vector<8x32xf32>
    %317 = arith.addf %315, %316 : vector<8x32xf32>
    %318 = arith.negf %317 : vector<8x32xf32>
    %319 = math.exp %318 : vector<8x32xf32>
    %cst_125 = arith.constant 1.000000e+00 : f32
    %320 = vector.broadcast %cst_125 : f32 to vector<8x32xf32>
    %321 = arith.addf %320, %319 : vector<8x32xf32>
    %322 = arith.divf %320, %321 : vector<8x32xf32>
    %323 = vector.extract_strided_slice %303 {offsets = [0, 64], sizes = [8, 32], strides = [1, 1]} : vector<8x96xf32> to vector<8x32xf32>
    %324 = vector.extract_strided_slice %306 {offsets = [0, 64], sizes = [8, 32], strides = [1, 1]} : vector<8x96xf32> to vector<8x32xf32>
    %325 = arith.mulf %314, %324 : vector<8x32xf32>
    %326 = arith.addf %323, %325 : vector<8x32xf32>
    %327 = math.tanh %326 : vector<8x32xf32>
    %cst_126 = arith.constant 1.000000e+00 : f32
    %328 = vector.broadcast %cst_126 : f32 to vector<8x32xf32>
    %329 = arith.subf %328, %322 : vector<8x32xf32>
    %330 = arith.mulf %329, %327 : vector<8x32xf32>
    %331 = arith.mulf %322, %251 : vector<8x32xf32>
    %332 = arith.addf %330, %331 : vector<8x32xf32>
    %333 = arith.truncf %332 : vector<8x32xf32> to vector<8x32xbf16>
    %c0_127 = arith.constant 0 : index
    %c0_128 = arith.constant 0 : index
    %334 = vector.load %arg19[%c0_127, %c0_128] : memref<32x128xbf16, #tpu.memory_space<vmem>>, vector<32x128xbf16>
    %cst_129 = arith.constant dense<0.000000e+00> : vector<8x128xf32>
    %335 = tpu.matmul %333, %334, %cst_129 {dimension_numbers = #tpu.dot_dimension_numbers<[1], [0], [0], [1], [0, 0, 1, 1], [], []>} : vector<8x32xbf16>, vector<32x128xbf16>, vector<8x128xf32> -> vector<8x128xf32>
    %c0_130 = arith.constant 0 : index
    %c0_131 = arith.constant 0 : index
    %336 = vector.load %arg18[%c0_130, %c0_131] : memref<32x128xbf16, #tpu.memory_space<vmem>>, vector<32x128xbf16>
    %cst_132 = arith.constant dense<0.000000e+00> : vector<8x128xf32>
    %337 = tpu.matmul %297, %336, %cst_132 {dimension_numbers = #tpu.dot_dimension_numbers<[1], [0], [0], [1], [0, 0, 1, 1], [], []>} : vector<8x32xbf16>, vector<32x128xbf16>, vector<8x128xf32> -> vector<8x128xf32>
    %338 = arith.addf %335, %337 : vector<8x128xf32>
    %c0_133 = arith.constant 0 : index
    %c0_134 = arith.constant 0 : index
    %339 = vector.load %arg17[%c0_133, %c0_134] : memref<16x128xbf16, #tpu.memory_space<vmem>>, vector<16x128xbf16>
    %cst_135 = arith.constant dense<0.000000e+00> : vector<8x128xf32>
    %340 = tpu.matmul %273, %339, %cst_135 {dimension_numbers = #tpu.dot_dimension_numbers<[1], [0], [0], [1], [0, 0, 1, 1], [], []>} : vector<8x16xbf16>, vector<16x128xbf16>, vector<8x128xf32> -> vector<8x128xf32>
    %341 = arith.addf %338, %340 : vector<8x128xf32>
    %342 = arith.addf %341, %15 : vector<8x128xf32>
    %343 = arith.index_cast %c1_i32_105 : i32 to index
    %c0_136 = arith.constant 0 : index
    %c0_137 = arith.constant 0 : index
    %344 = vector.load %arg21[%343, %c0_136, %c0_137] : memref<8x8x128xf32, #tpu.memory_space<vmem>>, vector<1x8x128xf32>
    %345 = vector.shape_cast %344 : vector<1x8x128xf32> to vector<8x128xf32>
    %346 = vector.shape_cast %342 : vector<8x128xf32> to vector<1x8x128xf32>
    tpu.vector_store %arg21[%343, %c0_136, %c0_137], %346 {strides = array<i32>} : memref<8x8x128xf32, #tpu.memory_space<vmem>>, vector<1x8x128xf32>,
    %347 = arith.index_cast %c1_i32_105 : i32 to index
    %348 = memref.load %arg1[%347] : memref<8xi32, #tpu.memory_space<smem>>
    %c0_i32_138 = arith.constant 0 : i32
    %349 = arith.cmpi eq, %348, %c0_i32_138 : i32
    %350 = arith.extui %349 : i1 to i32
    %c0_i32_139 = arith.constant 0 : i32
    %351 = arith.cmpi ne, %350, %c0_i32_139 : i32
    scf.if %351 {
      %cst_364 = arith.constant -1.000000e+30 : f32
      %861 = vector.broadcast %cst_364 : f32 to vector<8x128xf32>
      %862 = arith.select %269, %342, %861 : vector<8x128xi1>, vector<8x128xf32>
      %cst_365 = arith.constant dense<0xFF800000> : vector<8xf32>
      %863 = vector.multi_reduction <maximumf>, %862, %cst_365 [1] : vector<8x128xf32> to vector<8xf32>
      %864 = vector.shape_cast %863 : vector<8xf32> to vector<8x1xf32>
      %865 = vector.broadcast %864 : vector<8x1xf32> to vector<8x128xf32>
      %866 = arith.cmpf oge, %862, %865 : vector<8x128xf32>
      %c128_i32 = arith.constant 128 : i32
      %867 = vector.broadcast %c128_i32 : i32 to vector<8x128xi32>
      %868 = arith.select %866, %267, %867 : vector<8x128xi1>, vector<8x128xi32>
      %cst_366 = arith.constant dense<2147483647> : vector<8xi32>
      %869 = vector.multi_reduction <minsi>, %868, %cst_366 [1] : vector<8x128xi32> to vector<8xi32>
      %870 = vector.shape_cast %869 : vector<8xi32> to vector<8x1xi32>
      %871 = vector.broadcast %870 : vector<8x1xi32> to vector<8x128xi32>
      %872 = arith.cmpi eq, %267, %871 : vector<8x128xi32>
      %873 = arith.extui %872 : vector<8x128xi1> to vector<8x128xi32>
      %874 = arith.sitofp %873 : vector<8x128xi32> to vector<8x128xf32>
      %875 = arith.truncf %874 : vector<8x128xf32> to vector<8x128xbf16>
      %c0_367 = arith.constant 0 : index
      %c0_368 = arith.constant 0 : index
      %876 = vector.load %arg4[%c0_367, %c0_368] : memref<128x16xbf16, #tpu.memory_space<vmem>>, vector<128x16xbf16>
      %cst_369 = arith.constant dense<0.000000e+00> : vector<8x16xf32>
      %877 = tpu.matmul %875, %876, %cst_369 {dimension_numbers = #tpu.dot_dimension_numbers<[1], [0], [0], [1], [0, 0, 1, 1], [], []>} : vector<8x128xbf16>, vector<128x16xbf16>, vector<8x16xf32> -> vector<8x16xf32>
      %878 = arith.truncf %877 : vector<8x16xf32> to vector<8x16xbf16>
      %c0_370 = arith.constant 0 : index
      %c0_371 = arith.constant 0 : index
      %879 = vector.load %arg23[%c0_370, %c0_371] : memref<8x16xbf16, #tpu.memory_space<vmem>>, vector<8x16xbf16>
      tpu.vector_store %arg23[%c0_370, %c0_371], %878 {strides = array<i32>} : memref<8x16xbf16, #tpu.memory_space<vmem>>, vector<8x16xbf16>,
    } else {
    }
    %352 = arith.index_cast %c1_i32_105 : i32 to index
    %353 = memref.load %arg1[%352] : memref<8xi32, #tpu.memory_space<smem>>
    %c0_i32_140 = arith.constant 0 : i32
    %354 = arith.cmpi ne, %353, %c0_i32_140 : i32
    %355 = arith.extui %354 : i1 to i32
    %c0_i32_141 = arith.constant 0 : i32
    %356 = arith.cmpi ne, %355, %c0_i32_141 : i32
    scf.if %356 {
      %861 = arith.index_cast %c1_i32_105 : i32 to index
      %c0_364 = arith.constant 0 : index
      %c0_365 = arith.constant 0 : index
      %862 = vector.load %arg3[%861, %c0_364, %c0_365] : memref<8x8x16xbf16, #tpu.memory_space<vmem>>, vector<1x8x16xbf16>
      %863 = vector.shape_cast %862 : vector<1x8x16xbf16> to vector<8x16xbf16>
      %c0_366 = arith.constant 0 : index
      %c0_367 = arith.constant 0 : index
      %864 = vector.load %arg23[%c0_366, %c0_367] : memref<8x16xbf16, #tpu.memory_space<vmem>>, vector<8x16xbf16>
      tpu.vector_store %arg23[%c0_366, %c0_367], %863 {strides = array<i32>} : memref<8x16xbf16, #tpu.memory_space<vmem>>, vector<8x16xbf16>,
    } else {
    }
    %c2_i32_142 = arith.constant 2 : i32
    %c0_143 = arith.constant 0 : index
    %c0_144 = arith.constant 0 : index
    %357 = vector.load %arg23[%c0_143, %c0_144] : memref<8x16xbf16, #tpu.memory_space<vmem>>, vector<8x16xbf16>
    %358 = arith.truncf %332 : vector<8x32xf32> to vector<8x32xbf16>
    %c0_145 = arith.constant 0 : index
    %c0_146 = arith.constant 0 : index
    %359 = vector.load %arg8[%c0_145, %c0_146] : memref<32x32xbf16, #tpu.memory_space<vmem>>, vector<32x32xbf16>
    %cst_147 = arith.constant dense<0.000000e+00> : vector<8x32xf32>
    %360 = tpu.matmul %358, %359, %cst_147 {dimension_numbers = #tpu.dot_dimension_numbers<[1], [0], [0], [1], [0, 0, 1, 1], [], []>} : vector<8x32xbf16>, vector<32x32xbf16>, vector<8x32xf32> -> vector<8x32xf32>
    %361 = vector.shape_cast %360 : vector<8x32xf32> to vector<1x8x32xf32>
    %362 = vector.broadcast %361 : vector<1x8x32xf32> to vector<6x8x32xf32>
    %363 = arith.addf %266, %362 : vector<6x8x32xf32>
    %364 = math.tanh %363 : vector<6x8x32xf32>
    %365 = arith.mulf %364, %19 : vector<6x8x32xf32>
    %cst_148 = arith.constant dense<0.000000e+00> : vector<6x8xf32>
    %366 = vector.multi_reduction <add>, %365, %cst_148 [2] : vector<6x8x32xf32> to vector<6x8xf32>
    %367 = vector.shape_cast %366 : vector<6x8xf32> to vector<6x8x1xf32>
    %cst_149 = arith.constant dense<0xFF800000> : vector<8x1xf32>
    %368 = vector.multi_reduction <maximumf>, %367, %cst_149 [0] : vector<6x8x1xf32> to vector<8x1xf32>
    %369 = vector.shape_cast %368 : vector<8x1xf32> to vector<1x8x1xf32>
    %370 = vector.broadcast %369 : vector<1x8x1xf32> to vector<6x8x1xf32>
    %371 = arith.subf %367, %370 : vector<6x8x1xf32>
    %372 = math.exp %371 : vector<6x8x1xf32>
    %cst_150 = arith.constant dense<0.000000e+00> : vector<8x1xf32>
    %373 = vector.multi_reduction <add>, %372, %cst_150 [0] : vector<6x8x1xf32> to vector<8x1xf32>
    %374 = vector.shape_cast %373 : vector<8x1xf32> to vector<1x8x1xf32>
    %375 = tpu.reciprocal %374 {approx = true} : vector<1x8x1xf32> -> vector<1x8x1xf32>
    %376 = vector.broadcast %375 : vector<1x8x1xf32> to vector<6x8x1xf32>
    %377 = arith.mulf %372, %376 : vector<6x8x1xf32>
    %378 = vector.broadcast %377 : vector<6x8x1xf32> to vector<6x8x32xf32>
    %379 = arith.mulf %378, %256 : vector<6x8x32xf32>
    %cst_151 = arith.constant dense<0.000000e+00> : vector<8x32xf32>
    %380 = vector.multi_reduction <add>, %379, %cst_151 [0] : vector<6x8x32xf32> to vector<8x32xf32>
    %381 = arith.truncf %380 : vector<8x32xf32> to vector<8x32xbf16>
    %c0_152 = arith.constant 0 : index
    %c0_153 = arith.constant 0 : index
    %382 = vector.load %arg12[%c0_152, %c0_153] : memref<16x96xbf16, #tpu.memory_space<vmem>>, vector<16x96xbf16>
    %cst_154 = arith.constant dense<0.000000e+00> : vector<8x96xf32>
    %383 = tpu.matmul %357, %382, %cst_154 {dimension_numbers = #tpu.dot_dimension_numbers<[1], [0], [0], [1], [0, 0, 1, 1], [], []>} : vector<8x16xbf16>, vector<16x96xbf16>, vector<8x96xf32> -> vector<8x96xf32>
    %c0_155 = arith.constant 0 : index
    %c0_156 = arith.constant 0 : index
    %384 = vector.load %arg13[%c0_155, %c0_156] : memref<32x96xbf16, #tpu.memory_space<vmem>>, vector<32x96xbf16>
    %cst_157 = arith.constant dense<0.000000e+00> : vector<8x96xf32>
    %385 = tpu.matmul %381, %384, %cst_157 {dimension_numbers = #tpu.dot_dimension_numbers<[1], [0], [0], [1], [0, 0, 1, 1], [], []>} : vector<8x32xbf16>, vector<32x96xbf16>, vector<8x96xf32> -> vector<8x96xf32>
    %386 = arith.addf %383, %385 : vector<8x96xf32>
    %387 = arith.addf %386, %9 : vector<8x96xf32>
    %c0_158 = arith.constant 0 : index
    %c0_159 = arith.constant 0 : index
    %388 = vector.load %arg14[%c0_158, %c0_159] : memref<32x96xbf16, #tpu.memory_space<vmem>>, vector<32x96xbf16>
    %cst_160 = arith.constant dense<0.000000e+00> : vector<8x96xf32>
    %389 = tpu.matmul %358, %388, %cst_160 {dimension_numbers = #tpu.dot_dimension_numbers<[1], [0], [0], [1], [0, 0, 1, 1], [], []>} : vector<8x32xbf16>, vector<32x96xbf16>, vector<8x96xf32> -> vector<8x96xf32>
    %390 = arith.addf %389, %12 : vector<8x96xf32>
    %391 = vector.extract_strided_slice %387 {offsets = [0, 0], sizes = [8, 32], strides = [1, 1]} : vector<8x96xf32> to vector<8x32xf32>
    %392 = vector.extract_strided_slice %390 {offsets = [0, 0], sizes = [8, 32], strides = [1, 1]} : vector<8x96xf32> to vector<8x32xf32>
    %393 = arith.addf %391, %392 : vector<8x32xf32>
    %394 = arith.negf %393 : vector<8x32xf32>
    %395 = math.exp %394 : vector<8x32xf32>
    %cst_161 = arith.constant 1.000000e+00 : f32
    %396 = vector.broadcast %cst_161 : f32 to vector<8x32xf32>
    %397 = arith.addf %396, %395 : vector<8x32xf32>
    %398 = arith.divf %396, %397 : vector<8x32xf32>
    %399 = vector.extract_strided_slice %387 {offsets = [0, 32], sizes = [8, 32], strides = [1, 1]} : vector<8x96xf32> to vector<8x32xf32>
    %400 = vector.extract_strided_slice %390 {offsets = [0, 32], sizes = [8, 32], strides = [1, 1]} : vector<8x96xf32> to vector<8x32xf32>
    %401 = arith.addf %399, %400 : vector<8x32xf32>
    %402 = arith.negf %401 : vector<8x32xf32>
    %403 = math.exp %402 : vector<8x32xf32>
    %cst_162 = arith.constant 1.000000e+00 : f32
    %404 = vector.broadcast %cst_162 : f32 to vector<8x32xf32>
    %405 = arith.addf %404, %403 : vector<8x32xf32>
    %406 = arith.divf %404, %405 : vector<8x32xf32>
    %407 = vector.extract_strided_slice %387 {offsets = [0, 64], sizes = [8, 32], strides = [1, 1]} : vector<8x96xf32> to vector<8x32xf32>
    %408 = vector.extract_strided_slice %390 {offsets = [0, 64], sizes = [8, 32], strides = [1, 1]} : vector<8x96xf32> to vector<8x32xf32>
    %409 = arith.mulf %398, %408 : vector<8x32xf32>
    %410 = arith.addf %407, %409 : vector<8x32xf32>
    %411 = math.tanh %410 : vector<8x32xf32>
    %cst_163 = arith.constant 1.000000e+00 : f32
    %412 = vector.broadcast %cst_163 : f32 to vector<8x32xf32>
    %413 = arith.subf %412, %406 : vector<8x32xf32>
    %414 = arith.mulf %413, %411 : vector<8x32xf32>
    %415 = arith.mulf %406, %332 : vector<8x32xf32>
    %416 = arith.addf %414, %415 : vector<8x32xf32>
    %417 = arith.truncf %416 : vector<8x32xf32> to vector<8x32xbf16>
    %c0_164 = arith.constant 0 : index
    %c0_165 = arith.constant 0 : index
    %418 = vector.load %arg19[%c0_164, %c0_165] : memref<32x128xbf16, #tpu.memory_space<vmem>>, vector<32x128xbf16>
    %cst_166 = arith.constant dense<0.000000e+00> : vector<8x128xf32>
    %419 = tpu.matmul %417, %418, %cst_166 {dimension_numbers = #tpu.dot_dimension_numbers<[1], [0], [0], [1], [0, 0, 1, 1], [], []>} : vector<8x32xbf16>, vector<32x128xbf16>, vector<8x128xf32> -> vector<8x128xf32>
    %c0_167 = arith.constant 0 : index
    %c0_168 = arith.constant 0 : index
    %420 = vector.load %arg18[%c0_167, %c0_168] : memref<32x128xbf16, #tpu.memory_space<vmem>>, vector<32x128xbf16>
    %cst_169 = arith.constant dense<0.000000e+00> : vector<8x128xf32>
    %421 = tpu.matmul %381, %420, %cst_169 {dimension_numbers = #tpu.dot_dimension_numbers<[1], [0], [0], [1], [0, 0, 1, 1], [], []>} : vector<8x32xbf16>, vector<32x128xbf16>, vector<8x128xf32> -> vector<8x128xf32>
    %422 = arith.addf %419, %421 : vector<8x128xf32>
    %c0_170 = arith.constant 0 : index
    %c0_171 = arith.constant 0 : index
    %423 = vector.load %arg17[%c0_170, %c0_171] : memref<16x128xbf16, #tpu.memory_space<vmem>>, vector<16x128xbf16>
    %cst_172 = arith.constant dense<0.000000e+00> : vector<8x128xf32>
    %424 = tpu.matmul %357, %423, %cst_172 {dimension_numbers = #tpu.dot_dimension_numbers<[1], [0], [0], [1], [0, 0, 1, 1], [], []>} : vector<8x16xbf16>, vector<16x128xbf16>, vector<8x128xf32> -> vector<8x128xf32>
    %425 = arith.addf %422, %424 : vector<8x128xf32>
    %426 = arith.addf %425, %15 : vector<8x128xf32>
    %427 = arith.index_cast %c2_i32_142 : i32 to index
    %c0_173 = arith.constant 0 : index
    %c0_174 = arith.constant 0 : index
    %428 = vector.load %arg21[%427, %c0_173, %c0_174] : memref<8x8x128xf32, #tpu.memory_space<vmem>>, vector<1x8x128xf32>
    %429 = vector.shape_cast %428 : vector<1x8x128xf32> to vector<8x128xf32>
    %430 = vector.shape_cast %426 : vector<8x128xf32> to vector<1x8x128xf32>
    tpu.vector_store %arg21[%427, %c0_173, %c0_174], %430 {strides = array<i32>} : memref<8x8x128xf32, #tpu.memory_space<vmem>>, vector<1x8x128xf32>,
    %431 = arith.index_cast %c2_i32_142 : i32 to index
    %432 = memref.load %arg1[%431] : memref<8xi32, #tpu.memory_space<smem>>
    %c0_i32_175 = arith.constant 0 : i32
    %433 = arith.cmpi eq, %432, %c0_i32_175 : i32
    %434 = arith.extui %433 : i1 to i32
    %c0_i32_176 = arith.constant 0 : i32
    %435 = arith.cmpi ne, %434, %c0_i32_176 : i32
    scf.if %435 {
      %cst_364 = arith.constant -1.000000e+30 : f32
      %861 = vector.broadcast %cst_364 : f32 to vector<8x128xf32>
      %862 = arith.select %269, %426, %861 : vector<8x128xi1>, vector<8x128xf32>
      %cst_365 = arith.constant dense<0xFF800000> : vector<8xf32>
      %863 = vector.multi_reduction <maximumf>, %862, %cst_365 [1] : vector<8x128xf32> to vector<8xf32>
      %864 = vector.shape_cast %863 : vector<8xf32> to vector<8x1xf32>
      %865 = vector.broadcast %864 : vector<8x1xf32> to vector<8x128xf32>
      %866 = arith.cmpf oge, %862, %865 : vector<8x128xf32>
      %c128_i32 = arith.constant 128 : i32
      %867 = vector.broadcast %c128_i32 : i32 to vector<8x128xi32>
      %868 = arith.select %866, %267, %867 : vector<8x128xi1>, vector<8x128xi32>
      %cst_366 = arith.constant dense<2147483647> : vector<8xi32>
      %869 = vector.multi_reduction <minsi>, %868, %cst_366 [1] : vector<8x128xi32> to vector<8xi32>
      %870 = vector.shape_cast %869 : vector<8xi32> to vector<8x1xi32>
      %871 = vector.broadcast %870 : vector<8x1xi32> to vector<8x128xi32>
      %872 = arith.cmpi eq, %267, %871 : vector<8x128xi32>
      %873 = arith.extui %872 : vector<8x128xi1> to vector<8x128xi32>
      %874 = arith.sitofp %873 : vector<8x128xi32> to vector<8x128xf32>
      %875 = arith.truncf %874 : vector<8x128xf32> to vector<8x128xbf16>
      %c0_367 = arith.constant 0 : index
      %c0_368 = arith.constant 0 : index
      %876 = vector.load %arg4[%c0_367, %c0_368] : memref<128x16xbf16, #tpu.memory_space<vmem>>, vector<128x16xbf16>
      %cst_369 = arith.constant dense<0.000000e+00> : vector<8x16xf32>
      %877 = tpu.matmul %875, %876, %cst_369 {dimension_numbers = #tpu.dot_dimension_numbers<[1], [0], [0], [1], [0, 0, 1, 1], [], []>} : vector<8x128xbf16>, vector<128x16xbf16>, vector<8x16xf32> -> vector<8x16xf32>
      %878 = arith.truncf %877 : vector<8x16xf32> to vector<8x16xbf16>
      %c0_370 = arith.constant 0 : index
      %c0_371 = arith.constant 0 : index
      %879 = vector.load %arg23[%c0_370, %c0_371] : memref<8x16xbf16, #tpu.memory_space<vmem>>, vector<8x16xbf16>
      tpu.vector_store %arg23[%c0_370, %c0_371], %878 {strides = array<i32>} : memref<8x16xbf16, #tpu.memory_space<vmem>>, vector<8x16xbf16>,
    } else {
    }
    %436 = arith.index_cast %c2_i32_142 : i32 to index
    %437 = memref.load %arg1[%436] : memref<8xi32, #tpu.memory_space<smem>>
    %c0_i32_177 = arith.constant 0 : i32
    %438 = arith.cmpi ne, %437, %c0_i32_177 : i32
    %439 = arith.extui %438 : i1 to i32
    %c0_i32_178 = arith.constant 0 : i32
    %440 = arith.cmpi ne, %439, %c0_i32_178 : i32
    scf.if %440 {
      %861 = arith.index_cast %c2_i32_142 : i32 to index
      %c0_364 = arith.constant 0 : index
      %c0_365 = arith.constant 0 : index
      %862 = vector.load %arg3[%861, %c0_364, %c0_365] : memref<8x8x16xbf16, #tpu.memory_space<vmem>>, vector<1x8x16xbf16>
      %863 = vector.shape_cast %862 : vector<1x8x16xbf16> to vector<8x16xbf16>
      %c0_366 = arith.constant 0 : index
      %c0_367 = arith.constant 0 : index
      %864 = vector.load %arg23[%c0_366, %c0_367] : memref<8x16xbf16, #tpu.memory_space<vmem>>, vector<8x16xbf16>
      tpu.vector_store %arg23[%c0_366, %c0_367], %863 {strides = array<i32>} : memref<8x16xbf16, #tpu.memory_space<vmem>>, vector<8x16xbf16>,
    } else {
    }
    %c3_i32_179 = arith.constant 3 : i32
    %c0_180 = arith.constant 0 : index
    %c0_181 = arith.constant 0 : index
    %441 = vector.load %arg23[%c0_180, %c0_181] : memref<8x16xbf16, #tpu.memory_space<vmem>>, vector<8x16xbf16>
    %442 = arith.truncf %416 : vector<8x32xf32> to vector<8x32xbf16>
    %c0_182 = arith.constant 0 : index
    %c0_183 = arith.constant 0 : index
    %443 = vector.load %arg8[%c0_182, %c0_183] : memref<32x32xbf16, #tpu.memory_space<vmem>>, vector<32x32xbf16>
    %cst_184 = arith.constant dense<0.000000e+00> : vector<8x32xf32>
    %444 = tpu.matmul %442, %443, %cst_184 {dimension_numbers = #tpu.dot_dimension_numbers<[1], [0], [0], [1], [0, 0, 1, 1], [], []>} : vector<8x32xbf16>, vector<32x32xbf16>, vector<8x32xf32> -> vector<8x32xf32>
    %445 = vector.shape_cast %444 : vector<8x32xf32> to vector<1x8x32xf32>
    %446 = vector.broadcast %445 : vector<1x8x32xf32> to vector<6x8x32xf32>
    %447 = arith.addf %266, %446 : vector<6x8x32xf32>
    %448 = math.tanh %447 : vector<6x8x32xf32>
    %449 = arith.mulf %448, %19 : vector<6x8x32xf32>
    %cst_185 = arith.constant dense<0.000000e+00> : vector<6x8xf32>
    %450 = vector.multi_reduction <add>, %449, %cst_185 [2] : vector<6x8x32xf32> to vector<6x8xf32>
    %451 = vector.shape_cast %450 : vector<6x8xf32> to vector<6x8x1xf32>
    %cst_186 = arith.constant dense<0xFF800000> : vector<8x1xf32>
    %452 = vector.multi_reduction <maximumf>, %451, %cst_186 [0] : vector<6x8x1xf32> to vector<8x1xf32>
    %453 = vector.shape_cast %452 : vector<8x1xf32> to vector<1x8x1xf32>
    %454 = vector.broadcast %453 : vector<1x8x1xf32> to vector<6x8x1xf32>
    %455 = arith.subf %451, %454 : vector<6x8x1xf32>
    %456 = math.exp %455 : vector<6x8x1xf32>
    %cst_187 = arith.constant dense<0.000000e+00> : vector<8x1xf32>
    %457 = vector.multi_reduction <add>, %456, %cst_187 [0] : vector<6x8x1xf32> to vector<8x1xf32>
    %458 = vector.shape_cast %457 : vector<8x1xf32> to vector<1x8x1xf32>
    %459 = tpu.reciprocal %458 {approx = true} : vector<1x8x1xf32> -> vector<1x8x1xf32>
    %460 = vector.broadcast %459 : vector<1x8x1xf32> to vector<6x8x1xf32>
    %461 = arith.mulf %456, %460 : vector<6x8x1xf32>
    %462 = vector.broadcast %461 : vector<6x8x1xf32> to vector<6x8x32xf32>
    %463 = arith.mulf %462, %256 : vector<6x8x32xf32>
    %cst_188 = arith.constant dense<0.000000e+00> : vector<8x32xf32>
    %464 = vector.multi_reduction <add>, %463, %cst_188 [0] : vector<6x8x32xf32> to vector<8x32xf32>
    %465 = arith.truncf %464 : vector<8x32xf32> to vector<8x32xbf16>
    %c0_189 = arith.constant 0 : index
    %c0_190 = arith.constant 0 : index
    %466 = vector.load %arg12[%c0_189, %c0_190] : memref<16x96xbf16, #tpu.memory_space<vmem>>, vector<16x96xbf16>
    %cst_191 = arith.constant dense<0.000000e+00> : vector<8x96xf32>
    %467 = tpu.matmul %441, %466, %cst_191 {dimension_numbers = #tpu.dot_dimension_numbers<[1], [0], [0], [1], [0, 0, 1, 1], [], []>} : vector<8x16xbf16>, vector<16x96xbf16>, vector<8x96xf32> -> vector<8x96xf32>
    %c0_192 = arith.constant 0 : index
    %c0_193 = arith.constant 0 : index
    %468 = vector.load %arg13[%c0_192, %c0_193] : memref<32x96xbf16, #tpu.memory_space<vmem>>, vector<32x96xbf16>
    %cst_194 = arith.constant dense<0.000000e+00> : vector<8x96xf32>
    %469 = tpu.matmul %465, %468, %cst_194 {dimension_numbers = #tpu.dot_dimension_numbers<[1], [0], [0], [1], [0, 0, 1, 1], [], []>} : vector<8x32xbf16>, vector<32x96xbf16>, vector<8x96xf32> -> vector<8x96xf32>
    %470 = arith.addf %467, %469 : vector<8x96xf32>
    %471 = arith.addf %470, %9 : vector<8x96xf32>
    %c0_195 = arith.constant 0 : index
    %c0_196 = arith.constant 0 : index
    %472 = vector.load %arg14[%c0_195, %c0_196] : memref<32x96xbf16, #tpu.memory_space<vmem>>, vector<32x96xbf16>
    %cst_197 = arith.constant dense<0.000000e+00> : vector<8x96xf32>
    %473 = tpu.matmul %442, %472, %cst_197 {dimension_numbers = #tpu.dot_dimension_numbers<[1], [0], [0], [1], [0, 0, 1, 1], [], []>} : vector<8x32xbf16>, vector<32x96xbf16>, vector<8x96xf32> -> vector<8x96xf32>
    %474 = arith.addf %473, %12 : vector<8x96xf32>
    %475 = vector.extract_strided_slice %471 {offsets = [0, 0], sizes = [8, 32], strides = [1, 1]} : vector<8x96xf32> to vector<8x32xf32>
    %476 = vector.extract_strided_slice %474 {offsets = [0, 0], sizes = [8, 32], strides = [1, 1]} : vector<8x96xf32> to vector<8x32xf32>
    %477 = arith.addf %475, %476 : vector<8x32xf32>
    %478 = arith.negf %477 : vector<8x32xf32>
    %479 = math.exp %478 : vector<8x32xf32>
    %cst_198 = arith.constant 1.000000e+00 : f32
    %480 = vector.broadcast %cst_198 : f32 to vector<8x32xf32>
    %481 = arith.addf %480, %479 : vector<8x32xf32>
    %482 = arith.divf %480, %481 : vector<8x32xf32>
    %483 = vector.extract_strided_slice %471 {offsets = [0, 32], sizes = [8, 32], strides = [1, 1]} : vector<8x96xf32> to vector<8x32xf32>
    %484 = vector.extract_strided_slice %474 {offsets = [0, 32], sizes = [8, 32], strides = [1, 1]} : vector<8x96xf32> to vector<8x32xf32>
    %485 = arith.addf %483, %484 : vector<8x32xf32>
    %486 = arith.negf %485 : vector<8x32xf32>
    %487 = math.exp %486 : vector<8x32xf32>
    %cst_199 = arith.constant 1.000000e+00 : f32
    %488 = vector.broadcast %cst_199 : f32 to vector<8x32xf32>
    %489 = arith.addf %488, %487 : vector<8x32xf32>
    %490 = arith.divf %488, %489 : vector<8x32xf32>
    %491 = vector.extract_strided_slice %471 {offsets = [0, 64], sizes = [8, 32], strides = [1, 1]} : vector<8x96xf32> to vector<8x32xf32>
    %492 = vector.extract_strided_slice %474 {offsets = [0, 64], sizes = [8, 32], strides = [1, 1]} : vector<8x96xf32> to vector<8x32xf32>
    %493 = arith.mulf %482, %492 : vector<8x32xf32>
    %494 = arith.addf %491, %493 : vector<8x32xf32>
    %495 = math.tanh %494 : vector<8x32xf32>
    %cst_200 = arith.constant 1.000000e+00 : f32
    %496 = vector.broadcast %cst_200 : f32 to vector<8x32xf32>
    %497 = arith.subf %496, %490 : vector<8x32xf32>
    %498 = arith.mulf %497, %495 : vector<8x32xf32>
    %499 = arith.mulf %490, %416 : vector<8x32xf32>
    %500 = arith.addf %498, %499 : vector<8x32xf32>
    %501 = arith.truncf %500 : vector<8x32xf32> to vector<8x32xbf16>
    %c0_201 = arith.constant 0 : index
    %c0_202 = arith.constant 0 : index
    %502 = vector.load %arg19[%c0_201, %c0_202] : memref<32x128xbf16, #tpu.memory_space<vmem>>, vector<32x128xbf16>
    %cst_203 = arith.constant dense<0.000000e+00> : vector<8x128xf32>
    %503 = tpu.matmul %501, %502, %cst_203 {dimension_numbers = #tpu.dot_dimension_numbers<[1], [0], [0], [1], [0, 0, 1, 1], [], []>} : vector<8x32xbf16>, vector<32x128xbf16>, vector<8x128xf32> -> vector<8x128xf32>
    %c0_204 = arith.constant 0 : index
    %c0_205 = arith.constant 0 : index
    %504 = vector.load %arg18[%c0_204, %c0_205] : memref<32x128xbf16, #tpu.memory_space<vmem>>, vector<32x128xbf16>
    %cst_206 = arith.constant dense<0.000000e+00> : vector<8x128xf32>
    %505 = tpu.matmul %465, %504, %cst_206 {dimension_numbers = #tpu.dot_dimension_numbers<[1], [0], [0], [1], [0, 0, 1, 1], [], []>} : vector<8x32xbf16>, vector<32x128xbf16>, vector<8x128xf32> -> vector<8x128xf32>
    %506 = arith.addf %503, %505 : vector<8x128xf32>
    %c0_207 = arith.constant 0 : index
    %c0_208 = arith.constant 0 : index
    %507 = vector.load %arg17[%c0_207, %c0_208] : memref<16x128xbf16, #tpu.memory_space<vmem>>, vector<16x128xbf16>
    %cst_209 = arith.constant dense<0.000000e+00> : vector<8x128xf32>
    %508 = tpu.matmul %441, %507, %cst_209 {dimension_numbers = #tpu.dot_dimension_numbers<[1], [0], [0], [1], [0, 0, 1, 1], [], []>} : vector<8x16xbf16>, vector<16x128xbf16>, vector<8x128xf32> -> vector<8x128xf32>
    %509 = arith.addf %506, %508 : vector<8x128xf32>
    %510 = arith.addf %509, %15 : vector<8x128xf32>
    %511 = arith.index_cast %c3_i32_179 : i32 to index
    %c0_210 = arith.constant 0 : index
    %c0_211 = arith.constant 0 : index
    %512 = vector.load %arg21[%511, %c0_210, %c0_211] : memref<8x8x128xf32, #tpu.memory_space<vmem>>, vector<1x8x128xf32>
    %513 = vector.shape_cast %512 : vector<1x8x128xf32> to vector<8x128xf32>
    %514 = vector.shape_cast %510 : vector<8x128xf32> to vector<1x8x128xf32>
    tpu.vector_store %arg21[%511, %c0_210, %c0_211], %514 {strides = array<i32>} : memref<8x8x128xf32, #tpu.memory_space<vmem>>, vector<1x8x128xf32>,
    %515 = arith.index_cast %c3_i32_179 : i32 to index
    %516 = memref.load %arg1[%515] : memref<8xi32, #tpu.memory_space<smem>>
    %c0_i32_212 = arith.constant 0 : i32
    %517 = arith.cmpi eq, %516, %c0_i32_212 : i32
    %518 = arith.extui %517 : i1 to i32
    %c0_i32_213 = arith.constant 0 : i32
    %519 = arith.cmpi ne, %518, %c0_i32_213 : i32
    scf.if %519 {
      %cst_364 = arith.constant -1.000000e+30 : f32
      %861 = vector.broadcast %cst_364 : f32 to vector<8x128xf32>
      %862 = arith.select %269, %510, %861 : vector<8x128xi1>, vector<8x128xf32>
      %cst_365 = arith.constant dense<0xFF800000> : vector<8xf32>
      %863 = vector.multi_reduction <maximumf>, %862, %cst_365 [1] : vector<8x128xf32> to vector<8xf32>
      %864 = vector.shape_cast %863 : vector<8xf32> to vector<8x1xf32>
      %865 = vector.broadcast %864 : vector<8x1xf32> to vector<8x128xf32>
      %866 = arith.cmpf oge, %862, %865 : vector<8x128xf32>
      %c128_i32 = arith.constant 128 : i32
      %867 = vector.broadcast %c128_i32 : i32 to vector<8x128xi32>
      %868 = arith.select %866, %267, %867 : vector<8x128xi1>, vector<8x128xi32>
      %cst_366 = arith.constant dense<2147483647> : vector<8xi32>
      %869 = vector.multi_reduction <minsi>, %868, %cst_366 [1] : vector<8x128xi32> to vector<8xi32>
      %870 = vector.shape_cast %869 : vector<8xi32> to vector<8x1xi32>
      %871 = vector.broadcast %870 : vector<8x1xi32> to vector<8x128xi32>
      %872 = arith.cmpi eq, %267, %871 : vector<8x128xi32>
      %873 = arith.extui %872 : vector<8x128xi1> to vector<8x128xi32>
      %874 = arith.sitofp %873 : vector<8x128xi32> to vector<8x128xf32>
      %875 = arith.truncf %874 : vector<8x128xf32> to vector<8x128xbf16>
      %c0_367 = arith.constant 0 : index
      %c0_368 = arith.constant 0 : index
      %876 = vector.load %arg4[%c0_367, %c0_368] : memref<128x16xbf16, #tpu.memory_space<vmem>>, vector<128x16xbf16>
      %cst_369 = arith.constant dense<0.000000e+00> : vector<8x16xf32>
      %877 = tpu.matmul %875, %876, %cst_369 {dimension_numbers = #tpu.dot_dimension_numbers<[1], [0], [0], [1], [0, 0, 1, 1], [], []>} : vector<8x128xbf16>, vector<128x16xbf16>, vector<8x16xf32> -> vector<8x16xf32>
      %878 = arith.truncf %877 : vector<8x16xf32> to vector<8x16xbf16>
      %c0_370 = arith.constant 0 : index
      %c0_371 = arith.constant 0 : index
      %879 = vector.load %arg23[%c0_370, %c0_371] : memref<8x16xbf16, #tpu.memory_space<vmem>>, vector<8x16xbf16>
      tpu.vector_store %arg23[%c0_370, %c0_371], %878 {strides = array<i32>} : memref<8x16xbf16, #tpu.memory_space<vmem>>, vector<8x16xbf16>,
    } else {
    }
    %520 = arith.index_cast %c3_i32_179 : i32 to index
    %521 = memref.load %arg1[%520] : memref<8xi32, #tpu.memory_space<smem>>
    %c0_i32_214 = arith.constant 0 : i32
    %522 = arith.cmpi ne, %521, %c0_i32_214 : i32
    %523 = arith.extui %522 : i1 to i32
    %c0_i32_215 = arith.constant 0 : i32
    %524 = arith.cmpi ne, %523, %c0_i32_215 : i32
    scf.if %524 {
      %861 = arith.index_cast %c3_i32_179 : i32 to index
      %c0_364 = arith.constant 0 : index
      %c0_365 = arith.constant 0 : index
      %862 = vector.load %arg3[%861, %c0_364, %c0_365] : memref<8x8x16xbf16, #tpu.memory_space<vmem>>, vector<1x8x16xbf16>
      %863 = vector.shape_cast %862 : vector<1x8x16xbf16> to vector<8x16xbf16>
      %c0_366 = arith.constant 0 : index
      %c0_367 = arith.constant 0 : index
      %864 = vector.load %arg23[%c0_366, %c0_367] : memref<8x16xbf16, #tpu.memory_space<vmem>>, vector<8x16xbf16>
      tpu.vector_store %arg23[%c0_366, %c0_367], %863 {strides = array<i32>} : memref<8x16xbf16, #tpu.memory_space<vmem>>, vector<8x16xbf16>,
    } else {
    }
    %c4_i32_216 = arith.constant 4 : i32
    %c0_217 = arith.constant 0 : index
    %c0_218 = arith.constant 0 : index
    %525 = vector.load %arg23[%c0_217, %c0_218] : memref<8x16xbf16, #tpu.memory_space<vmem>>, vector<8x16xbf16>
    %526 = arith.truncf %500 : vector<8x32xf32> to vector<8x32xbf16>
    %c0_219 = arith.constant 0 : index
    %c0_220 = arith.constant 0 : index
    %527 = vector.load %arg8[%c0_219, %c0_220] : memref<32x32xbf16, #tpu.memory_space<vmem>>, vector<32x32xbf16>
    %cst_221 = arith.constant dense<0.000000e+00> : vector<8x32xf32>
    %528 = tpu.matmul %526, %527, %cst_221 {dimension_numbers = #tpu.dot_dimension_numbers<[1], [0], [0], [1], [0, 0, 1, 1], [], []>} : vector<8x32xbf16>, vector<32x32xbf16>, vector<8x32xf32> -> vector<8x32xf32>
    %529 = vector.shape_cast %528 : vector<8x32xf32> to vector<1x8x32xf32>
    %530 = vector.broadcast %529 : vector<1x8x32xf32> to vector<6x8x32xf32>
    %531 = arith.addf %266, %530 : vector<6x8x32xf32>
    %532 = math.tanh %531 : vector<6x8x32xf32>
    %533 = arith.mulf %532, %19 : vector<6x8x32xf32>
    %cst_222 = arith.constant dense<0.000000e+00> : vector<6x8xf32>
    %534 = vector.multi_reduction <add>, %533, %cst_222 [2] : vector<6x8x32xf32> to vector<6x8xf32>
    %535 = vector.shape_cast %534 : vector<6x8xf32> to vector<6x8x1xf32>
    %cst_223 = arith.constant dense<0xFF800000> : vector<8x1xf32>
    %536 = vector.multi_reduction <maximumf>, %535, %cst_223 [0] : vector<6x8x1xf32> to vector<8x1xf32>
    %537 = vector.shape_cast %536 : vector<8x1xf32> to vector<1x8x1xf32>
    %538 = vector.broadcast %537 : vector<1x8x1xf32> to vector<6x8x1xf32>
    %539 = arith.subf %535, %538 : vector<6x8x1xf32>
    %540 = math.exp %539 : vector<6x8x1xf32>
    %cst_224 = arith.constant dense<0.000000e+00> : vector<8x1xf32>
    %541 = vector.multi_reduction <add>, %540, %cst_224 [0] : vector<6x8x1xf32> to vector<8x1xf32>
    %542 = vector.shape_cast %541 : vector<8x1xf32> to vector<1x8x1xf32>
    %543 = tpu.reciprocal %542 {approx = true} : vector<1x8x1xf32> -> vector<1x8x1xf32>
    %544 = vector.broadcast %543 : vector<1x8x1xf32> to vector<6x8x1xf32>
    %545 = arith.mulf %540, %544 : vector<6x8x1xf32>
    %546 = vector.broadcast %545 : vector<6x8x1xf32> to vector<6x8x32xf32>
    %547 = arith.mulf %546, %256 : vector<6x8x32xf32>
    %cst_225 = arith.constant dense<0.000000e+00> : vector<8x32xf32>
    %548 = vector.multi_reduction <add>, %547, %cst_225 [0] : vector<6x8x32xf32> to vector<8x32xf32>
    %549 = arith.truncf %548 : vector<8x32xf32> to vector<8x32xbf16>
    %c0_226 = arith.constant 0 : index
    %c0_227 = arith.constant 0 : index
    %550 = vector.load %arg12[%c0_226, %c0_227] : memref<16x96xbf16, #tpu.memory_space<vmem>>, vector<16x96xbf16>
    %cst_228 = arith.constant dense<0.000000e+00> : vector<8x96xf32>
    %551 = tpu.matmul %525, %550, %cst_228 {dimension_numbers = #tpu.dot_dimension_numbers<[1], [0], [0], [1], [0, 0, 1, 1], [], []>} : vector<8x16xbf16>, vector<16x96xbf16>, vector<8x96xf32> -> vector<8x96xf32>
    %c0_229 = arith.constant 0 : index
    %c0_230 = arith.constant 0 : index
    %552 = vector.load %arg13[%c0_229, %c0_230] : memref<32x96xbf16, #tpu.memory_space<vmem>>, vector<32x96xbf16>
    %cst_231 = arith.constant dense<0.000000e+00> : vector<8x96xf32>
    %553 = tpu.matmul %549, %552, %cst_231 {dimension_numbers = #tpu.dot_dimension_numbers<[1], [0], [0], [1], [0, 0, 1, 1], [], []>} : vector<8x32xbf16>, vector<32x96xbf16>, vector<8x96xf32> -> vector<8x96xf32>
    %554 = arith.addf %551, %553 : vector<8x96xf32>
    %555 = arith.addf %554, %9 : vector<8x96xf32>
    %c0_232 = arith.constant 0 : index
    %c0_233 = arith.constant 0 : index
    %556 = vector.load %arg14[%c0_232, %c0_233] : memref<32x96xbf16, #tpu.memory_space<vmem>>, vector<32x96xbf16>
    %cst_234 = arith.constant dense<0.000000e+00> : vector<8x96xf32>
    %557 = tpu.matmul %526, %556, %cst_234 {dimension_numbers = #tpu.dot_dimension_numbers<[1], [0], [0], [1], [0, 0, 1, 1], [], []>} : vector<8x32xbf16>, vector<32x96xbf16>, vector<8x96xf32> -> vector<8x96xf32>
    %558 = arith.addf %557, %12 : vector<8x96xf32>
    %559 = vector.extract_strided_slice %555 {offsets = [0, 0], sizes = [8, 32], strides = [1, 1]} : vector<8x96xf32> to vector<8x32xf32>
    %560 = vector.extract_strided_slice %558 {offsets = [0, 0], sizes = [8, 32], strides = [1, 1]} : vector<8x96xf32> to vector<8x32xf32>
    %561 = arith.addf %559, %560 : vector<8x32xf32>
    %562 = arith.negf %561 : vector<8x32xf32>
    %563 = math.exp %562 : vector<8x32xf32>
    %cst_235 = arith.constant 1.000000e+00 : f32
    %564 = vector.broadcast %cst_235 : f32 to vector<8x32xf32>
    %565 = arith.addf %564, %563 : vector<8x32xf32>
    %566 = arith.divf %564, %565 : vector<8x32xf32>
    %567 = vector.extract_strided_slice %555 {offsets = [0, 32], sizes = [8, 32], strides = [1, 1]} : vector<8x96xf32> to vector<8x32xf32>
    %568 = vector.extract_strided_slice %558 {offsets = [0, 32], sizes = [8, 32], strides = [1, 1]} : vector<8x96xf32> to vector<8x32xf32>
    %569 = arith.addf %567, %568 : vector<8x32xf32>
    %570 = arith.negf %569 : vector<8x32xf32>
    %571 = math.exp %570 : vector<8x32xf32>
    %cst_236 = arith.constant 1.000000e+00 : f32
    %572 = vector.broadcast %cst_236 : f32 to vector<8x32xf32>
    %573 = arith.addf %572, %571 : vector<8x32xf32>
    %574 = arith.divf %572, %573 : vector<8x32xf32>
    %575 = vector.extract_strided_slice %555 {offsets = [0, 64], sizes = [8, 32], strides = [1, 1]} : vector<8x96xf32> to vector<8x32xf32>
    %576 = vector.extract_strided_slice %558 {offsets = [0, 64], sizes = [8, 32], strides = [1, 1]} : vector<8x96xf32> to vector<8x32xf32>
    %577 = arith.mulf %566, %576 : vector<8x32xf32>
    %578 = arith.addf %575, %577 : vector<8x32xf32>
    %579 = math.tanh %578 : vector<8x32xf32>
    %cst_237 = arith.constant 1.000000e+00 : f32
    %580 = vector.broadcast %cst_237 : f32 to vector<8x32xf32>
    %581 = arith.subf %580, %574 : vector<8x32xf32>
    %582 = arith.mulf %581, %579 : vector<8x32xf32>
    %583 = arith.mulf %574, %500 : vector<8x32xf32>
    %584 = arith.addf %582, %583 : vector<8x32xf32>
    %585 = arith.truncf %584 : vector<8x32xf32> to vector<8x32xbf16>
    %c0_238 = arith.constant 0 : index
    %c0_239 = arith.constant 0 : index
    %586 = vector.load %arg19[%c0_238, %c0_239] : memref<32x128xbf16, #tpu.memory_space<vmem>>, vector<32x128xbf16>
    %cst_240 = arith.constant dense<0.000000e+00> : vector<8x128xf32>
    %587 = tpu.matmul %585, %586, %cst_240 {dimension_numbers = #tpu.dot_dimension_numbers<[1], [0], [0], [1], [0, 0, 1, 1], [], []>} : vector<8x32xbf16>, vector<32x128xbf16>, vector<8x128xf32> -> vector<8x128xf32>
    %c0_241 = arith.constant 0 : index
    %c0_242 = arith.constant 0 : index
    %588 = vector.load %arg18[%c0_241, %c0_242] : memref<32x128xbf16, #tpu.memory_space<vmem>>, vector<32x128xbf16>
    %cst_243 = arith.constant dense<0.000000e+00> : vector<8x128xf32>
    %589 = tpu.matmul %549, %588, %cst_243 {dimension_numbers = #tpu.dot_dimension_numbers<[1], [0], [0], [1], [0, 0, 1, 1], [], []>} : vector<8x32xbf16>, vector<32x128xbf16>, vector<8x128xf32> -> vector<8x128xf32>
    %590 = arith.addf %587, %589 : vector<8x128xf32>
    %c0_244 = arith.constant 0 : index
    %c0_245 = arith.constant 0 : index
    %591 = vector.load %arg17[%c0_244, %c0_245] : memref<16x128xbf16, #tpu.memory_space<vmem>>, vector<16x128xbf16>
    %cst_246 = arith.constant dense<0.000000e+00> : vector<8x128xf32>
    %592 = tpu.matmul %525, %591, %cst_246 {dimension_numbers = #tpu.dot_dimension_numbers<[1], [0], [0], [1], [0, 0, 1, 1], [], []>} : vector<8x16xbf16>, vector<16x128xbf16>, vector<8x128xf32> -> vector<8x128xf32>
    %593 = arith.addf %590, %592 : vector<8x128xf32>
    %594 = arith.addf %593, %15 : vector<8x128xf32>
    %595 = arith.index_cast %c4_i32_216 : i32 to index
    %c0_247 = arith.constant 0 : index
    %c0_248 = arith.constant 0 : index
    %596 = vector.load %arg21[%595, %c0_247, %c0_248] : memref<8x8x128xf32, #tpu.memory_space<vmem>>, vector<1x8x128xf32>
    %597 = vector.shape_cast %596 : vector<1x8x128xf32> to vector<8x128xf32>
    %598 = vector.shape_cast %594 : vector<8x128xf32> to vector<1x8x128xf32>
    tpu.vector_store %arg21[%595, %c0_247, %c0_248], %598 {strides = array<i32>} : memref<8x8x128xf32, #tpu.memory_space<vmem>>, vector<1x8x128xf32>,
    %599 = arith.index_cast %c4_i32_216 : i32 to index
    %600 = memref.load %arg1[%599] : memref<8xi32, #tpu.memory_space<smem>>
    %c0_i32_249 = arith.constant 0 : i32
    %601 = arith.cmpi eq, %600, %c0_i32_249 : i32
    %602 = arith.extui %601 : i1 to i32
    %c0_i32_250 = arith.constant 0 : i32
    %603 = arith.cmpi ne, %602, %c0_i32_250 : i32
    scf.if %603 {
      %cst_364 = arith.constant -1.000000e+30 : f32
      %861 = vector.broadcast %cst_364 : f32 to vector<8x128xf32>
      %862 = arith.select %269, %594, %861 : vector<8x128xi1>, vector<8x128xf32>
      %cst_365 = arith.constant dense<0xFF800000> : vector<8xf32>
      %863 = vector.multi_reduction <maximumf>, %862, %cst_365 [1] : vector<8x128xf32> to vector<8xf32>
      %864 = vector.shape_cast %863 : vector<8xf32> to vector<8x1xf32>
      %865 = vector.broadcast %864 : vector<8x1xf32> to vector<8x128xf32>
      %866 = arith.cmpf oge, %862, %865 : vector<8x128xf32>
      %c128_i32 = arith.constant 128 : i32
      %867 = vector.broadcast %c128_i32 : i32 to vector<8x128xi32>
      %868 = arith.select %866, %267, %867 : vector<8x128xi1>, vector<8x128xi32>
      %cst_366 = arith.constant dense<2147483647> : vector<8xi32>
      %869 = vector.multi_reduction <minsi>, %868, %cst_366 [1] : vector<8x128xi32> to vector<8xi32>
      %870 = vector.shape_cast %869 : vector<8xi32> to vector<8x1xi32>
      %871 = vector.broadcast %870 : vector<8x1xi32> to vector<8x128xi32>
      %872 = arith.cmpi eq, %267, %871 : vector<8x128xi32>
      %873 = arith.extui %872 : vector<8x128xi1> to vector<8x128xi32>
      %874 = arith.sitofp %873 : vector<8x128xi32> to vector<8x128xf32>
      %875 = arith.truncf %874 : vector<8x128xf32> to vector<8x128xbf16>
      %c0_367 = arith.constant 0 : index
      %c0_368 = arith.constant 0 : index
      %876 = vector.load %arg4[%c0_367, %c0_368] : memref<128x16xbf16, #tpu.memory_space<vmem>>, vector<128x16xbf16>
      %cst_369 = arith.constant dense<0.000000e+00> : vector<8x16xf32>
      %877 = tpu.matmul %875, %876, %cst_369 {dimension_numbers = #tpu.dot_dimension_numbers<[1], [0], [0], [1], [0, 0, 1, 1], [], []>} : vector<8x128xbf16>, vector<128x16xbf16>, vector<8x16xf32> -> vector<8x16xf32>
      %878 = arith.truncf %877 : vector<8x16xf32> to vector<8x16xbf16>
      %c0_370 = arith.constant 0 : index
      %c0_371 = arith.constant 0 : index
      %879 = vector.load %arg23[%c0_370, %c0_371] : memref<8x16xbf16, #tpu.memory_space<vmem>>, vector<8x16xbf16>
      tpu.vector_store %arg23[%c0_370, %c0_371], %878 {strides = array<i32>} : memref<8x16xbf16, #tpu.memory_space<vmem>>, vector<8x16xbf16>,
    } else {
    }
    %604 = arith.index_cast %c4_i32_216 : i32 to index
    %605 = memref.load %arg1[%604] : memref<8xi32, #tpu.memory_space<smem>>
    %c0_i32_251 = arith.constant 0 : i32
    %606 = arith.cmpi ne, %605, %c0_i32_251 : i32
    %607 = arith.extui %606 : i1 to i32
    %c0_i32_252 = arith.constant 0 : i32
    %608 = arith.cmpi ne, %607, %c0_i32_252 : i32
    scf.if %608 {
      %861 = arith.index_cast %c4_i32_216 : i32 to index
      %c0_364 = arith.constant 0 : index
      %c0_365 = arith.constant 0 : index
      %862 = vector.load %arg3[%861, %c0_364, %c0_365] : memref<8x8x16xbf16, #tpu.memory_space<vmem>>, vector<1x8x16xbf16>
      %863 = vector.shape_cast %862 : vector<1x8x16xbf16> to vector<8x16xbf16>
      %c0_366 = arith.constant 0 : index
      %c0_367 = arith.constant 0 : index
      %864 = vector.load %arg23[%c0_366, %c0_367] : memref<8x16xbf16, #tpu.memory_space<vmem>>, vector<8x16xbf16>
      tpu.vector_store %arg23[%c0_366, %c0_367], %863 {strides = array<i32>} : memref<8x16xbf16, #tpu.memory_space<vmem>>, vector<8x16xbf16>,
    } else {
    }
    %c5_i32_253 = arith.constant 5 : i32
    %c0_254 = arith.constant 0 : index
    %c0_255 = arith.constant 0 : index
    %609 = vector.load %arg23[%c0_254, %c0_255] : memref<8x16xbf16, #tpu.memory_space<vmem>>, vector<8x16xbf16>
    %610 = arith.truncf %584 : vector<8x32xf32> to vector<8x32xbf16>
    %c0_256 = arith.constant 0 : index
    %c0_257 = arith.constant 0 : index
    %611 = vector.load %arg8[%c0_256, %c0_257] : memref<32x32xbf16, #tpu.memory_space<vmem>>, vector<32x32xbf16>
    %cst_258 = arith.constant dense<0.000000e+00> : vector<8x32xf32>
    %612 = tpu.matmul %610, %611, %cst_258 {dimension_numbers = #tpu.dot_dimension_numbers<[1], [0], [0], [1], [0, 0, 1, 1], [], []>} : vector<8x32xbf16>, vector<32x32xbf16>, vector<8x32xf32> -> vector<8x32xf32>
    %613 = vector.shape_cast %612 : vector<8x32xf32> to vector<1x8x32xf32>
    %614 = vector.broadcast %613 : vector<1x8x32xf32> to vector<6x8x32xf32>
    %615 = arith.addf %266, %614 : vector<6x8x32xf32>
    %616 = math.tanh %615 : vector<6x8x32xf32>
    %617 = arith.mulf %616, %19 : vector<6x8x32xf32>
    %cst_259 = arith.constant dense<0.000000e+00> : vector<6x8xf32>
    %618 = vector.multi_reduction <add>, %617, %cst_259 [2] : vector<6x8x32xf32> to vector<6x8xf32>
    %619 = vector.shape_cast %618 : vector<6x8xf32> to vector<6x8x1xf32>
    %cst_260 = arith.constant dense<0xFF800000> : vector<8x1xf32>
    %620 = vector.multi_reduction <maximumf>, %619, %cst_260 [0] : vector<6x8x1xf32> to vector<8x1xf32>
    %621 = vector.shape_cast %620 : vector<8x1xf32> to vector<1x8x1xf32>
    %622 = vector.broadcast %621 : vector<1x8x1xf32> to vector<6x8x1xf32>
    %623 = arith.subf %619, %622 : vector<6x8x1xf32>
    %624 = math.exp %623 : vector<6x8x1xf32>
    %cst_261 = arith.constant dense<0.000000e+00> : vector<8x1xf32>
    %625 = vector.multi_reduction <add>, %624, %cst_261 [0] : vector<6x8x1xf32> to vector<8x1xf32>
    %626 = vector.shape_cast %625 : vector<8x1xf32> to vector<1x8x1xf32>
    %627 = tpu.reciprocal %626 {approx = true} : vector<1x8x1xf32> -> vector<1x8x1xf32>
    %628 = vector.broadcast %627 : vector<1x8x1xf32> to vector<6x8x1xf32>
    %629 = arith.mulf %624, %628 : vector<6x8x1xf32>
    %630 = vector.broadcast %629 : vector<6x8x1xf32> to vector<6x8x32xf32>
    %631 = arith.mulf %630, %256 : vector<6x8x32xf32>
    %cst_262 = arith.constant dense<0.000000e+00> : vector<8x32xf32>
    %632 = vector.multi_reduction <add>, %631, %cst_262 [0] : vector<6x8x32xf32> to vector<8x32xf32>
    %633 = arith.truncf %632 : vector<8x32xf32> to vector<8x32xbf16>
    %c0_263 = arith.constant 0 : index
    %c0_264 = arith.constant 0 : index
    %634 = vector.load %arg12[%c0_263, %c0_264] : memref<16x96xbf16, #tpu.memory_space<vmem>>, vector<16x96xbf16>
    %cst_265 = arith.constant dense<0.000000e+00> : vector<8x96xf32>
    %635 = tpu.matmul %609, %634, %cst_265 {dimension_numbers = #tpu.dot_dimension_numbers<[1], [0], [0], [1], [0, 0, 1, 1], [], []>} : vector<8x16xbf16>, vector<16x96xbf16>, vector<8x96xf32> -> vector<8x96xf32>
    %c0_266 = arith.constant 0 : index
    %c0_267 = arith.constant 0 : index
    %636 = vector.load %arg13[%c0_266, %c0_267] : memref<32x96xbf16, #tpu.memory_space<vmem>>, vector<32x96xbf16>
    %cst_268 = arith.constant dense<0.000000e+00> : vector<8x96xf32>
    %637 = tpu.matmul %633, %636, %cst_268 {dimension_numbers = #tpu.dot_dimension_numbers<[1], [0], [0], [1], [0, 0, 1, 1], [], []>} : vector<8x32xbf16>, vector<32x96xbf16>, vector<8x96xf32> -> vector<8x96xf32>
    %638 = arith.addf %635, %637 : vector<8x96xf32>
    %639 = arith.addf %638, %9 : vector<8x96xf32>
    %c0_269 = arith.constant 0 : index
    %c0_270 = arith.constant 0 : index
    %640 = vector.load %arg14[%c0_269, %c0_270] : memref<32x96xbf16, #tpu.memory_space<vmem>>, vector<32x96xbf16>
    %cst_271 = arith.constant dense<0.000000e+00> : vector<8x96xf32>
    %641 = tpu.matmul %610, %640, %cst_271 {dimension_numbers = #tpu.dot_dimension_numbers<[1], [0], [0], [1], [0, 0, 1, 1], [], []>} : vector<8x32xbf16>, vector<32x96xbf16>, vector<8x96xf32> -> vector<8x96xf32>
    %642 = arith.addf %641, %12 : vector<8x96xf32>
    %643 = vector.extract_strided_slice %639 {offsets = [0, 0], sizes = [8, 32], strides = [1, 1]} : vector<8x96xf32> to vector<8x32xf32>
    %644 = vector.extract_strided_slice %642 {offsets = [0, 0], sizes = [8, 32], strides = [1, 1]} : vector<8x96xf32> to vector<8x32xf32>
    %645 = arith.addf %643, %644 : vector<8x32xf32>
    %646 = arith.negf %645 : vector<8x32xf32>
    %647 = math.exp %646 : vector<8x32xf32>
    %cst_272 = arith.constant 1.000000e+00 : f32
    %648 = vector.broadcast %cst_272 : f32 to vector<8x32xf32>
    %649 = arith.addf %648, %647 : vector<8x32xf32>
    %650 = arith.divf %648, %649 : vector<8x32xf32>
    %651 = vector.extract_strided_slice %639 {offsets = [0, 32], sizes = [8, 32], strides = [1, 1]} : vector<8x96xf32> to vector<8x32xf32>
    %652 = vector.extract_strided_slice %642 {offsets = [0, 32], sizes = [8, 32], strides = [1, 1]} : vector<8x96xf32> to vector<8x32xf32>
    %653 = arith.addf %651, %652 : vector<8x32xf32>
    %654 = arith.negf %653 : vector<8x32xf32>
    %655 = math.exp %654 : vector<8x32xf32>
    %cst_273 = arith.constant 1.000000e+00 : f32
    %656 = vector.broadcast %cst_273 : f32 to vector<8x32xf32>
    %657 = arith.addf %656, %655 : vector<8x32xf32>
    %658 = arith.divf %656, %657 : vector<8x32xf32>
    %659 = vector.extract_strided_slice %639 {offsets = [0, 64], sizes = [8, 32], strides = [1, 1]} : vector<8x96xf32> to vector<8x32xf32>
    %660 = vector.extract_strided_slice %642 {offsets = [0, 64], sizes = [8, 32], strides = [1, 1]} : vector<8x96xf32> to vector<8x32xf32>
    %661 = arith.mulf %650, %660 : vector<8x32xf32>
    %662 = arith.addf %659, %661 : vector<8x32xf32>
    %663 = math.tanh %662 : vector<8x32xf32>
    %cst_274 = arith.constant 1.000000e+00 : f32
    %664 = vector.broadcast %cst_274 : f32 to vector<8x32xf32>
    %665 = arith.subf %664, %658 : vector<8x32xf32>
    %666 = arith.mulf %665, %663 : vector<8x32xf32>
    %667 = arith.mulf %658, %584 : vector<8x32xf32>
    %668 = arith.addf %666, %667 : vector<8x32xf32>
    %669 = arith.truncf %668 : vector<8x32xf32> to vector<8x32xbf16>
    %c0_275 = arith.constant 0 : index
    %c0_276 = arith.constant 0 : index
    %670 = vector.load %arg19[%c0_275, %c0_276] : memref<32x128xbf16, #tpu.memory_space<vmem>>, vector<32x128xbf16>
    %cst_277 = arith.constant dense<0.000000e+00> : vector<8x128xf32>
    %671 = tpu.matmul %669, %670, %cst_277 {dimension_numbers = #tpu.dot_dimension_numbers<[1], [0], [0], [1], [0, 0, 1, 1], [], []>} : vector<8x32xbf16>, vector<32x128xbf16>, vector<8x128xf32> -> vector<8x128xf32>
    %c0_278 = arith.constant 0 : index
    %c0_279 = arith.constant 0 : index
    %672 = vector.load %arg18[%c0_278, %c0_279] : memref<32x128xbf16, #tpu.memory_space<vmem>>, vector<32x128xbf16>
    %cst_280 = arith.constant dense<0.000000e+00> : vector<8x128xf32>
    %673 = tpu.matmul %633, %672, %cst_280 {dimension_numbers = #tpu.dot_dimension_numbers<[1], [0], [0], [1], [0, 0, 1, 1], [], []>} : vector<8x32xbf16>, vector<32x128xbf16>, vector<8x128xf32> -> vector<8x128xf32>
    %674 = arith.addf %671, %673 : vector<8x128xf32>
    %c0_281 = arith.constant 0 : index
    %c0_282 = arith.constant 0 : index
    %675 = vector.load %arg17[%c0_281, %c0_282] : memref<16x128xbf16, #tpu.memory_space<vmem>>, vector<16x128xbf16>
    %cst_283 = arith.constant dense<0.000000e+00> : vector<8x128xf32>
    %676 = tpu.matmul %609, %675, %cst_283 {dimension_numbers = #tpu.dot_dimension_numbers<[1], [0], [0], [1], [0, 0, 1, 1], [], []>} : vector<8x16xbf16>, vector<16x128xbf16>, vector<8x128xf32> -> vector<8x128xf32>
    %677 = arith.addf %674, %676 : vector<8x128xf32>
    %678 = arith.addf %677, %15 : vector<8x128xf32>
    %679 = arith.index_cast %c5_i32_253 : i32 to index
    %c0_284 = arith.constant 0 : index
    %c0_285 = arith.constant 0 : index
    %680 = vector.load %arg21[%679, %c0_284, %c0_285] : memref<8x8x128xf32, #tpu.memory_space<vmem>>, vector<1x8x128xf32>
    %681 = vector.shape_cast %680 : vector<1x8x128xf32> to vector<8x128xf32>
    %682 = vector.shape_cast %678 : vector<8x128xf32> to vector<1x8x128xf32>
    tpu.vector_store %arg21[%679, %c0_284, %c0_285], %682 {strides = array<i32>} : memref<8x8x128xf32, #tpu.memory_space<vmem>>, vector<1x8x128xf32>,
    %683 = arith.index_cast %c5_i32_253 : i32 to index
    %684 = memref.load %arg1[%683] : memref<8xi32, #tpu.memory_space<smem>>
    %c0_i32_286 = arith.constant 0 : i32
    %685 = arith.cmpi eq, %684, %c0_i32_286 : i32
    %686 = arith.extui %685 : i1 to i32
    %c0_i32_287 = arith.constant 0 : i32
    %687 = arith.cmpi ne, %686, %c0_i32_287 : i32
    scf.if %687 {
      %cst_364 = arith.constant -1.000000e+30 : f32
      %861 = vector.broadcast %cst_364 : f32 to vector<8x128xf32>
      %862 = arith.select %269, %678, %861 : vector<8x128xi1>, vector<8x128xf32>
      %cst_365 = arith.constant dense<0xFF800000> : vector<8xf32>
      %863 = vector.multi_reduction <maximumf>, %862, %cst_365 [1] : vector<8x128xf32> to vector<8xf32>
      %864 = vector.shape_cast %863 : vector<8xf32> to vector<8x1xf32>
      %865 = vector.broadcast %864 : vector<8x1xf32> to vector<8x128xf32>
      %866 = arith.cmpf oge, %862, %865 : vector<8x128xf32>
      %c128_i32 = arith.constant 128 : i32
      %867 = vector.broadcast %c128_i32 : i32 to vector<8x128xi32>
      %868 = arith.select %866, %267, %867 : vector<8x128xi1>, vector<8x128xi32>
      %cst_366 = arith.constant dense<2147483647> : vector<8xi32>
      %869 = vector.multi_reduction <minsi>, %868, %cst_366 [1] : vector<8x128xi32> to vector<8xi32>
      %870 = vector.shape_cast %869 : vector<8xi32> to vector<8x1xi32>
      %871 = vector.broadcast %870 : vector<8x1xi32> to vector<8x128xi32>
      %872 = arith.cmpi eq, %267, %871 : vector<8x128xi32>
      %873 = arith.extui %872 : vector<8x128xi1> to vector<8x128xi32>
      %874 = arith.sitofp %873 : vector<8x128xi32> to vector<8x128xf32>
      %875 = arith.truncf %874 : vector<8x128xf32> to vector<8x128xbf16>
      %c0_367 = arith.constant 0 : index
      %c0_368 = arith.constant 0 : index
      %876 = vector.load %arg4[%c0_367, %c0_368] : memref<128x16xbf16, #tpu.memory_space<vmem>>, vector<128x16xbf16>
      %cst_369 = arith.constant dense<0.000000e+00> : vector<8x16xf32>
      %877 = tpu.matmul %875, %876, %cst_369 {dimension_numbers = #tpu.dot_dimension_numbers<[1], [0], [0], [1], [0, 0, 1, 1], [], []>} : vector<8x128xbf16>, vector<128x16xbf16>, vector<8x16xf32> -> vector<8x16xf32>
      %878 = arith.truncf %877 : vector<8x16xf32> to vector<8x16xbf16>
      %c0_370 = arith.constant 0 : index
      %c0_371 = arith.constant 0 : index
      %879 = vector.load %arg23[%c0_370, %c0_371] : memref<8x16xbf16, #tpu.memory_space<vmem>>, vector<8x16xbf16>
      tpu.vector_store %arg23[%c0_370, %c0_371], %878 {strides = array<i32>} : memref<8x16xbf16, #tpu.memory_space<vmem>>, vector<8x16xbf16>,
    } else {
    }
    %688 = arith.index_cast %c5_i32_253 : i32 to index
    %689 = memref.load %arg1[%688] : memref<8xi32, #tpu.memory_space<smem>>
    %c0_i32_288 = arith.constant 0 : i32
    %690 = arith.cmpi ne, %689, %c0_i32_288 : i32
    %691 = arith.extui %690 : i1 to i32
    %c0_i32_289 = arith.constant 0 : i32
    %692 = arith.cmpi ne, %691, %c0_i32_289 : i32
    scf.if %692 {
      %861 = arith.index_cast %c5_i32_253 : i32 to index
      %c0_364 = arith.constant 0 : index
      %c0_365 = arith.constant 0 : index
      %862 = vector.load %arg3[%861, %c0_364, %c0_365] : memref<8x8x16xbf16, #tpu.memory_space<vmem>>, vector<1x8x16xbf16>
      %863 = vector.shape_cast %862 : vector<1x8x16xbf16> to vector<8x16xbf16>
      %c0_366 = arith.constant 0 : index
      %c0_367 = arith.constant 0 : index
      %864 = vector.load %arg23[%c0_366, %c0_367] : memref<8x16xbf16, #tpu.memory_space<vmem>>, vector<8x16xbf16>
      tpu.vector_store %arg23[%c0_366, %c0_367], %863 {strides = array<i32>} : memref<8x16xbf16, #tpu.memory_space<vmem>>, vector<8x16xbf16>,
    } else {
    }
    %c6_i32_290 = arith.constant 6 : i32
    %c0_291 = arith.constant 0 : index
    %c0_292 = arith.constant 0 : index
    %693 = vector.load %arg23[%c0_291, %c0_292] : memref<8x16xbf16, #tpu.memory_space<vmem>>, vector<8x16xbf16>
    %694 = arith.truncf %668 : vector<8x32xf32> to vector<8x32xbf16>
    %c0_293 = arith.constant 0 : index
    %c0_294 = arith.constant 0 : index
    %695 = vector.load %arg8[%c0_293, %c0_294] : memref<32x32xbf16, #tpu.memory_space<vmem>>, vector<32x32xbf16>
    %cst_295 = arith.constant dense<0.000000e+00> : vector<8x32xf32>
    %696 = tpu.matmul %694, %695, %cst_295 {dimension_numbers = #tpu.dot_dimension_numbers<[1], [0], [0], [1], [0, 0, 1, 1], [], []>} : vector<8x32xbf16>, vector<32x32xbf16>, vector<8x32xf32> -> vector<8x32xf32>
    %697 = vector.shape_cast %696 : vector<8x32xf32> to vector<1x8x32xf32>
    %698 = vector.broadcast %697 : vector<1x8x32xf32> to vector<6x8x32xf32>
    %699 = arith.addf %266, %698 : vector<6x8x32xf32>
    %700 = math.tanh %699 : vector<6x8x32xf32>
    %701 = arith.mulf %700, %19 : vector<6x8x32xf32>
    %cst_296 = arith.constant dense<0.000000e+00> : vector<6x8xf32>
    %702 = vector.multi_reduction <add>, %701, %cst_296 [2] : vector<6x8x32xf32> to vector<6x8xf32>
    %703 = vector.shape_cast %702 : vector<6x8xf32> to vector<6x8x1xf32>
    %cst_297 = arith.constant dense<0xFF800000> : vector<8x1xf32>
    %704 = vector.multi_reduction <maximumf>, %703, %cst_297 [0] : vector<6x8x1xf32> to vector<8x1xf32>
    %705 = vector.shape_cast %704 : vector<8x1xf32> to vector<1x8x1xf32>
    %706 = vector.broadcast %705 : vector<1x8x1xf32> to vector<6x8x1xf32>
    %707 = arith.subf %703, %706 : vector<6x8x1xf32>
    %708 = math.exp %707 : vector<6x8x1xf32>
    %cst_298 = arith.constant dense<0.000000e+00> : vector<8x1xf32>
    %709 = vector.multi_reduction <add>, %708, %cst_298 [0] : vector<6x8x1xf32> to vector<8x1xf32>
    %710 = vector.shape_cast %709 : vector<8x1xf32> to vector<1x8x1xf32>
    %711 = tpu.reciprocal %710 {approx = true} : vector<1x8x1xf32> -> vector<1x8x1xf32>
    %712 = vector.broadcast %711 : vector<1x8x1xf32> to vector<6x8x1xf32>
    %713 = arith.mulf %708, %712 : vector<6x8x1xf32>
    %714 = vector.broadcast %713 : vector<6x8x1xf32> to vector<6x8x32xf32>
    %715 = arith.mulf %714, %256 : vector<6x8x32xf32>
    %cst_299 = arith.constant dense<0.000000e+00> : vector<8x32xf32>
    %716 = vector.multi_reduction <add>, %715, %cst_299 [0] : vector<6x8x32xf32> to vector<8x32xf32>
    %717 = arith.truncf %716 : vector<8x32xf32> to vector<8x32xbf16>
    %c0_300 = arith.constant 0 : index
    %c0_301 = arith.constant 0 : index
    %718 = vector.load %arg12[%c0_300, %c0_301] : memref<16x96xbf16, #tpu.memory_space<vmem>>, vector<16x96xbf16>
    %cst_302 = arith.constant dense<0.000000e+00> : vector<8x96xf32>
    %719 = tpu.matmul %693, %718, %cst_302 {dimension_numbers = #tpu.dot_dimension_numbers<[1], [0], [0], [1], [0, 0, 1, 1], [], []>} : vector<8x16xbf16>, vector<16x96xbf16>, vector<8x96xf32> -> vector<8x96xf32>
    %c0_303 = arith.constant 0 : index
    %c0_304 = arith.constant 0 : index
    %720 = vector.load %arg13[%c0_303, %c0_304] : memref<32x96xbf16, #tpu.memory_space<vmem>>, vector<32x96xbf16>
    %cst_305 = arith.constant dense<0.000000e+00> : vector<8x96xf32>
    %721 = tpu.matmul %717, %720, %cst_305 {dimension_numbers = #tpu.dot_dimension_numbers<[1], [0], [0], [1], [0, 0, 1, 1], [], []>} : vector<8x32xbf16>, vector<32x96xbf16>, vector<8x96xf32> -> vector<8x96xf32>
    %722 = arith.addf %719, %721 : vector<8x96xf32>
    %723 = arith.addf %722, %9 : vector<8x96xf32>
    %c0_306 = arith.constant 0 : index
    %c0_307 = arith.constant 0 : index
    %724 = vector.load %arg14[%c0_306, %c0_307] : memref<32x96xbf16, #tpu.memory_space<vmem>>, vector<32x96xbf16>
    %cst_308 = arith.constant dense<0.000000e+00> : vector<8x96xf32>
    %725 = tpu.matmul %694, %724, %cst_308 {dimension_numbers = #tpu.dot_dimension_numbers<[1], [0], [0], [1], [0, 0, 1, 1], [], []>} : vector<8x32xbf16>, vector<32x96xbf16>, vector<8x96xf32> -> vector<8x96xf32>
    %726 = arith.addf %725, %12 : vector<8x96xf32>
    %727 = vector.extract_strided_slice %723 {offsets = [0, 0], sizes = [8, 32], strides = [1, 1]} : vector<8x96xf32> to vector<8x32xf32>
    %728 = vector.extract_strided_slice %726 {offsets = [0, 0], sizes = [8, 32], strides = [1, 1]} : vector<8x96xf32> to vector<8x32xf32>
    %729 = arith.addf %727, %728 : vector<8x32xf32>
    %730 = arith.negf %729 : vector<8x32xf32>
    %731 = math.exp %730 : vector<8x32xf32>
    %cst_309 = arith.constant 1.000000e+00 : f32
    %732 = vector.broadcast %cst_309 : f32 to vector<8x32xf32>
    %733 = arith.addf %732, %731 : vector<8x32xf32>
    %734 = arith.divf %732, %733 : vector<8x32xf32>
    %735 = vector.extract_strided_slice %723 {offsets = [0, 32], sizes = [8, 32], strides = [1, 1]} : vector<8x96xf32> to vector<8x32xf32>
    %736 = vector.extract_strided_slice %726 {offsets = [0, 32], sizes = [8, 32], strides = [1, 1]} : vector<8x96xf32> to vector<8x32xf32>
    %737 = arith.addf %735, %736 : vector<8x32xf32>
    %738 = arith.negf %737 : vector<8x32xf32>
    %739 = math.exp %738 : vector<8x32xf32>
    %cst_310 = arith.constant 1.000000e+00 : f32
    %740 = vector.broadcast %cst_310 : f32 to vector<8x32xf32>
    %741 = arith.addf %740, %739 : vector<8x32xf32>
    %742 = arith.divf %740, %741 : vector<8x32xf32>
    %743 = vector.extract_strided_slice %723 {offsets = [0, 64], sizes = [8, 32], strides = [1, 1]} : vector<8x96xf32> to vector<8x32xf32>
    %744 = vector.extract_strided_slice %726 {offsets = [0, 64], sizes = [8, 32], strides = [1, 1]} : vector<8x96xf32> to vector<8x32xf32>
    %745 = arith.mulf %734, %744 : vector<8x32xf32>
    %746 = arith.addf %743, %745 : vector<8x32xf32>
    %747 = math.tanh %746 : vector<8x32xf32>
    %cst_311 = arith.constant 1.000000e+00 : f32
    %748 = vector.broadcast %cst_311 : f32 to vector<8x32xf32>
    %749 = arith.subf %748, %742 : vector<8x32xf32>
    %750 = arith.mulf %749, %747 : vector<8x32xf32>
    %751 = arith.mulf %742, %668 : vector<8x32xf32>
    %752 = arith.addf %750, %751 : vector<8x32xf32>
    %753 = arith.truncf %752 : vector<8x32xf32> to vector<8x32xbf16>
    %c0_312 = arith.constant 0 : index
    %c0_313 = arith.constant 0 : index
    %754 = vector.load %arg19[%c0_312, %c0_313] : memref<32x128xbf16, #tpu.memory_space<vmem>>, vector<32x128xbf16>
    %cst_314 = arith.constant dense<0.000000e+00> : vector<8x128xf32>
    %755 = tpu.matmul %753, %754, %cst_314 {dimension_numbers = #tpu.dot_dimension_numbers<[1], [0], [0], [1], [0, 0, 1, 1], [], []>} : vector<8x32xbf16>, vector<32x128xbf16>, vector<8x128xf32> -> vector<8x128xf32>
    %c0_315 = arith.constant 0 : index
    %c0_316 = arith.constant 0 : index
    %756 = vector.load %arg18[%c0_315, %c0_316] : memref<32x128xbf16, #tpu.memory_space<vmem>>, vector<32x128xbf16>
    %cst_317 = arith.constant dense<0.000000e+00> : vector<8x128xf32>
    %757 = tpu.matmul %717, %756, %cst_317 {dimension_numbers = #tpu.dot_dimension_numbers<[1], [0], [0], [1], [0, 0, 1, 1], [], []>} : vector<8x32xbf16>, vector<32x128xbf16>, vector<8x128xf32> -> vector<8x128xf32>
    %758 = arith.addf %755, %757 : vector<8x128xf32>
    %c0_318 = arith.constant 0 : index
    %c0_319 = arith.constant 0 : index
    %759 = vector.load %arg17[%c0_318, %c0_319] : memref<16x128xbf16, #tpu.memory_space<vmem>>, vector<16x128xbf16>
    %cst_320 = arith.constant dense<0.000000e+00> : vector<8x128xf32>
    %760 = tpu.matmul %693, %759, %cst_320 {dimension_numbers = #tpu.dot_dimension_numbers<[1], [0], [0], [1], [0, 0, 1, 1], [], []>} : vector<8x16xbf16>, vector<16x128xbf16>, vector<8x128xf32> -> vector<8x128xf32>
    %761 = arith.addf %758, %760 : vector<8x128xf32>
    %762 = arith.addf %761, %15 : vector<8x128xf32>
    %763 = arith.index_cast %c6_i32_290 : i32 to index
    %c0_321 = arith.constant 0 : index
    %c0_322 = arith.constant 0 : index
    %764 = vector.load %arg21[%763, %c0_321, %c0_322] : memref<8x8x128xf32, #tpu.memory_space<vmem>>, vector<1x8x128xf32>
    %765 = vector.shape_cast %764 : vector<1x8x128xf32> to vector<8x128xf32>
    %766 = vector.shape_cast %762 : vector<8x128xf32> to vector<1x8x128xf32>
    tpu.vector_store %arg21[%763, %c0_321, %c0_322], %766 {strides = array<i32>} : memref<8x8x128xf32, #tpu.memory_space<vmem>>, vector<1x8x128xf32>,
    %767 = arith.index_cast %c6_i32_290 : i32 to index
    %768 = memref.load %arg1[%767] : memref<8xi32, #tpu.memory_space<smem>>
    %c0_i32_323 = arith.constant 0 : i32
    %769 = arith.cmpi eq, %768, %c0_i32_323 : i32
    %770 = arith.extui %769 : i1 to i32
    %c0_i32_324 = arith.constant 0 : i32
    %771 = arith.cmpi ne, %770, %c0_i32_324 : i32
    scf.if %771 {
      %cst_364 = arith.constant -1.000000e+30 : f32
      %861 = vector.broadcast %cst_364 : f32 to vector<8x128xf32>
      %862 = arith.select %269, %762, %861 : vector<8x128xi1>, vector<8x128xf32>
      %cst_365 = arith.constant dense<0xFF800000> : vector<8xf32>
      %863 = vector.multi_reduction <maximumf>, %862, %cst_365 [1] : vector<8x128xf32> to vector<8xf32>
      %864 = vector.shape_cast %863 : vector<8xf32> to vector<8x1xf32>
      %865 = vector.broadcast %864 : vector<8x1xf32> to vector<8x128xf32>
      %866 = arith.cmpf oge, %862, %865 : vector<8x128xf32>
      %c128_i32 = arith.constant 128 : i32
      %867 = vector.broadcast %c128_i32 : i32 to vector<8x128xi32>
      %868 = arith.select %866, %267, %867 : vector<8x128xi1>, vector<8x128xi32>
      %cst_366 = arith.constant dense<2147483647> : vector<8xi32>
      %869 = vector.multi_reduction <minsi>, %868, %cst_366 [1] : vector<8x128xi32> to vector<8xi32>
      %870 = vector.shape_cast %869 : vector<8xi32> to vector<8x1xi32>
      %871 = vector.broadcast %870 : vector<8x1xi32> to vector<8x128xi32>
      %872 = arith.cmpi eq, %267, %871 : vector<8x128xi32>
      %873 = arith.extui %872 : vector<8x128xi1> to vector<8x128xi32>
      %874 = arith.sitofp %873 : vector<8x128xi32> to vector<8x128xf32>
      %875 = arith.truncf %874 : vector<8x128xf32> to vector<8x128xbf16>
      %c0_367 = arith.constant 0 : index
      %c0_368 = arith.constant 0 : index
      %876 = vector.load %arg4[%c0_367, %c0_368] : memref<128x16xbf16, #tpu.memory_space<vmem>>, vector<128x16xbf16>
      %cst_369 = arith.constant dense<0.000000e+00> : vector<8x16xf32>
      %877 = tpu.matmul %875, %876, %cst_369 {dimension_numbers = #tpu.dot_dimension_numbers<[1], [0], [0], [1], [0, 0, 1, 1], [], []>} : vector<8x128xbf16>, vector<128x16xbf16>, vector<8x16xf32> -> vector<8x16xf32>
      %878 = arith.truncf %877 : vector<8x16xf32> to vector<8x16xbf16>
      %c0_370 = arith.constant 0 : index
      %c0_371 = arith.constant 0 : index
      %879 = vector.load %arg23[%c0_370, %c0_371] : memref<8x16xbf16, #tpu.memory_space<vmem>>, vector<8x16xbf16>
      tpu.vector_store %arg23[%c0_370, %c0_371], %878 {strides = array<i32>} : memref<8x16xbf16, #tpu.memory_space<vmem>>, vector<8x16xbf16>,
    } else {
    }
    %772 = arith.index_cast %c6_i32_290 : i32 to index
    %773 = memref.load %arg1[%772] : memref<8xi32, #tpu.memory_space<smem>>
    %c0_i32_325 = arith.constant 0 : i32
    %774 = arith.cmpi ne, %773, %c0_i32_325 : i32
    %775 = arith.extui %774 : i1 to i32
    %c0_i32_326 = arith.constant 0 : i32
    %776 = arith.cmpi ne, %775, %c0_i32_326 : i32
    scf.if %776 {
      %861 = arith.index_cast %c6_i32_290 : i32 to index
      %c0_364 = arith.constant 0 : index
      %c0_365 = arith.constant 0 : index
      %862 = vector.load %arg3[%861, %c0_364, %c0_365] : memref<8x8x16xbf16, #tpu.memory_space<vmem>>, vector<1x8x16xbf16>
      %863 = vector.shape_cast %862 : vector<1x8x16xbf16> to vector<8x16xbf16>
      %c0_366 = arith.constant 0 : index
      %c0_367 = arith.constant 0 : index
      %864 = vector.load %arg23[%c0_366, %c0_367] : memref<8x16xbf16, #tpu.memory_space<vmem>>, vector<8x16xbf16>
      tpu.vector_store %arg23[%c0_366, %c0_367], %863 {strides = array<i32>} : memref<8x16xbf16, #tpu.memory_space<vmem>>, vector<8x16xbf16>,
    } else {
    }
    %c7_i32 = arith.constant 7 : i32
    %c0_327 = arith.constant 0 : index
    %c0_328 = arith.constant 0 : index
    %777 = vector.load %arg23[%c0_327, %c0_328] : memref<8x16xbf16, #tpu.memory_space<vmem>>, vector<8x16xbf16>
    %778 = arith.truncf %752 : vector<8x32xf32> to vector<8x32xbf16>
    %c0_329 = arith.constant 0 : index
    %c0_330 = arith.constant 0 : index
    %779 = vector.load %arg8[%c0_329, %c0_330] : memref<32x32xbf16, #tpu.memory_space<vmem>>, vector<32x32xbf16>
    %cst_331 = arith.constant dense<0.000000e+00> : vector<8x32xf32>
    %780 = tpu.matmul %778, %779, %cst_331 {dimension_numbers = #tpu.dot_dimension_numbers<[1], [0], [0], [1], [0, 0, 1, 1], [], []>} : vector<8x32xbf16>, vector<32x32xbf16>, vector<8x32xf32> -> vector<8x32xf32>
    %781 = vector.shape_cast %780 : vector<8x32xf32> to vector<1x8x32xf32>
    %782 = vector.broadcast %781 : vector<1x8x32xf32> to vector<6x8x32xf32>
    %783 = arith.addf %266, %782 : vector<6x8x32xf32>
    %784 = math.tanh %783 : vector<6x8x32xf32>
    %785 = arith.mulf %784, %19 : vector<6x8x32xf32>
    %cst_332 = arith.constant dense<0.000000e+00> : vector<6x8xf32>
    %786 = vector.multi_reduction <add>, %785, %cst_332 [2] : vector<6x8x32xf32> to vector<6x8xf32>
    %787 = vector.shape_cast %786 : vector<6x8xf32> to vector<6x8x1xf32>
    %cst_333 = arith.constant dense<0xFF800000> : vector<8x1xf32>
    %788 = vector.multi_reduction <maximumf>, %787, %cst_333 [0] : vector<6x8x1xf32> to vector<8x1xf32>
    %789 = vector.shape_cast %788 : vector<8x1xf32> to vector<1x8x1xf32>
    %790 = vector.broadcast %789 : vector<1x8x1xf32> to vector<6x8x1xf32>
    %791 = arith.subf %787, %790 : vector<6x8x1xf32>
    %792 = math.exp %791 : vector<6x8x1xf32>
    %cst_334 = arith.constant dense<0.000000e+00> : vector<8x1xf32>
    %793 = vector.multi_reduction <add>, %792, %cst_334 [0] : vector<6x8x1xf32> to vector<8x1xf32>
    %794 = vector.shape_cast %793 : vector<8x1xf32> to vector<1x8x1xf32>
    %795 = tpu.reciprocal %794 {approx = true} : vector<1x8x1xf32> -> vector<1x8x1xf32>
    %796 = vector.broadcast %795 : vector<1x8x1xf32> to vector<6x8x1xf32>
    %797 = arith.mulf %792, %796 : vector<6x8x1xf32>
    %798 = vector.broadcast %797 : vector<6x8x1xf32> to vector<6x8x32xf32>
    %799 = arith.mulf %798, %256 : vector<6x8x32xf32>
    %cst_335 = arith.constant dense<0.000000e+00> : vector<8x32xf32>
    %800 = vector.multi_reduction <add>, %799, %cst_335 [0] : vector<6x8x32xf32> to vector<8x32xf32>
    %801 = arith.truncf %800 : vector<8x32xf32> to vector<8x32xbf16>
    %c0_336 = arith.constant 0 : index
    %c0_337 = arith.constant 0 : index
    %802 = vector.load %arg12[%c0_336, %c0_337] : memref<16x96xbf16, #tpu.memory_space<vmem>>, vector<16x96xbf16>
    %cst_338 = arith.constant dense<0.000000e+00> : vector<8x96xf32>
    %803 = tpu.matmul %777, %802, %cst_338 {dimension_numbers = #tpu.dot_dimension_numbers<[1], [0], [0], [1], [0, 0, 1, 1], [], []>} : vector<8x16xbf16>, vector<16x96xbf16>, vector<8x96xf32> -> vector<8x96xf32>
    %c0_339 = arith.constant 0 : index
    %c0_340 = arith.constant 0 : index
    %804 = vector.load %arg13[%c0_339, %c0_340] : memref<32x96xbf16, #tpu.memory_space<vmem>>, vector<32x96xbf16>
    %cst_341 = arith.constant dense<0.000000e+00> : vector<8x96xf32>
    %805 = tpu.matmul %801, %804, %cst_341 {dimension_numbers = #tpu.dot_dimension_numbers<[1], [0], [0], [1], [0, 0, 1, 1], [], []>} : vector<8x32xbf16>, vector<32x96xbf16>, vector<8x96xf32> -> vector<8x96xf32>
    %806 = arith.addf %803, %805 : vector<8x96xf32>
    %807 = arith.addf %806, %9 : vector<8x96xf32>
    %c0_342 = arith.constant 0 : index
    %c0_343 = arith.constant 0 : index
    %808 = vector.load %arg14[%c0_342, %c0_343] : memref<32x96xbf16, #tpu.memory_space<vmem>>, vector<32x96xbf16>
    %cst_344 = arith.constant dense<0.000000e+00> : vector<8x96xf32>
    %809 = tpu.matmul %778, %808, %cst_344 {dimension_numbers = #tpu.dot_dimension_numbers<[1], [0], [0], [1], [0, 0, 1, 1], [], []>} : vector<8x32xbf16>, vector<32x96xbf16>, vector<8x96xf32> -> vector<8x96xf32>
    %810 = arith.addf %809, %12 : vector<8x96xf32>
    %811 = vector.extract_strided_slice %807 {offsets = [0, 0], sizes = [8, 32], strides = [1, 1]} : vector<8x96xf32> to vector<8x32xf32>
    %812 = vector.extract_strided_slice %810 {offsets = [0, 0], sizes = [8, 32], strides = [1, 1]} : vector<8x96xf32> to vector<8x32xf32>
    %813 = arith.addf %811, %812 : vector<8x32xf32>
    %814 = arith.negf %813 : vector<8x32xf32>
    %815 = math.exp %814 : vector<8x32xf32>
    %cst_345 = arith.constant 1.000000e+00 : f32
    %816 = vector.broadcast %cst_345 : f32 to vector<8x32xf32>
    %817 = arith.addf %816, %815 : vector<8x32xf32>
    %818 = arith.divf %816, %817 : vector<8x32xf32>
    %819 = vector.extract_strided_slice %807 {offsets = [0, 32], sizes = [8, 32], strides = [1, 1]} : vector<8x96xf32> to vector<8x32xf32>
    %820 = vector.extract_strided_slice %810 {offsets = [0, 32], sizes = [8, 32], strides = [1, 1]} : vector<8x96xf32> to vector<8x32xf32>
    %821 = arith.addf %819, %820 : vector<8x32xf32>
    %822 = arith.negf %821 : vector<8x32xf32>
    %823 = math.exp %822 : vector<8x32xf32>
    %cst_346 = arith.constant 1.000000e+00 : f32
    %824 = vector.broadcast %cst_346 : f32 to vector<8x32xf32>
    %825 = arith.addf %824, %823 : vector<8x32xf32>
    %826 = arith.divf %824, %825 : vector<8x32xf32>
    %827 = vector.extract_strided_slice %807 {offsets = [0, 64], sizes = [8, 32], strides = [1, 1]} : vector<8x96xf32> to vector<8x32xf32>
    %828 = vector.extract_strided_slice %810 {offsets = [0, 64], sizes = [8, 32], strides = [1, 1]} : vector<8x96xf32> to vector<8x32xf32>
    %829 = arith.mulf %818, %828 : vector<8x32xf32>
    %830 = arith.addf %827, %829 : vector<8x32xf32>
    %831 = math.tanh %830 : vector<8x32xf32>
    %cst_347 = arith.constant 1.000000e+00 : f32
    %832 = vector.broadcast %cst_347 : f32 to vector<8x32xf32>
    %833 = arith.subf %832, %826 : vector<8x32xf32>
    %834 = arith.mulf %833, %831 : vector<8x32xf32>
    %835 = arith.mulf %826, %752 : vector<8x32xf32>
    %836 = arith.addf %834, %835 : vector<8x32xf32>
    %837 = arith.truncf %836 : vector<8x32xf32> to vector<8x32xbf16>
    %c0_348 = arith.constant 0 : index
    %c0_349 = arith.constant 0 : index
    %838 = vector.load %arg19[%c0_348, %c0_349] : memref<32x128xbf16, #tpu.memory_space<vmem>>, vector<32x128xbf16>
    %cst_350 = arith.constant dense<0.000000e+00> : vector<8x128xf32>
    %839 = tpu.matmul %837, %838, %cst_350 {dimension_numbers = #tpu.dot_dimension_numbers<[1], [0], [0], [1], [0, 0, 1, 1], [], []>} : vector<8x32xbf16>, vector<32x128xbf16>, vector<8x128xf32> -> vector<8x128xf32>
    %c0_351 = arith.constant 0 : index
    %c0_352 = arith.constant 0 : index
    %840 = vector.load %arg18[%c0_351, %c0_352] : memref<32x128xbf16, #tpu.memory_space<vmem>>, vector<32x128xbf16>
    %cst_353 = arith.constant dense<0.000000e+00> : vector<8x128xf32>
    %841 = tpu.matmul %801, %840, %cst_353 {dimension_numbers = #tpu.dot_dimension_numbers<[1], [0], [0], [1], [0, 0, 1, 1], [], []>} : vector<8x32xbf16>, vector<32x128xbf16>, vector<8x128xf32> -> vector<8x128xf32>
    %842 = arith.addf %839, %841 : vector<8x128xf32>
    %c0_354 = arith.constant 0 : index
    %c0_355 = arith.constant 0 : index
    %843 = vector.load %arg17[%c0_354, %c0_355] : memref<16x128xbf16, #tpu.memory_space<vmem>>, vector<16x128xbf16>
    %cst_356 = arith.constant dense<0.000000e+00> : vector<8x128xf32>
    %844 = tpu.matmul %777, %843, %cst_356 {dimension_numbers = #tpu.dot_dimension_numbers<[1], [0], [0], [1], [0, 0, 1, 1], [], []>} : vector<8x16xbf16>, vector<16x128xbf16>, vector<8x128xf32> -> vector<8x128xf32>
    %845 = arith.addf %842, %844 : vector<8x128xf32>
    %846 = arith.addf %845, %15 : vector<8x128xf32>
    %847 = arith.index_cast %c7_i32 : i32 to index
    %c0_357 = arith.constant 0 : index
    %c0_358 = arith.constant 0 : index
    %848 = vector.load %arg21[%847, %c0_357, %c0_358] : memref<8x8x128xf32, #tpu.memory_space<vmem>>, vector<1x8x128xf32>
    %849 = vector.shape_cast %848 : vector<1x8x128xf32> to vector<8x128xf32>
    %850 = vector.shape_cast %846 : vector<8x128xf32> to vector<1x8x128xf32>
    tpu.vector_store %arg21[%847, %c0_357, %c0_358], %850 {strides = array<i32>} : memref<8x8x128xf32, #tpu.memory_space<vmem>>, vector<1x8x128xf32>,
    %851 = arith.index_cast %c7_i32 : i32 to index
    %852 = memref.load %arg1[%851] : memref<8xi32, #tpu.memory_space<smem>>
    %c0_i32_359 = arith.constant 0 : i32
    %853 = arith.cmpi eq, %852, %c0_i32_359 : i32
    %854 = arith.extui %853 : i1 to i32
    %c0_i32_360 = arith.constant 0 : i32
    %855 = arith.cmpi ne, %854, %c0_i32_360 : i32
    scf.if %855 {
      %cst_364 = arith.constant -1.000000e+30 : f32
      %861 = vector.broadcast %cst_364 : f32 to vector<8x128xf32>
      %862 = arith.select %269, %846, %861 : vector<8x128xi1>, vector<8x128xf32>
      %cst_365 = arith.constant dense<0xFF800000> : vector<8xf32>
      %863 = vector.multi_reduction <maximumf>, %862, %cst_365 [1] : vector<8x128xf32> to vector<8xf32>
      %864 = vector.shape_cast %863 : vector<8xf32> to vector<8x1xf32>
      %865 = vector.broadcast %864 : vector<8x1xf32> to vector<8x128xf32>
      %866 = arith.cmpf oge, %862, %865 : vector<8x128xf32>
      %c128_i32 = arith.constant 128 : i32
      %867 = vector.broadcast %c128_i32 : i32 to vector<8x128xi32>
      %868 = arith.select %866, %267, %867 : vector<8x128xi1>, vector<8x128xi32>
      %cst_366 = arith.constant dense<2147483647> : vector<8xi32>
      %869 = vector.multi_reduction <minsi>, %868, %cst_366 [1] : vector<8x128xi32> to vector<8xi32>
      %870 = vector.shape_cast %869 : vector<8xi32> to vector<8x1xi32>
      %871 = vector.broadcast %870 : vector<8x1xi32> to vector<8x128xi32>
      %872 = arith.cmpi eq, %267, %871 : vector<8x128xi32>
      %873 = arith.extui %872 : vector<8x128xi1> to vector<8x128xi32>
      %874 = arith.sitofp %873 : vector<8x128xi32> to vector<8x128xf32>
      %875 = arith.truncf %874 : vector<8x128xf32> to vector<8x128xbf16>
      %c0_367 = arith.constant 0 : index
      %c0_368 = arith.constant 0 : index
      %876 = vector.load %arg4[%c0_367, %c0_368] : memref<128x16xbf16, #tpu.memory_space<vmem>>, vector<128x16xbf16>
      %cst_369 = arith.constant dense<0.000000e+00> : vector<8x16xf32>
      %877 = tpu.matmul %875, %876, %cst_369 {dimension_numbers = #tpu.dot_dimension_numbers<[1], [0], [0], [1], [0, 0, 1, 1], [], []>} : vector<8x128xbf16>, vector<128x16xbf16>, vector<8x16xf32> -> vector<8x16xf32>
      %878 = arith.truncf %877 : vector<8x16xf32> to vector<8x16xbf16>
      %c0_370 = arith.constant 0 : index
      %c0_371 = arith.constant 0 : index
      %879 = vector.load %arg23[%c0_370, %c0_371] : memref<8x16xbf16, #tpu.memory_space<vmem>>, vector<8x16xbf16>
      tpu.vector_store %arg23[%c0_370, %c0_371], %878 {strides = array<i32>} : memref<8x16xbf16, #tpu.memory_space<vmem>>, vector<8x16xbf16>,
    } else {
    }
    %856 = arith.index_cast %c7_i32 : i32 to index
    %857 = memref.load %arg1[%856] : memref<8xi32, #tpu.memory_space<smem>>
    %c0_i32_361 = arith.constant 0 : i32
    %858 = arith.cmpi ne, %857, %c0_i32_361 : i32
    %859 = arith.extui %858 : i1 to i32
    %c0_i32_362 = arith.constant 0 : i32
    %860 = arith.cmpi ne, %859, %c0_i32_362 : i32
    scf.if %860 {
      %861 = arith.index_cast %c7_i32 : i32 to index
      %c0_364 = arith.constant 0 : index
      %c0_365 = arith.constant 0 : index
      %862 = vector.load %arg3[%861, %c0_364, %c0_365] : memref<8x8x16xbf16, #tpu.memory_space<vmem>>, vector<1x8x16xbf16>
      %863 = vector.shape_cast %862 : vector<1x8x16xbf16> to vector<8x16xbf16>
      %c0_366 = arith.constant 0 : index
      %c0_367 = arith.constant 0 : index
      %864 = vector.load %arg23[%c0_366, %c0_367] : memref<8x16xbf16, #tpu.memory_space<vmem>>, vector<8x16xbf16>
      tpu.vector_store %arg23[%c0_366, %c0_367], %863 {strides = array<i32>} : memref<8x16xbf16, #tpu.memory_space<vmem>>, vector<8x16xbf16>,
    } else {
    }
    %c7_i32_363 = arith.constant 7 : i32
    return
  }
  func.func @transform_0(%arg0: i32, %arg1: memref<8xi32, #tpu.memory_space<smem>>) -> (i32, i32, i32) {
    %c0_i32 = arith.constant 0 : i32
    %c0_i32_0 = arith.constant 0 : i32
    %c0_i32_1 = arith.constant 0 : i32
    return %c0_i32, %arg0, %c0_i32_0 : i32, i32, i32
  }
  func.func @transform_1(%arg0: i32, %arg1: memref<8xi32, #tpu.memory_space<smem>>) -> (i32, i32, i32) {
    %c0_i32 = arith.constant 0 : i32
    %c0_i32_0 = arith.constant 0 : i32
    %c0_i32_1 = arith.constant 0 : i32
    return %c0_i32, %arg0, %c0_i32_0 : i32, i32, i32
  }
  func.func @transform_2(%arg0: i32, %arg1: memref<8xi32, #tpu.memory_space<smem>>) -> (i32, i32) {
    %c0_i32 = arith.constant 0 : i32
    %c0_i32_0 = arith.constant 0 : i32
    %c0_i32_1 = arith.constant 0 : i32
    return %c0_i32, %c0_i32_0 : i32, i32
  }
  func.func @transform_3(%arg0: i32, %arg1: memref<8xi32, #tpu.memory_space<smem>>) -> (i32, i32) {
    %c0_i32 = arith.constant 0 : i32
    %c0_i32_0 = arith.constant 0 : i32
    %c0_i32_1 = arith.constant 0 : i32
    return %c0_i32, %c0_i32_0 : i32, i32
  }
  func.func @transform_4(%arg0: i32, %arg1: memref<8xi32, #tpu.memory_space<smem>>) -> (i32, i32) {
    %c0_i32 = arith.constant 0 : i32
    %c0_i32_0 = arith.constant 0 : i32
    %c0_i32_1 = arith.constant 0 : i32
    return %c0_i32, %c0_i32_0 : i32, i32
  }
  func.func @transform_5(%arg0: i32, %arg1: memref<8xi32, #tpu.memory_space<smem>>) -> (i32, i32) {
    %c0_i32 = arith.constant 0 : i32
    %c0_i32_0 = arith.constant 0 : i32
    %c0_i32_1 = arith.constant 0 : i32
    return %c0_i32, %c0_i32_0 : i32, i32
  }
  func.func @transform_6(%arg0: i32, %arg1: memref<8xi32, #tpu.memory_space<smem>>) -> (i32, i32) {
    %c0_i32 = arith.constant 0 : i32
    %c0_i32_0 = arith.constant 0 : i32
    %c0_i32_1 = arith.constant 0 : i32
    return %c0_i32, %c0_i32_0 : i32, i32
  }
  func.func @transform_7(%arg0: i32, %arg1: memref<8xi32, #tpu.memory_space<smem>>) -> (i32, i32) {
    %c0_i32 = arith.constant 0 : i32
    %c0_i32_0 = arith.constant 0 : i32
    %c0_i32_1 = arith.constant 0 : i32
    return %c0_i32, %c0_i32_0 : i32, i32
  }
  func.func @transform_8(%arg0: i32, %arg1: memref<8xi32, #tpu.memory_space<smem>>) -> (i32, i32) {
    %c0_i32 = arith.constant 0 : i32
    %c0_i32_0 = arith.constant 0 : i32
    %c0_i32_1 = arith.constant 0 : i32
    return %c0_i32, %c0_i32_0 : i32, i32
  }
  func.func @transform_9(%arg0: i32, %arg1: memref<8xi32, #tpu.memory_space<smem>>) -> (i32, i32) {
    %c0_i32 = arith.constant 0 : i32
    %c0_i32_0 = arith.constant 0 : i32
    %c0_i32_1 = arith.constant 0 : i32
    return %c0_i32, %c0_i32_0 : i32, i32
  }
  func.func @transform_10(%arg0: i32, %arg1: memref<8xi32, #tpu.memory_space<smem>>) -> (i32, i32) {
    %c0_i32 = arith.constant 0 : i32
    %c0_i32_0 = arith.constant 0 : i32
    %c0_i32_1 = arith.constant 0 : i32
    return %c0_i32, %c0_i32_0 : i32, i32
  }
  func.func @transform_11(%arg0: i32, %arg1: memref<8xi32, #tpu.memory_space<smem>>) -> (i32, i32) {
    %c0_i32 = arith.constant 0 : i32
    %c0_i32_0 = arith.constant 0 : i32
    %c0_i32_1 = arith.constant 0 : i32
    return %c0_i32, %c0_i32_0 : i32, i32
  }
  func.func @transform_12(%arg0: i32, %arg1: memref<8xi32, #tpu.memory_space<smem>>) -> (i32, i32) {
    %c0_i32 = arith.constant 0 : i32
    %c0_i32_0 = arith.constant 0 : i32
    %c0_i32_1 = arith.constant 0 : i32
    return %c0_i32, %c0_i32_0 : i32, i32
  }
  func.func @transform_13(%arg0: i32, %arg1: memref<8xi32, #tpu.memory_space<smem>>) -> (i32, i32) {
    %c0_i32 = arith.constant 0 : i32
    %c0_i32_0 = arith.constant 0 : i32
    %c0_i32_1 = arith.constant 0 : i32
    return %c0_i32, %c0_i32_0 : i32, i32
  }
  func.func @transform_14(%arg0: i32, %arg1: memref<8xi32, #tpu.memory_space<smem>>) -> (i32, i32) {
    %c0_i32 = arith.constant 0 : i32
    %c0_i32_0 = arith.constant 0 : i32
    %c0_i32_1 = arith.constant 0 : i32
    return %c0_i32, %c0_i32_0 : i32, i32
  }
  func.func @transform_15(%arg0: i32, %arg1: memref<8xi32, #tpu.memory_space<smem>>) -> (i32, i32) {
    %c0_i32 = arith.constant 0 : i32
    %c0_i32_0 = arith.constant 0 : i32
    %c0_i32_1 = arith.constant 0 : i32
    return %c0_i32, %c0_i32_0 : i32, i32
  }
  func.func @transform_16(%arg0: i32, %arg1: memref<8xi32, #tpu.memory_space<smem>>) -> (i32, i32) {
    %c0_i32 = arith.constant 0 : i32
    %c0_i32_0 = arith.constant 0 : i32
    %c0_i32_1 = arith.constant 0 : i32
    return %c0_i32, %c0_i32_0 : i32, i32
  }
  func.func @transform_17(%arg0: i32, %arg1: memref<8xi32, #tpu.memory_space<smem>>) -> (i32, i32) {
    %c0_i32 = arith.constant 0 : i32
    %c0_i32_0 = arith.constant 0 : i32
    %c0_i32_1 = arith.constant 0 : i32
    return %c0_i32, %c0_i32_0 : i32, i32
  }
  func.func @transform_18(%arg0: i32, %arg1: memref<8xi32, #tpu.memory_space<smem>>) -> (i32, i32) {
    %c0_i32 = arith.constant 0 : i32
    %c0_i32_0 = arith.constant 0 : i32
    %c0_i32_1 = arith.constant 0 : i32
    return %c0_i32, %c0_i32_0 : i32, i32
  }
  func.func @transform_19(%arg0: i32, %arg1: memref<8xi32, #tpu.memory_space<smem>>) -> (i32, i32, i32) {
    %c0_i32 = arith.constant 0 : i32
    %c0_i32_0 = arith.constant 0 : i32
    %c0_i32_1 = arith.constant 0 : i32
    return %c0_i32, %arg0, %c0_i32_0 : i32, i32, i32
  }
}

</mosaic_0001>

<bundles_post_ra>
// kernel: _seq2seq_jit.1
= control target key start
LH: loop header
LB: loop body
LE: loop exit
PB: predicated region body
PF: predicated region fallthrough
CT: control target
= control target key end

     0   :  { %s8786_s0 = inlined_call_operand.vmem [shape: s32[8], index: 0, kind: input, shape index: {}]   ;;  %s8787_s1 = inlined_call_operand.vmem [shape: bf16[6,8,16], index: 1, kind: input, shape index: {}]   ;;  %s8788_s2 = inlined_call_operand.vmem [shape: bf16[8,8,16], index: 2, kind: input, shape index: {}]   ;;  %s8789_s3 = inlined_call_operand.vmem [shape: bf16[128,16], index: 3, kind: input, shape index: {}]   ;;  %s8790_s4 = inlined_call_operand.vmem [shape: bf16[16,128], index: 4, kind: input, shape index: {}]   ;;  %s8791_s5 = inlined_call_operand.vmem [shape: bf16[32,128], index: 5, kind: input, shape index: {}]   ;;  %s8792_s6 = inlined_call_operand.vmem [shape: f32[1,128], index: 6, kind: input, shape index: {}]   ;;  %s8793_s7 = inlined_call_operand.vmem [shape: bf16[32,32], index: 7, kind: input, shape index: {}]   ;;  %s8794_s8 = inlined_call_operand.vmem [shape: bf16[32,32], index: 8, kind: input, shape index: {}]   ;;  %s8795_s9 = inlined_call_operand.vmem [shape: f32[1,32], index: 9, kind: input, shape index: {}]   ;;  %s8796_s10 = inlined_call_operand.vmem [shape: f32[1,32], index: 10, kind: input, shape index: {}]   ;;  %s8797_s11 = inlined_call_operand.vmem [shape: bf16[16,96], index: 11, kind: input, shape index: {}]   ;;  %s8798_s12 = inlined_call_operand.vmem [shape: bf16[32,96], index: 12, kind: input, shape index: {}]   ;;  %s8799_s13 = inlined_call_operand.vmem [shape: bf16[32,96], index: 13, kind: input, shape index: {}]   ;;  %s8800_s14 = inlined_call_operand.vmem [shape: f32[1,96], index: 14, kind: input, shape index: {}]   ;;  %s8801_s15 = inlined_call_operand.vmem [shape: f32[1,96], index: 15, kind: input, shape index: {}]   ;;  %s8802_s16 = inlined_call_operand.vmem [shape: bf16[16,128], index: 16, kind: input, shape index: {}]   ;;  %s8803_s17 = inlined_call_operand.vmem [shape: bf16[32,128], index: 17, kind: input, shape index: {}]   ;;  %s8804_s18 = inlined_call_operand.vmem [shape: bf16[32,128], index: 18, kind: input, shape index: {}]   ;;  %s8805_s19 = inlined_call_operand.vmem [shape: f32[1,128], index: 19, kind: input, shape index: {}]   ;;  %s8806_s20 = inlined_call_operand.vmem [shape: f32[8,8,128], index: 20, kind: output, shape index: {}]  }
   0x1   :  { %8816 = sst [smem:[#allocation7_spill]] %s8786_s0 }
   0x2   :  { %8817 = sst [smem:[#allocation8_spill]] %s8787_s1  ;;  %s8822_s23 = sld [smem:[#allocation7_spill]] }
   0x3   :  { %8818 = sst [smem:[#allocation9_spill]] %s8788_s2 }
   0x4   :  { %8819 = sst [smem:[#allocation10_spill]] %s8789_s3 }
   0x5   :  { %8820 = sst [smem:[#allocation11_spill]] %s8790_s4 }
   0x6   :  { %8821 = sst [smem:[#allocation12_spill]] %s8800_s14 }
   0x8   :  { %s25_s14 = sshll.u32 %s8822_s23, 4  ;;  %s26_s14 = int_to_ptr.vmem [resolvable:$true] %s25_s14 }
   0x9   :  { %s7278_s24 = scalar_lea.vmem %s26_s14, 16  ;;  %p7283_p1 = scmp.lt.s32.totalorder %s26_s14, %s26_s14 }
   0xa   :  { %p7279_p0 = scmp.ne.s32.totalorder %s26_s14, %s7278_s24  ;;  %p7284_p2 = scmp.lt.s32.totalorder %s7278_s24, %s7278_s24 }
   0xc   :  { %p7285_p3 = por %p7284_p2, %p7283_p1 }
   0xe   :  { %p7286_p4 = pnand %p7285_p3, %p7279_p0 }
  0x10   :  { %7289 = shalt.err (!%p7286_p4)  }
  0x11   :  { %s7292_s2 = smov [#allocation5]  }
  0x12   :  { %28 = dma.vmem_to_smem %s26_s14, 16, %s7292_s2, [#allocation4] }
  0x13   :  { %7290 = dma.done.wait [#allocation4], 16 }
  0x14   :  { %7291 = vsyncadd [#allocation4], 4294967280 }
  0x15   :  { %30 = sfence }
  0x16   :  { %v6845_v0 = vld [vmem:[%s8791_s5] sm:$0xff]   ;;  %v7293_v1 = vmov 0.0   ;;  %s8823_s14 = sld [smem:[#allocation11_spill]]  ;;  %vm7294_vm0 = vmmov 0   ;;  %v6847_v3 = vld [vmem:[%s8791_s5 + $0x8] sm:$0xff]   ;;  %s8824_s1 = sld [smem:[#allocation8_spill]] }
  0x17   :  { %70 = vst [vmem:[%s8806_s20] sm:$0xff] %v7293_v1  ;;  %6213 = vmatprep.subr.bf16.mxu0 %v7293_v1  ;;  %6221 = vmatprep.subr.bf16.mxu1 %v7293_v1  ;;  %vm175_vm1 = vcmask 130048   ;;  %v7295_v5 = vmov 0   ;;  %v7461_v9 = vld [vmem:[%s8792_s6] ss:$0 sm:$0xff]  ;;  %s7296_s24 = smov 64   ;;  %s7297_s6 = smov 32  }
  0x18   :  { %6214 = vmatpush3.bf16.msra.mxu0 %v6845_v0  ;;  %6223 = vmatprep.mubr.msk.bf16.mxu1 %vm7294_vm0, %v7293_v1  ;;  %v6848_v27 = vld [vmem:[%s8791_s5] sm:$0xff]   ;;  %v6850_v29 = vld [vmem:[%s8791_s5 + $0x8] sm:$0xff]   ;;  %vm125_vm2 = vcmask 261120   ;;  %s8825_s25 = sld [smem:[#allocation9_spill]]  ;;  %vm1092_vm4 = vcmask 125952  }
  0x19   :  { %6215 = vmatprep.subr.bf16.mxu0 %v7293_v1  ;;  %6217 = vmatprep.mubr.msk.bf16.mxu0 %vm7294_vm0, %v7293_v1  ;;  %v6851_v56 = vld [vmem:[%s8791_s5] sm:$0xff]   ;;  %v6853_v58 = vld [vmem:[%s8791_s5 + $0x8] sm:$0xff]  }
  0x1c   :  { %v6846_v2 = vld [vmem:[%s8823_s14] sm:$0xff]   ;;  %6216 = vmatpush3.bf16.msra.mxu0 %v6847_v3  ;;  %v5689_v59 = vld [vmem:[%s8824_s1 + $0x8] sm:$0xf] }
  0x1d   :  { %6222 = vmatpush3.bf16.msra.mxu1 %v6846_v2  ;;  %v106_v4 = vld [vmem:[%s8824_s1] sm:$0xf]  ;;  %6235 = vmatprep.subr.bf16.mxu0 %v7293_v1  ;;  %v5682_v30 = vld [vmem:[%s8824_s1 + $0x4] sm:$0xf] }
  0x1e   :  { %6227 = vmatprep.subr.bf16.mxu1 %v7293_v1  ;;  %v6849_v28 = vld [vmem:[%s8823_s14] sm:$0xff]  }
  0x1f   :  { %6218 = vmatmul.mubr.bf16.vlgmr.msra.gmra.mrb[0].mxu0 %v7295_v5  ;;  %v6852_v57 = vld [vmem:[%s8823_s14] sm:$0xff]  }
  0x20   :  { %6224 = vmatmul.mubr.msk.bf16.vlgmr.msra.gmra.mrb[0].mxu1 %vm175_vm1, %v106_v4  ;;  %6237 = vmatprep.mubr.msk.bf16.mxu0 %vm7294_vm0, %v7293_v1 }
  0x21   :  { %6231 = vmatprep.mubr.msk.bf16.mxu1 %vm7294_vm0, %v7293_v1  ;;  %6228 = vmatpush3.bf16.msra.mxu1 %v6848_v27 }
  0x22   :  { %6236 = vmatpush3.bf16.msra.mxu0 %v6849_v28  ;;  %6229 = vmatprep.subr.bf16.mxu1 %v7293_v1 }
  0x23   :  { %6249 = vmatprep.subr.bf16.mxu0 %v7293_v1 }
  0x25   :  { %6230 = vmatpush3.bf16.msra.mxu1 %v6850_v29 }
  0x26   :  { %6241 = vmatprep.subr.bf16.mxu1 %v7293_v1 }
  0x27   :  { %6238 = vmatmul.mubr.msk.bf16.vlgmr.msra.gmra.mrb[4].mxu0 %vm175_vm1, %v5682_v30 }
  0x28   :  { %6251 = vmatprep.mubr.msk.bf16.mxu0 %vm7294_vm0, %v7293_v1  ;;  %6250 = vmatpush3.bf16.msra.mxu0 %v6852_v57 }
  0x29   :  { %6263 = vmatprep.subr.bf16.mxu0 %v7293_v1 }
  0x2f   :  { %6252 = vmatmul.mubr.msk.bf16.vlgmr.msra.gmra.mrb[8].mxu0 %vm175_vm1, %v5689_v59 }
  0x30   :  { %6265 = vmatprep.mubr.msk.bf16.mxu0 %vm7294_vm0, %v7293_v1 }
  0xf2   :  { %v163_v10 = vpop.f32.mrb[0].mxu0 }
  0xf3   :  { %v213_v6 = vpop.f32.mrb[0].mxu1  ;;  %v6219_v13 = vpop.f32.mrb[1].mxu0 }
  0xf4   :  { %v6225_v7 = vpop.f32.mrb[1].mxu1  ;;  %v214_v12 = vadd.f32 %v213_v6, %v163_v10  ;;  %v166_v14 = vpop.f32.mrb[2].mxu0 }
  0xf5   :  { %v216_v8 = vpop.f32.mrb[2].mxu1  ;;  %v6220_v16 = vpop.f32.mrb[3].mxu0 }
  0xf6   :  { %v6226_v11 = vpop.f32.mrb[3].mxu1  ;;  %v219_v15 = vadd.f32 %v7461_v9, %v214_v12 }
  0xf8   :  { %6877 = vtanh.f32 %v219_v15  ;;  %v5681_v18 = vmul.f32 -1.442695, %v219_v15 }
  0xfa   :  { %6879 = vpow2.f32 %v5681_v18  ;;  %v359_v35 = vpop.f32.mrb[4].mxu0 }
  0xfb   :  { %v6239_v36 = vpop.f32.mrb[5].mxu0 }
  0xfc   :  { %v362_v37 = vpop.f32.mrb[6].mxu0 }
  0xfd   :  { %v6240_v38 = vpop.f32.mrb[7].mxu0 }
 0x102   :  { %v6878_v17 = vpop.eup %6877  ;;  %v506_v0 = vpop.f32.mrb[8].mxu0 }
 0x103   :  { %229 = vrot.lane.b32.xlu0 %v6878_v17, %s7296_s24  ;;  %v6253_v2 = vpop.f32.mrb[9].mxu0 }
 0x104   :  { %v6880_v19 = vpop.eup %6879  ;;  %v509_v3 = vpop.f32.mrb[10].mxu0 }
 0x105   :  { %v223_v20 = vadd.f32 1.0, %v6880_v19  ;;  %v6254_v4 = vpop.f32.mrb[11].mxu0 }
 0x107   :  { %6881 = vrcp.f32 %v223_v20 }
 0x111   :  { %v6882_v21 = vpop.eup %6881 }
 0x112   :  { %v227_v24 = vmul.f32 0.0, %v6882_v21 }
 0x175   :  { %v230_v22 = vpop.permute.xlu0 %229 }
 0x176   :  { %v232_v23 = vmul.f32 %v6882_v21, %v230_v22 }
 0x178   :  { %234 = vrot.lane.b32.xlu0 %v232_v23, %s7297_s6  ;;  %v6854_v23 = vld [vmem:[%s8791_s5] sm:$0xff]  }
 0x1ea   :  { %v235_v25 = vpop.permute.xlu0 %234 }
 0x1eb   :  { %v237_v26 = vadd.f32 %v235_v25, %v227_v24  ;;  %v6855_v24 = vld [vmem:[%s8823_s14] sm:$0xff]   ;;  %v6856_v25 = vld [vmem:[%s8791_s5 + $0x8] sm:$0xff]  }
 0x1ec   :  { %6264 = vmatpush3.bf16.msra.mxu0 %v6855_v24  ;;  %v5710_v24 = vld [vmem:[%s8824_s1 + $0x14] sm:$0xf] }
 0x1ed   :  { %6883 = vtanh.f32 %v237_v26  ;;  %6277 = vmatprep.subr.bf16.mxu0 %v7293_v1 }
 0x1f7   :  { %v6884_v31 = vpop.eup %6883 }
 0x1f8   :  { %240 = vrot.lane.b32.xlu1 %v6884_v31, %s7296_s24 }
 0x26a   :  { %v241_v32 = vpop.permute.xlu1 %240 }
 0x26b   :  { %v7485_v33 = vmul.f32 %v6882_v21, %v241_v32 }
 0x26d   :  { %v253_v34 = vpack.c.bf16 %v7485_v33, %v7485_v33 }
 0x26f   :  { %259 = vrot.lane.b32.xlu1 %v253_v34, %s7297_s6 }
 0x2e1   :  { %v260_v39 = vpop.permute.xlu1 %259 }
 0x2e2   :  { %6232 = vmatmul.mubr.msk.bf16.vlgmr.msra.gmra.mrb[4].mxu1 %vm125_vm2, %v260_v39 }
 0x2e3   :  { %6245 = vmatprep.mubr.msk.bf16.mxu1 %vm7294_vm0, %v7293_v1  ;;  %6242 = vmatpush3.bf16.msra.mxu1 %v6851_v56  ;;  %v5703_v56 = vld [vmem:[%s8824_s1 + $0x10] sm:$0xf] }
 0x2e4   :  { %6243 = vmatprep.subr.bf16.mxu1 %v7293_v1 }
 0x2e7   :  { %6244 = vmatpush3.bf16.msra.mxu1 %v6853_v58 }
 0x2e8   :  { %6255 = vmatprep.subr.bf16.mxu1 %v7293_v1 }
 0x3b5   :  { %v310_v40 = vpop.f32.mrb[4].mxu1 }
 0x3b6   :  { %v360_v41 = vadd.f32 %v359_v35, %v310_v40  ;;  %v6233_v42 = vpop.f32.mrb[5].mxu1 }
 0x3b7   :  { %v313_v43 = vpop.f32.mrb[6].mxu1 }
 0x3b8   :  { %v365_v44 = vadd.f32 %v7461_v9, %v360_v41  ;;  %v6234_v45 = vpop.f32.mrb[7].mxu1 }
 0x3ba   :  { %6885 = vtanh.f32 %v365_v44  ;;  %v5688_v47 = vmul.f32 -1.442695, %v365_v44 }
 0x3bc   :  { %6887 = vpow2.f32 %v5688_v47 }
 0x3c4   :  { %v6886_v46 = vpop.eup %6885 }
 0x3c5   :  { %375 = vrot.lane.b32.xlu0 %v6886_v46, %s7296_s24 }
 0x3c6   :  { %v6888_v48 = vpop.eup %6887 }
 0x3c7   :  { %v369_v49 = vadd.f32 1.0, %v6888_v48 }
 0x3c9   :  { %6889 = vrcp.f32 %v369_v49 }
 0x3d3   :  { %v6890_v50 = vpop.eup %6889 }
 0x3d4   :  { %v373_v53 = vmul.f32 %v6890_v50, %v237_v26  ;;  %v5696_v26 = vld [vmem:[%s8824_s1 + $0xc] sm:$0xf] }
 0x3d5   :  { %6266 = vmatmul.mubr.msk.bf16.vlgmr.msra.gmra.mrb[12].mxu0 %vm175_vm1, %v5696_v26 }
 0x3d6   :  { %6279 = vmatprep.mubr.msk.bf16.mxu0 %vm7294_vm0, %v7293_v1 }
 0x437   :  { %v376_v51 = vpop.permute.xlu0 %375 }
 0x438   :  { %v378_v52 = vmul.f32 %v6890_v50, %v376_v51 }
 0x43a   :  { %380 = vrot.lane.b32.xlu1 %v378_v52, %s7297_s6 }
 0x4a8   :  { %v653_v31 = vpop.f32.mrb[12].mxu0 }
 0x4a9   :  { %v6267_v32 = vpop.f32.mrb[13].mxu0 }
 0x4aa   :  { %v656_v34 = vpop.f32.mrb[14].mxu0 }
 0x4ab   :  { %v6268_v35 = vpop.f32.mrb[15].mxu0 }
 0x4ac   :  { %v381_v54 = vpop.permute.xlu1 %380 }
 0x4ad   :  { %v383_v55 = vadd.f32 %v381_v54, %v373_v53  ;;  %v6857_v53 = vld [vmem:[%s8791_s5] sm:$0xff]  }
 0x4ae   :  { %v6858_v54 = vld [vmem:[%s8823_s14] sm:$0xff]  }
 0x4af   :  { %6891 = vtanh.f32 %v383_v55  ;;  %6278 = vmatpush3.bf16.msra.mxu0 %v6858_v54 }
 0x4b0   :  { %6291 = vmatprep.subr.bf16.mxu0 %v7293_v1 }
 0x4b2   :  { %6280 = vmatmul.mubr.msk.bf16.vlgmr.msra.gmra.mrb[16].mxu0 %vm175_vm1, %v5703_v56  ;;  %v6865_v56 = vld [vmem:[%s8793_s7] sm:$0xff]  }
 0x4b3   :  { %6293 = vmatprep.mubr.msk.bf16.mxu0 %vm7294_vm0, %v7293_v1 }
 0x4b9   :  { %v6892_v60 = vpop.eup %6891 }
 0x4ba   :  { %386 = vrot.lane.b32.xlu0 %v6892_v60, %s7296_s24 }
 0x52c   :  { %v387_v61 = vpop.permute.xlu0 %386 }
 0x52d   :  { %v7515_v62 = vmul.f32 %v6890_v50, %v387_v61 }
 0x52f   :  { %v400_v63 = vpack.c.bf16 %v7515_v62, %v7515_v62 }
 0x531   :  { %406 = vrot.lane.b32.xlu1 %v400_v63, %s7297_s6 }
 0x585   :  { %v800_v61 = vpop.f32.mrb[16].mxu0 }
 0x586   :  { %v6281_v63 = vpop.f32.mrb[17].mxu0 }
 0x5a3   :  { %v407_v5 = vpop.permute.xlu1 %406 }
 0x5a4   :  { %6246 = vmatmul.mubr.msk.bf16.vlgmr.msra.gmra.mrb[8].mxu1 %vm125_vm2, %v407_v5 }
 0x5a5   :  { %6259 = vmatprep.mubr.msk.bf16.mxu1 %vm7294_vm0, %v7293_v1  ;;  %6256 = vmatpush3.bf16.msra.mxu1 %v6854_v23  ;;  %v6862_v23 = vld [vmem:[%s8791_s5 + $0x8] sm:$0xff]  }
 0x5a6   :  { %6257 = vmatprep.subr.bf16.mxu1 %v7293_v1 }
 0x5a9   :  { %6258 = vmatpush3.bf16.msra.mxu1 %v6856_v25 }
 0x5aa   :  { %6269 = vmatprep.subr.bf16.mxu1 %v7293_v1 }
 0x677   :  { %v457_v6 = vpop.f32.mrb[8].mxu1 }
 0x678   :  { %v507_v7 = vadd.f32 %v506_v0, %v457_v6  ;;  %v6247_v8 = vpop.f32.mrb[9].mxu1  ;;  %v803_v0 = vpop.f32.mrb[18].mxu0 }
 0x679   :  { %v460_v10 = vpop.f32.mrb[10].mxu1  ;;  %v6282_v2 = vpop.f32.mrb[19].mxu0 }
 0x67a   :  { %v512_v11 = vadd.f32 %v7461_v9, %v507_v7  ;;  %v6248_v12 = vpop.f32.mrb[11].mxu1 }
 0x67c   :  { %6893 = vtanh.f32 %v512_v11  ;;  %v5695_v14 = vmul.f32 -1.442695, %v512_v11 }
 0x67e   :  { %6895 = vpow2.f32 %v5695_v14 }
 0x686   :  { %v6894_v13 = vpop.eup %6893 }
 0x687   :  { %522 = vrot.lane.b32.xlu0 %v6894_v13, %s7296_s24 }
 0x688   :  { %v6896_v15 = vpop.eup %6895 }
 0x689   :  { %v516_v16 = vadd.f32 1.0, %v6896_v15 }
 0x68b   :  { %6897 = vrcp.f32 %v516_v16 }
 0x695   :  { %v6898_v17 = vpop.eup %6897 }
 0x696   :  { %v520_v20 = vmul.f32 %v6898_v17, %v383_v55  ;;  %v6859_v55 = vld [vmem:[%s8791_s5 + $0x8] sm:$0xff]  }
 0x6f9   :  { %v523_v18 = vpop.permute.xlu0 %522 }
 0x6fa   :  { %v525_v19 = vmul.f32 %v6898_v17, %v523_v18 }
 0x6fc   :  { %527 = vrot.lane.b32.xlu1 %v525_v19, %s7297_s6 }
 0x76e   :  { %v528_v21 = vpop.permute.xlu1 %527 }
 0x76f   :  { %v530_v22 = vadd.f32 %v528_v21, %v520_v20  ;;  %v6860_v21 = vld [vmem:[%s8791_s5] sm:$0xff]  }
 0x771   :  { %6899 = vtanh.f32 %v530_v22 }
 0x77b   :  { %v6900_v27 = vpop.eup %6899 }
 0x77c   :  { %533 = vrot.lane.b32.xlu0 %v6900_v27, %s7296_s24 }
 0x7ee   :  { %v534_v28 = vpop.permute.xlu0 %533 }
 0x7ef   :  { %v7545_v29 = vmul.f32 %v6898_v17, %v534_v28 }
 0x7f1   :  { %v547_v30 = vpack.c.bf16 %v7545_v29, %v7545_v29 }
 0x7f3   :  { %553 = vrot.lane.b32.xlu1 %v547_v30, %s7297_s6 }
 0x865   :  { %v554_v36 = vpop.permute.xlu1 %553 }
 0x866   :  { %6260 = vmatmul.mubr.msk.bf16.vlgmr.msra.gmra.mrb[12].mxu1 %vm125_vm2, %v554_v36 }
 0x867   :  { %6273 = vmatprep.mubr.msk.bf16.mxu1 %vm7294_vm0, %v7293_v1  ;;  %6270 = vmatpush3.bf16.msra.mxu1 %v6857_v53 }
 0x868   :  { %6271 = vmatprep.subr.bf16.mxu1 %v7293_v1 }
 0x86b   :  { %6272 = vmatpush3.bf16.msra.mxu1 %v6859_v55  ;;  %v1088_v55 = vlaneseq }
 0x86c   :  { %6283 = vmatprep.subr.bf16.mxu1 %v7293_v1 }
 0x939   :  { %v604_v37 = vpop.f32.mrb[12].mxu1 }
 0x93a   :  { %v654_v38 = vadd.f32 %v653_v31, %v604_v37  ;;  %v6261_v39 = vpop.f32.mrb[13].mxu1 }
 0x93b   :  { %v607_v40 = vpop.f32.mrb[14].mxu1 }
 0x93c   :  { %v659_v41 = vadd.f32 %v7461_v9, %v654_v38  ;;  %v6262_v42 = vpop.f32.mrb[15].mxu1 }
 0x93e   :  { %6901 = vtanh.f32 %v659_v41  ;;  %v5702_v44 = vmul.f32 -1.442695, %v659_v41 }
 0x940   :  { %6903 = vpow2.f32 %v5702_v44 }
 0x948   :  { %v6902_v43 = vpop.eup %6901 }
 0x949   :  { %669 = vrot.lane.b32.xlu0 %v6902_v43, %s7296_s24 }
 0x94a   :  { %v6904_v45 = vpop.eup %6903 }
 0x94b   :  { %v663_v46 = vadd.f32 1.0, %v6904_v45 }
 0x94d   :  { %6905 = vrcp.f32 %v663_v46 }
 0x957   :  { %v6906_v47 = vpop.eup %6905 }
 0x958   :  { %v667_v50 = vmul.f32 %v6906_v47, %v530_v22  ;;  %v6861_v22 = vld [vmem:[%s8823_s14] sm:$0xff]   ;;  %s7298_s14 = smov 96  }
 0x959   :  { %6292 = vmatpush3.bf16.msra.mxu0 %v6861_v22 }
 0x95a   :  { %6313 = vmatprep.subr.bf16.mxu0 %v7293_v1 }
 0x95c   :  { %6294 = vmatmul.mubr.msk.bf16.vlgmr.msra.gmra.mrb[20].mxu0 %vm175_vm1, %v5710_v24 }
 0x95d   :  { %6317 = vmatprep.mubr.msk.bf16.mxu0 %vm7294_vm0, %v7293_v1  ;;  %6314 = vmatpush3.bf16.msra.mxu0 %v6865_v56 }
 0x95e   :  { %6315 = vmatprep.subr.bf16.mxu0 %v7293_v1 }
 0x9bb   :  { %v670_v48 = vpop.permute.xlu0 %669 }
 0x9bc   :  { %v672_v49 = vmul.f32 %v6906_v47, %v670_v48 }
 0x9be   :  { %674 = vrot.lane.b32.xlu1 %v672_v49, %s7297_s6 }
 0xa2f   :  { %v947_v30 = vpop.f32.mrb[20].mxu0 }
 0xa30   :  { %v675_v51 = vpop.permute.xlu1 %674  ;;  %v6295_v31 = vpop.f32.mrb[21].mxu0 }
 0xa31   :  { %v677_v52 = vadd.f32 %v675_v51, %v667_v50  ;;  %v950_v32 = vpop.f32.mrb[22].mxu0 }
 0xa32   :  { %v6296_v34 = vpop.f32.mrb[23].mxu0 }
 0xa33   :  { %6907 = vtanh.f32 %v677_v52 }
 0xa3d   :  { %v6908_v57 = vpop.eup %6907 }
 0xa3e   :  { %680 = vrot.lane.b32.xlu0 %v6908_v57, %s7296_s24  ;;  %v7636_v57 = vand.u32 127, %v1088_v55 }
 0xa40   :  { %vm1090_vm3 = vcmp.lt.s32.totalorder %v7636_v57, 25 }
 0xab0   :  { %v681_v58 = vpop.permute.xlu0 %680 }
 0xab1   :  { %v7575_v59 = vmul.f32 %v6906_v47, %v681_v58  ;;  %v6866_v58 = vld [vmem:[%s8793_s7 + $0x8] sm:$0xff]  }
 0xab2   :  { %6316 = vmatpush3.bf16.msra.mxu0 %v6866_v58 }
 0xab3   :  { %v694_v60 = vpack.c.bf16 %v7575_v59, %v7575_v59  ;;  %6321 = vmatprep.subr.bf16.mxu0 %v7293_v1 }
 0xab5   :  { %700 = vrot.lane.b32.xlu1 %v694_v60, %s7297_s6 }
 0xb27   :  { %v701_v3 = vpop.permute.xlu1 %700 }
 0xb28   :  { %6274 = vmatmul.mubr.msk.bf16.vlgmr.msra.gmra.mrb[16].mxu1 %vm125_vm2, %v701_v3  ;;  %v6867_v3 = vld [vmem:[%s8799_s13] sm:$0xff]  }
 0xb29   :  { %6287 = vmatprep.mubr.msk.bf16.mxu1 %vm7294_vm0, %v7293_v1  ;;  %6284 = vmatpush3.bf16.msra.mxu1 %v6860_v21 }
 0xb2a   :  { %6285 = vmatprep.subr.bf16.mxu1 %v7293_v1 }
 0xb2d   :  { %6286 = vmatpush3.bf16.msra.mxu1 %v6862_v23  ;;  %v5722_v23 = vld [vmem:[%s8795_s9] ss:$0 sm:$0xff]  ;;  %s8826_s9 = sld [smem:[#allocation12_spill]] }
 0xb2e   :  { %6297 = vmatprep.subr.bf16.mxu1 %v7293_v1 }
 0xbfb   :  { %v751_v4 = vpop.f32.mrb[16].mxu1 }
 0xbfc   :  { %v801_v5 = vadd.f32 %v800_v61, %v751_v4  ;;  %v6275_v6 = vpop.f32.mrb[17].mxu1 }
 0xbfd   :  { %v754_v7 = vpop.f32.mrb[18].mxu1 }
 0xbfe   :  { %v806_v8 = vadd.f32 %v7461_v9, %v801_v5  ;;  %v6276_v10 = vpop.f32.mrb[19].mxu1  ;;  %v6868_v5 = vld [vmem:[%s8799_s13 + $0x8] sm:$0xff]  }
 0xc00   :  { %6909 = vtanh.f32 %v806_v8  ;;  %v5709_v12 = vmul.f32 -1.442695, %v806_v8 }
 0xc02   :  { %6911 = vpow2.f32 %v5709_v12 }
 0xc0a   :  { %v6910_v11 = vpop.eup %6909 }
 0xc0b   :  { %816 = vrot.lane.b32.xlu0 %v6910_v11, %s7296_s24 }
 0xc0c   :  { %v6912_v13 = vpop.eup %6911 }
 0xc0d   :  { %v810_v14 = vadd.f32 1.0, %v6912_v13 }
 0xc0f   :  { %6913 = vrcp.f32 %v810_v14 }
 0xc19   :  { %v6914_v15 = vpop.eup %6913 }
 0xc1a   :  { %v814_v18 = vmul.f32 %v6914_v15, %v677_v52  ;;  %v6863_v52 = vld [vmem:[%s8794_s8] sm:$0xff]  }
 0xc7d   :  { %v817_v16 = vpop.permute.xlu0 %816 }
 0xc7e   :  { %v819_v17 = vmul.f32 %v6914_v15, %v817_v16 }
 0xc80   :  { %821 = vrot.lane.b32.xlu1 %v819_v17, %s7297_s6 }
 0xcf2   :  { %v822_v19 = vpop.permute.xlu1 %821 }
 0xcf3   :  { %v824_v20 = vadd.f32 %v822_v19, %v814_v18 }
 0xcf5   :  { %6915 = vtanh.f32 %v824_v20 }
 0xcff   :  { %v6916_v25 = vpop.eup %6915 }
 0xd00   :  { %827 = vrot.lane.b32.xlu0 %v6916_v25, %s7296_s24 }
 0xd72   :  { %v828_v26 = vpop.permute.xlu0 %827 }
 0xd73   :  { %v830_v27 = vmul.f32 %v6914_v15, %v828_v26 }
 0xd75   :  { %v841_v28 = vpack.c.bf16 %v830_v27, %v830_v27 }
 0xd77   :  { %847 = vrot.lane.b32.xlu1 %v841_v28, %s7297_s6 }
 0xde9   :  { %v848_v35 = vpop.permute.xlu1 %847 }
 0xdea   :  { %6288 = vmatmul.mubr.msk.bf16.vlgmr.msra.gmra.mrb[20].mxu1 %vm125_vm2, %v848_v35 }
 0xdeb   :  { %6301 = vmatprep.mubr.msk.bf16.mxu1 %vm7294_vm0, %v7293_v1  ;;  %6298 = vmatpush3.bf16.msra.mxu1 %v6863_v52 }
 0xdec   :  { %6299 = vmatprep.subr.bf16.mxu1 %v7293_v1 }
 0xebd   :  { %v898_v36 = vpop.f32.mrb[20].mxu1 }
 0xebe   :  { %v948_v37 = vadd.f32 %v947_v30, %v898_v36  ;;  %v6289_v38 = vpop.f32.mrb[21].mxu1 }
 0xebf   :  { %v901_v39 = vpop.f32.mrb[22].mxu1 }
 0xec0   :  { %v953_v40 = vadd.f32 %v7461_v9, %v948_v37  ;;  %v6290_v41 = vpop.f32.mrb[23].mxu1 }
 0xec2   :  { %6917 = vtanh.f32 %v953_v40  ;;  %v5716_v43 = vmul.f32 -1.442695, %v953_v40 }
 0xec4   :  { %6919 = vpow2.f32 %v5716_v43 }
 0xecc   :  { %v6918_v42 = vpop.eup %6917 }
 0xecd   :  { %963 = vrot.lane.b32.xlu0 %v6918_v42, %s7296_s24 }
 0xece   :  { %v6920_v44 = vpop.eup %6919 }
 0xecf   :  { %v957_v45 = vadd.f32 1.0, %v6920_v44 }
 0xed1   :  { %6921 = vrcp.f32 %v957_v45  ;;  %v7718_v45 = vld [vmem:[%s8796_s10] ss:$0 sm:$0xff] }
 0xedb   :  { %v6922_v46 = vpop.eup %6921 }
 0xedc   :  { %v961_v9 = vmul.f32 %v6922_v46, %v824_v20 }
 0xf3f   :  { %v964_v47 = vpop.permute.xlu0 %963 }
 0xf40   :  { %v966_v48 = vmul.f32 %v6922_v46, %v964_v47 }
 0xf42   :  { %968 = vrot.lane.b32.xlu1 %v966_v48, %s7297_s6 }
 0xf46   :  { %245 = vrot.lane.b32.xlu1 %v7485_v33, %s7297_s6  ;;  %v6864_v33 = vld [vmem:[%s8794_s8 + $0x8] sm:$0xff]  }
 0xf47   :  { %6300 = vmatpush3.bf16.msra.mxu1 %v6864_v33 }
 0xf48   :  { %6335 = vmatprep.subr.bf16.mxu1 %v7293_v1 }
 0xf4a   :  { %538 = vrot.lane.b32.xlu1 %v7545_v29, %s7297_s6 }
 0xf4e   :  { %832 = vrot.lane.b32.xlu1 %v830_v27, %s7297_s6 }
 0xfb4   :  { %v969_v49 = vpop.permute.xlu1 %968 }
 0xfb5   :  { %v971_v50 = vadd.f32 %v969_v49, %v961_v9 }
 0xfb7   :  { %6923 = vtanh.f32 %v971_v50 }
 0xfb8   :  { %v246_v51 = vpop.permute.xlu1 %245 }
 0xfb9   :  { %248 = vst.msk [vmem:[#allocation2] sm:$0xff] %vm125_vm2, %v246_v51 }
 0xfbc   :  { %v539_v53 = vpop.permute.xlu1 %538 }
 0xfbd   :  { %542 = vst.msk [vmem:[#allocation2 + $0x10] sm:$0xff] %vm125_vm2, %v539_v53 }
 0xfc0   :  { %v833_v29 = vpop.permute.xlu1 %832  ;;  %v7653_v0 = vld [vmem:[#allocation2] sm:$0xff] }
 0xfc1   :  { %v6924_v54 = vpop.eup %6923  ;;  %836 = vst.msk [vmem:[#allocation2 + $0x20] sm:$0xff] %vm125_vm2, %v833_v29 }
 0xfc2   :  { %974 = vrot.lane.b32.xlu0 %v6924_v54, %s7296_s24 }
 0xfc4   :  { %v7671_v7 = vld [vmem:[#allocation2 + $0x10] sm:$0xff] }
 0xfc6   :  { %391 = vrot.lane.b32.xlu0 %v7515_v62, %s7297_s6 }
 0xfc8   :  { %v7683_v12 = vld [vmem:[#allocation2 + $0x20] sm:$0xff] }
 0xfca   :  { %685 = vrot.lane.b32.xlu0 %v7575_v59, %s7297_s6 }
0x1034   :  { %v975_v62 = vpop.permute.xlu0 %974 }
0x1035   :  { %v7644_v59 = vmul.f32 %v6922_v46, %v975_v62 }
0x1037   :  { %979 = vrot.lane.b32.xlu0 %v7644_v59, %s7297_s6  ;;  %v1095_v60 = vpack.c.bf16 %v7644_v59, %v7644_v59 }
0x1038   :  { %v392_v61 = vpop.permute.xlu0 %391 }
0x1039   :  { %395 = vst.msk [vmem:[#allocation2 + $0x8] sm:$0xff] %vm125_vm2, %v392_v61  ;;  %1101 = vrot.lane.b32.xlu1 %v1095_v60, %s7297_s6 }
0x103c   :  { %v686_v63 = vpop.permute.xlu0 %685 }
0x103d   :  { %689 = vst.msk [vmem:[#allocation2 + $0x18] sm:$0xff] %vm125_vm2, %v686_v63 }
0x1040   :  { %v7655_v2 = vld [vmem:[#allocation2 + $0x8] sm:$0xff] }
0x1041   :  { %v990_v4 = vpack.c.bf16 %v7655_v2, %v7653_v0 }
0x1043   :  { %6302 = vmatmul.mubr.msk.bf16.vlgmr.msra.gmra.mrb[24].mxu1 %vm125_vm2, %v990_v4 }
0x1044   :  { %6305 = vmatprep.mubr.msk.bf16.mxu1 %vm7294_vm0, %v7293_v1  ;;  %6336 = vmatpush3.bf16.msra.mxu1 %v6867_v3  ;;  %v7669_v6 = vld [vmem:[#allocation2 + $0x18] sm:$0xff] }
0x1045   :  { %6337 = vmatprep.subr.bf16.mxu1 %v7293_v1  ;;  %v991_v8 = vpack.c.bf16 %v7669_v6, %v7671_v7 }
0x1048   :  { %6338 = vmatpush3.bf16.msra.mxu1 %v6868_v5 }
0x1049   :  { %6351 = vmatprep.subr.bf16.mxu1 %v7293_v1 }
0x104b   :  { %6306 = vmatmul.mubr.msk.bf16.gmra.mrb[28].mxu1 %vm125_vm2, %v991_v8  ;;  %v7735_v8 = vld [vmem:[%s8801_s15] ss:$0 sm:$0xff]  ;;  %s5744_s15 = sld [smem:[#allocation5 + $0x1]] }
0x104c   :  { %6309 = vmatprep.mubr.msk.bf16.mxu1 %vm7294_vm0, %v7293_v1 }
0x1051   :  { %p5745_p5 = scmp.ne.s32.totalorder %s5744_s15, 0 }
0x1052   :  { %s8827_s27 = sld [smem:[#allocation10_spill]] (!%p5745_p5)  ;;  %vm7300_vm7 = vmmov (!%p5745_p5), 0  }
0x10a9   :  { %v980_v10 = vpop.permute.xlu0 %979 }
0x10aa   :  { %983 = vst.msk [vmem:[#allocation2 + $0x28] sm:$0xff] %vm125_vm2, %v980_v10 }
0x10ab   :  { %v1102_v11 = vpop.permute.xlu1 %1101 }
0x10ac   :  { %6318 = vmatmul.mubr.msk.bf16.vlgmr.msra.gmra.mrb[24].mxu0 %vm125_vm2, %v1102_v11 }
0x10ad   :  { %6325 = vmatprep.mubr.msk.bf16.mxu0 %vm7294_vm0, %v7293_v1 }
0x10b1   :  { %v7685_v13 = vld [vmem:[#allocation2 + $0x28] sm:$0xff] }
0x10b2   :  { %v992_v14 = vpack.c.bf16 %v7685_v13, %v7683_v12 }
0x10b4   :  { %6310 = vmatmul.mubr.msk.bf16.gmra.mrb[32].mxu1 %vm125_vm2, %v992_v14  ;;  %v6869_v14 = vld [vmem:[%s8798_s12] sm:$0xff]  }
0x10b5   :  { %6339 = vmatprep.mubr.msk.bf16.mxu1 %vm7294_vm0, %v7293_v1  ;;  %6322 = vmatpush3.bf16.msra.mxu0 %v6869_v14 }
0x10b6   :  { %6323 = vmatprep.subr.bf16.mxu0 %v7293_v1 }
0x10bc   :  { %6340 = vmatmul.mubr.msk.bf16.vlgmr.msra.gmra.mrb[36].mxu1 %vm125_vm2, %v1102_v11 }
0x10bd   :  { %6355 = vmatprep.mubr.msk.bf16.mxu1 %vm7294_vm0, %v7293_v1 }
0x1116   :  { %v1052_v15 = vpop.f32.mrb[24].mxu1 }
0x1117   :  { %v6303_v16 = vpop.f32.mrb[25].mxu1  ;;  %v7698_v24 = vadd.f32 %v5722_v23, %v1052_v15  ;;  %v6870_v15 = vld [vmem:[%s8798_s12 + $0x8] sm:$0xff]  }
0x1118   :  { %v1055_v17 = vpop.f32.mrb[26].mxu1  ;;  %6324 = vmatpush3.bf16.msra.mxu0 %v6870_v15  ;;  %v1091_v16 = vld [vmem:[%s8825_s25] sm:$0xf] }
0x1119   :  { %v6304_v18 = vpop.f32.mrb[27].mxu1  ;;  %v7700_v25 = vadd.f32 %v5722_v23, %v1055_v17  ;;  %6329 = vmatprep.subr.bf16.mxu0 %v7293_v1  ;;  %1093 = vst.msk [vmem:[#allocation3] sm:$0xf] %vm1092_vm4, %v1091_v16 }
0x111e   :  { %v1060_v19 = vpop.f32.mrb[28].mxu1 }
0x111f   :  { %v6307_v20 = vpop.f32.mrb[29].mxu1  ;;  %v7702_v26 = vadd.f32 %v5722_v23, %v1060_v19 }
0x1120   :  { %v1063_v21 = vpop.f32.mrb[30].mxu1 }
0x1121   :  { %v6308_v22 = vpop.f32.mrb[31].mxu1  ;;  %v7704_v27 = vadd.f32 %v5722_v23, %v1063_v21 }
0x117f   :  { %v1152_v28 = vpop.f32.mrb[24].mxu0 }
0x1180   :  { %v1158_v30 = vadd.f32 %v1152_v28, %v7698_v24  ;;  %v1159_v31 = vadd.f32 %v1152_v28, %v7700_v25  ;;  %v1160_v32 = vadd.f32 %v1152_v28, %v7702_v26  ;;  %v1161_v34 = vadd.f32 %v1152_v28, %v7704_v27  ;;  %v6319_v35 = vpop.f32.mrb[25].mxu0 }
0x1181   :  { %v1155_v36 = vpop.f32.mrb[26].mxu0 }
0x1182   :  { %6925 = vtanh.f32 %v1158_v30  ;;  %v6320_v37 = vpop.f32.mrb[27].mxu0 }
0x1183   :  { %6927 = vtanh.f32 %v1159_v31 }
0x1184   :  { %6929 = vtanh.f32 %v1160_v32 }
0x1187   :  { %v1068_v38 = vpop.f32.mrb[32].mxu1 }
0x1188   :  { %v7710_v39 = vadd.f32 %v5722_v23, %v1068_v38  ;;  %v6311_v40 = vpop.f32.mrb[33].mxu1 }
0x1189   :  { %v1071_v41 = vpop.f32.mrb[34].mxu1 }
0x118a   :  { %v1162_v42 = vadd.f32 %v1152_v28, %v7710_v39  ;;  %v7713_v43 = vadd.f32 %v5722_v23, %v1071_v41  ;;  %v6312_v44 = vpop.f32.mrb[35].mxu1 }
0x118c   :  { %v6926_v46 = vpop.eup %6925  ;;  %6931 = vtanh.f32 %v1162_v42  ;;  %v1163_v47 = vadd.f32 %v1152_v28, %v7713_v43 }
0x118d   :  { %v6928_v48 = vpop.eup %6927  ;;  %v1170_v9 = vmul.f32 %v6926_v46, %v7718_v45 }
0x118e   :  { %v6930_v49 = vpop.eup %6929  ;;  %6933 = vtanh.f32 %v1163_v47  ;;  %v1171_v50 = vmul.f32 %v6928_v48, %v7718_v45 }
0x118f   :  { %v1408_v51 = vpop.f32.mrb[36].mxu1  ;;  %v1176_v52 = vsel %vm125_vm2, %v1170_v9, 0.0  ;;  %6935 = vtanh.f32 %v1161_v34  ;;  %v1172_v29 = vmul.f32 %v6930_v49, %v7718_v45 }
0x1190   :  { %v6341_v53 = vpop.f32.mrb[37].mxu1  ;;  %v1179_v33 = vsel %vm125_vm2, %v1171_v50, 0.0  ;;  %1177 = vadd.xlane.f32.xlu0 %v1176_v52  ;;  %v7739_v11 = vadd.f32 %v7735_v8, %v1408_v51 }
0x1191   :  { %1180 = vadd.xlane.f32.xlu1 %v1179_v33  ;;  %v1411_v54 = vpop.f32.mrb[38].mxu1  ;;  %v1182_v56 = vsel %vm125_vm2, %v1172_v29, 0.0 }
0x1192   :  { %v6342_v55 = vpop.f32.mrb[39].mxu1 }
0x1195   :  { %1183 = vadd.xlane.f32.xlu1 %v1182_v56 }
0x1196   :  { %v6932_v58 = vpop.eup %6931 }
0x1197   :  { %v1174_v62 = vmul.f32 %v6932_v58, %v7718_v45 }
0x1198   :  { %v6934_v60 = vpop.eup %6933 }
0x1199   :  { %v1188_v61 = vsel %vm125_vm2, %v1174_v62, 0.0  ;;  %v1175_v63 = vmul.f32 %v6934_v60, %v7718_v45  ;;  %v6936_v3 = vpop.eup %6935 }
0x119a   :  { %1189 = vadd.xlane.f32.xlu0 %v1188_v61  ;;  %v1173_v5 = vmul.f32 %v6936_v3, %v7718_v45 }
0x119b   :  { %v1191_v4 = vsel %vm125_vm2, %v1175_v63, 0.0 }
0x119c   :  { %v1185_v10 = vsel %vm125_vm2, %v1173_v5, 0.0 }
0x119e   :  { %1192 = vadd.xlane.f32.xlu0 %v1191_v4 }
0x11a2   :  { %1186 = vadd.xlane.f32.xlu0 %v1185_v10 }
0x11a6   :  { %1422 = vrot.lane.b32.xlu1 %v7739_v11, %s7296_s24 }
0x121d   :  { %v1178_v17 = vpop.xlane.xlu0 %1177 }
0x121e   :  { %v1181_v19 = vpop.xlane.xlu1 %1180 }
0x1222   :  { %v1184_v23 = vpop.xlane.xlu1 %1183 }
0x1227   :  { %v1190_v18 = vpop.xlane.xlu0 %1189 }
0x1228   :  { %v1194_v22 = vmax.f32 %v1178_v17, %v1190_v18 }
0x122b   :  { %v1193_v20 = vpop.xlane.xlu0 %1192 }
0x122c   :  { %v1195_v21 = vmax.f32 %v1181_v19, %v1193_v20 }
0x122e   :  { %v1196_v30 = vmax.f32 %v1194_v22, %v1195_v21 }
0x122f   :  { %v1187_v28 = vpop.xlane.xlu0 %1186 }
0x1230   :  { %v1197_v31 = vmax.f32 %v1184_v23, %v1187_v28 }
0x1232   :  { %v1198_v32 = vmax.f32 %v1196_v30, %v1197_v31 }
0x1234   :  { %v1199_v34 = vsub.f32 %v1178_v17, %v1198_v32  ;;  %v1200_v35 = vsub.f32 %v1181_v19, %v1198_v32  ;;  %v1201_v36 = vsub.f32 %v1184_v23, %v1198_v32  ;;  %v1202_v37 = vsub.f32 %v1187_v28, %v1198_v32 }
0x1235   :  { %v1203_v41 = vsub.f32 %v1190_v18, %v1198_v32  ;;  %v1204_v44 = vsub.f32 %v1193_v20, %v1198_v32 }
0x1236   :  { %v1205_v38 = vmul.f32 1.442695, %v1199_v34  ;;  %v1207_v40 = vmul.f32 1.442695, %v1200_v35  ;;  %v1209_v42 = vmul.f32 1.442695, %v1201_v36 }
0x1237   :  { %v1211_v46 = vmul.f32 1.442695, %v1202_v37  ;;  %v1213_v47 = vmul.f32 1.442695, %v1203_v41  ;;  %v1215_v48 = vmul.f32 1.442695, %v1204_v44 }
0x1238   :  { %6937 = vpow2.f32 %v1205_v38  ;;  %v6871_v35 = vld [vmem:[%s8797_s11] sm:$0xff]   ;;  %v1094_v38 = vld [vmem:[#allocation3] sm:$0xf]  ;;  %v6873_v41 = vld [vmem:[%s8803_s17 + $0x8] sm:$0xff]  }
0x1239   :  { %6939 = vpow2.f32 %v1207_v40  ;;  %v6957_v37 = vld [vmem:[%s8806_s20] sm:$0xff] }
0x123a   :  { %6941 = vpow2.f32 %v1209_v42  ;;  %v6872_v40 = vld [vmem:[%s8803_s17] sm:$0xff]  }
0x123b   :  { %6943 = vpow2.f32 %v1211_v46 }
0x123c   :  { %6945 = vpow2.f32 %v1213_v47 }
0x123d   :  { %6947 = vpow2.f32 %v1215_v48  ;;  %v7788_v48 = vld [vmem:[%s8826_s9] ss:$0 sm:$0xff] }
0x1242   :  { %v6938_v9 = vpop.eup %6937 }
0x1243   :  { %v6940_v49 = vpop.eup %6939 }
0x1244   :  { %v1217_v50 = vadd.f32 %v6940_v49, %v6938_v9  ;;  %v6942_v51 = vpop.eup %6941 }
0x1245   :  { %v6944_v53 = vpop.eup %6943 }
0x1246   :  { %v1218_v52 = vadd.f32 %v6942_v51, %v1217_v50  ;;  %v6946_v29 = vpop.eup %6945 }
0x1247   :  { %v6948_v55 = vpop.eup %6947 }
0x1248   :  { %v1219_v33 = vadd.f32 %v6944_v53, %v1218_v52 }
0x124a   :  { %v1220_v54 = vadd.f32 %v6946_v29, %v1219_v33 }
0x124c   :  { %v1221_v56 = vadd.f32 %v6948_v55, %v1220_v54 }
0x124e   :  { %6949 = vrcp.f32 %v1221_v56 }
0x1258   :  { %v6950_v58 = vpop.eup %6949 }
0x1259   :  { %v1226_v62 = vmul.f32 %v6950_v58, %v6944_v53  ;;  %v1223_v60 = vmul.f32 %v6950_v58, %v6938_v9  ;;  %v1224_v61 = vmul.f32 %v6950_v58, %v6940_v49  ;;  %v1225_v63 = vmul.f32 %v6950_v58, %v6942_v51 }
0x125a   :  { %v1227_v3 = vmul.f32 %v6950_v58, %v6946_v29  ;;  %v1228_v15 = vmul.f32 %v6950_v58, %v6948_v55 }
0x125b   :  { %v1229_v4 = vmul.f32 %v1223_v60, %v7653_v0  ;;  %v1230_v5 = vmul.f32 %v1224_v61, %v7655_v2  ;;  %v1231_v10 = vmul.f32 %v1225_v63, %v7671_v7  ;;  %v1232_v14 = vmul.f32 %v1226_v62, %v7669_v6  ;;  %v1423_v63 = vpop.permute.xlu1 %1422 }
0x125c   :  { %v1233_v19 = vmul.f32 %v1227_v3, %v7683_v12  ;;  %v1234_v22 = vmul.f32 %v1228_v15, %v7685_v13  ;;  %v6876_v15 = vld [vmem:[%s8804_s18 + $0x8] sm:$0xff]  }
0x125d   :  { %v1235_v16 = vsel %vm125_vm2, %v1229_v4, 0.0  ;;  %v1236_v17 = vsel %vm125_vm2, %v1230_v5, 0.0  ;;  %v1238_v20 = vsel %vm125_vm2, %v1231_v10, 0.0  ;;  %v1240_v23 = vsel %vm125_vm2, %v1232_v14, 0.0  ;;  %v6875_v10 = vld [vmem:[%s8802_s16] sm:$0xff]  }
0x125e   :  { %v1237_v18 = vadd.f32 %v1236_v17, %v1235_v16  ;;  %v1242_v30 = vsel %vm125_vm2, %v1233_v19, 0.0  ;;  %v1244_v32 = vsel %vm125_vm2, %v1234_v22, 0.0 }
0x1260   :  { %v1239_v21 = vadd.f32 %v1238_v20, %v1237_v18 }
0x1262   :  { %v1241_v28 = vadd.f32 %v1240_v23, %v1239_v21 }
0x1264   :  { %v1243_v31 = vadd.f32 %v1242_v30, %v1241_v28 }
0x1266   :  { %v1245_v34 = vadd.f32 %v1244_v32, %v1243_v31 }
0x1268   :  { %v1246_v36 = vpack.c.bf16 %v1245_v34, %v1245_v34 }
0x126a   :  { %6326 = vmatmul.mubr.msk.bf16.vlgmr.msra.gmra.mrb[28].mxu0 %vm125_vm2, %v1246_v36 }
0x126b   :  { %6330 = vmatpush3.bf16.msra.mxu0 %v6871_v35  ;;  %6331 = vmatprep.mubr.msk.bf16.mxu0 %vm7294_vm0, %v6957_v37 }
0x126c   :  { %6343 = vmatprep.subr.bf16.mxu0 %v6957_v37 }
0x1272   :  { %6332 = vmatmul.mubr.msk.bf16.vlgmr.msra.gmra.mrb[32].mxu0 %vm175_vm1, %v1094_v38 }
0x1273   :  { %6344 = vmatpush3.bf16.msra.mxu0 %v6872_v40  ;;  %6347 = vmatprep.mubr.msk.bf16.mxu0 %vm7294_vm0, %v6957_v37 }
0x1274   :  { %6345 = vmatprep.subr.bf16.mxu0 %v6957_v37 }
0x1277   :  { %6346 = vmatpush3.bf16.msra.mxu0 %v6873_v41 }
0x1278   :  { %6359 = vmatprep.subr.bf16.mxu0 %v6957_v37 }
0x127a   :  { %6348 = vmatmul.mubr.msk.bf16.vlgmr.msra.gmra.mrb[36].mxu0 %vm125_vm2, %v1246_v36  ;;  %v7818_v36 = vld [vmem:[%s8805_s19] ss:$0 sm:$0xff] }
0x127b   :  { %6361 = vmatprep.mubr.msk.bf16.mxu0 %vm7294_vm0, %v6957_v37  ;;  %6360 = vmatpush3.bf16.msra.mxu0 %v6875_v10 }
0x1282   :  { %6362 = vmatmul.mubr.msk.bf16.vlgmr.msra.gmra.mrb[40].mxu0 %vm175_vm1, %v1094_v38 }
0x133d   :  { %v1302_v42 = vpop.f32.mrb[28].mxu0 }
0x133e   :  { %v6327_v44 = vpop.f32.mrb[29].mxu0 }
0x133f   :  { %v1305_v46 = vpop.f32.mrb[30].mxu0 }
0x1340   :  { %v6328_v47 = vpop.f32.mrb[31].mxu0 }
0x1345   :  { %v1351_v9 = vpop.f32.mrb[32].mxu0 }
0x1346   :  { %v1352_v49 = vadd.f32 %v1351_v9, %v1302_v42  ;;  %v6333_v50 = vpop.f32.mrb[33].mxu0 }
0x1347   :  { %v1354_v51 = vpop.f32.mrb[34].mxu0  ;;  %v7299_v50 = vmov (!%p5745_p5), 0.0  }
0x1348   :  { %v1357_v52 = vadd.f32 %v7788_v48, %v1352_v49  ;;  %v6334_v53 = vpop.f32.mrb[35].mxu0  ;;  %v6958_v49 = vld [vmem:[%s8827_s27] sm:$0xff] (!%p5745_p5)   ;;  %6365 = vmatprep.subr.bf16.mxu0 (!%p5745_p5), %v7299_v50  ;;  %v6959_v51 = vld [vmem:[%s8827_s27 + $0x8] sm:$0xff] (!%p5745_p5)   ;;  %6381 = vmatprep.mubr.msk.bf16.mxu0 (!%p5745_p5), %vm7300_vm7, %v7299_v50 }
0x1349   :  { %6366 = vmatpush3.bf16.msra.mxu0 (!%p5745_p5), %v6958_v49  ;;  %v6961_v53 = vld [vmem:[%s8827_s27 + $0x18] sm:$0xff] (!%p5745_p5)  }
0x134a   :  { %v1414_v33 = vadd.f32 %v7739_v11, %v1357_v52  ;;  %v6874_v11 = vld [vmem:[%s8804_s18] sm:$0xff]   ;;  %6367 = vmatprep.subr.bf16.mxu0 (!%p5745_p5), %v7299_v50 }
0x134b   :  { %6352 = vmatpush3.bf16.msra.mxu1 %v6874_v11  ;;  %v7301_v11 = vmov (!%p5745_p5), 1.0|1.0  }
0x134c   :  { %v5734_v29 = vmul.f32 -1.442695, %v1414_v33  ;;  %6353 = vmatprep.subr.bf16.mxu1 %v6957_v37  ;;  %v6962_v33 = vld [vmem:[%s8827_s27 + $0x20] sm:$0xff] (!%p5745_p5)  }
0x134d   :  { %v1498_v54 = vpop.f32.mrb[36].mxu0  ;;  %6368 = vmatpush3.bf16.msra.mxu0 (!%p5745_p5), %v6959_v51 }
0x134e   :  { %6951 = vpow2.f32 %v5734_v29  ;;  %v6349_v55 = vpop.f32.mrb[37].mxu0  ;;  %6369 = vmatprep.subr.bf16.mxu0 (!%p5745_p5), %v7299_v50  ;;  %v6963_v29 = vld [vmem:[%s8827_s27 + $0x28] sm:$0xff] (!%p5745_p5)  }
0x134f   :  { %v1501_v56 = vpop.f32.mrb[38].mxu0  ;;  %6354 = vmatpush3.bf16.msra.mxu1 %v6876_v15 }
0x1350   :  { %v6350_v58 = vpop.f32.mrb[39].mxu0 }
0x1355   :  { %v1604_v23 = vpop.f32.mrb[40].mxu0 }
0x1356   :  { %v6363_v28 = vpop.f32.mrb[41].mxu0 }
0x1357   :  { %v1607_v30 = vpop.f32.mrb[42].mxu0 }
0x1358   :  { %v6952_v62 = vpop.eup %6951  ;;  %v6364_v31 = vpop.f32.mrb[43].mxu0 }
0x1359   :  { %v1418_v60 = vadd.f32 1.0, %v6952_v62 }
0x135b   :  { %6953 = vrcp.f32 %v1418_v60  ;;  %v6965_v60 = vld [vmem:[%s8827_s27 + $0x38] sm:$0xff] (!%p5745_p5)  }
0x1365   :  { %v6954_v61 = vpop.eup %6953 }
0x1366   :  { %v1425_v3 = vmul.f32 %v6954_v61, %v1423_v63  ;;  %v1432_v17 = vsub.f32 1.0, %v6954_v61 }
0x1368   :  { %1427 = vrot.lane.b32.xlu0 %v1425_v3, %s7296_s24 }
0x13da   :  { %v1428_v4 = vpop.permute.xlu0 %1427 }
0x13db   :  { %v1430_v5 = vadd.f32 %v1428_v4, %v1357_v52  ;;  %v6960_v52 = vld [vmem:[%s8827_s27 + $0x10] sm:$0xff] (!%p5745_p5)  }
0x13dc   :  { %6370 = vmatpush3.bf16.msra.mxu0 (!%p5745_p5), %v6960_v52 }
0x13dd   :  { %6955 = vtanh.f32 %v1430_v5  ;;  %6371 = vmatprep.subr.bf16.mxu0 (!%p5745_p5), %v7299_v50 }
0x13e0   :  { %6372 = vmatpush3.bf16.msra.mxu0 (!%p5745_p5), %v6961_v53 }
0x13e1   :  { %6373 = vmatprep.subr.bf16.mxu0 (!%p5745_p5), %v7299_v50 }
0x13e4   :  { %6374 = vmatpush3.bf16.msra.mxu0 (!%p5745_p5), %v6962_v33 }
0x13e5   :  { %6375 = vmatprep.subr.bf16.mxu0 (!%p5745_p5), %v7299_v50 }
0x13e7   :  { %v6956_v14 = vpop.eup %6955 }
0x13e8   :  { %1434 = vrot.lane.b32.xlu1 %v6956_v14, %s7298_s14  ;;  %6376 = vmatpush3.bf16.msra.mxu0 (!%p5745_p5), %v6963_v29 }
0x13e9   :  { %6377 = vmatprep.subr.bf16.mxu0 (!%p5745_p5), %v7299_v50 }
0x13ec   :  { %1438 = vrot.lane.b32.xlu1 %v7644_v59, %s7296_s24 }
0x145a   :  { %v1435_v16 = vpop.permute.xlu1 %1434 }
0x145b   :  { %v1437_v19 = vmul.f32 %v1435_v16, %v1432_v17 }
0x145e   :  { %v1439_v18 = vpop.permute.xlu1 %1438 }
0x145f   :  { %v1441_v20 = vmul.f32 %v6954_v61, %v1439_v18 }
0x1461   :  { %v7806_v21 = vadd.f32 %v1441_v20, %v1437_v19 }
0x1463   :  { %v1443_v22 = vpack.c.bf16 %v7806_v21, %v7806_v21 }
0x1465   :  { %1505 = vrot.lane.b32.xlu0 %v1443_v22, %s7298_s14 }
0x14d7   :  { %v7811_v32 = vpop.permute.xlu0 %1505 }
0x14d8   :  { %6356 = vmatmul.mubr.msk.bf16.vlgmr.msra.gmra.mrb[40].mxu1 %vm125_vm2, %v7811_v32 }
0x15ab   :  { %v1556_v59 = vpop.f32.mrb[40].mxu1 }
0x15ac   :  { %v1557_v34 = vadd.f32 %v1556_v59, %v1498_v54  ;;  %v6357_v35 = vpop.f32.mrb[41].mxu1  ;;  %1618 = sbr.rel (%p5745_p5) target bundleno = 6210 (0x1842), region = 81  ;;  %v6964_v54 = vld [vmem:[%s8827_s27 + $0x30] sm:$0xff] (!%p5745_p5)  }
0x15ad   :  { %v1559_v37 = vpop.f32.mrb[42].mxu1  ;;  %6378 = vmatpush3.bf16.msra.mxu0 (!%p5745_p5), %v6964_v54 }
0x15ae   :  { %v1610_v38 = vadd.f32 %v1604_v23, %v1557_v34  ;;  %v6358_v40 = vpop.f32.mrb[43].mxu1  ;;  %6379 = vmatprep.subr.bf16.mxu0 (!%p5745_p5), %v7299_v50 }
0x15b0   :  { %v1611_v41 = vadd.f32 %v7818_v36, %v1610_v38 }
0x15b1   :  { %6380 = vmatpush3.bf16.msra.mxu0 (!%p5745_p5), %v6965_v60 }
0x15b2   :  { %5743 = vst [vmem:[%s8806_s20 + $0x8] sm:$0xff] %v1611_v41  ;;  %v1619_v42 = vsel (!%p5745_p5), %vm1090_vm3, %v1611_v41, -1e+30 }
0x15b3   :  { %1620 = vmax.xlane.f32.xlu0 %v1619_v42 }
0x1640   :  { %v1621_v44 = vpop.xlane.xlu0 %1620 }
0x1641   :  { %vm1622_vm5 = vcmp.ge.f32.partialorder %v1619_v42, %v1621_v44 }
0x1642   :  { %v1623_v46 = vsel %vm1622_vm5, %v7636_v57, 128 }
0x1643   :  { %v1625_v47 = vshra.s32 %v1623_v46, 16  ;;  %v1624_v55 = vand.u32 65535, %v1623_v46 }
0x1645   :  { %v1627_v9 = vcvt.s32.f32 %v1625_v47  ;;  %v1626_v58 = vcvt.s32.f32 %v1624_v55 }
0x1647   :  { %1628 = vmin.xlane.f32.xlu0 %v1627_v9 }
0x16d4   :  { %v1629_v56 = vpop.xlane.xlu0 %1628 }
0x16d5   :  { %vm1630_vm6 = vcmp.eq.f32.partialorder %v1627_v9, %v1629_v56  ;;  %v1635_v61 = vcvt.f32.s32 %v1629_v56 }
0x16d6   :  { %v1631_v62 = vsel %vm1630_vm6, %v1626_v58, inf }
0x16d7   :  { %1632 = vmin.xlane.f32.xlu1 %v1631_v62  ;;  %v1636_v3 = vshll.u32 %v1635_v61, 16 }
0x1764   :  { %v1633_v63 = vpop.xlane.xlu1 %1632 }
0x1765   :  { %v1634_v4 = vcvt.f32.s32 %v1633_v63 }
0x1767   :  { %v1637_v5 = vadd.s32 %v1636_v3, %v1634_v4 }
0x1769   :  { %vm1638_vm8 = vcmp.eq.s32.totalorder %v7636_v57, %v1637_v5 }
0x176a   :  { %vm5755_vm9 = vmpackc.low %vm1638_vm8, %vm1638_vm8 }
0x176b   :  { %6382 = vmatmul.mubr.msk.bf16.vlgmr.msra.gmra.mrb[0].mxu0 %vm5755_vm9, %v7301_v11 }
0x183e   :  { %v1740_v10 = vpop.f32.mrb[0].mxu0 }
0x183f   :  { %v1746_v14 = vpack.c.bf16 %v1740_v10, %v1740_v10  ;;  %v6383_v15 = vpop.f32.mrb[1].mxu0 }
0x1840   :  { %v1743_v16 = vpop.f32.mrb[2].mxu0 }
0x1841   :  { %1747 = vst.msk [vmem:[#allocation3] sm:$0xf] %vm1092_vm4, %v1746_v14  ;;  %v6384_v17 = vpop.f32.mrb[3].mxu0 }
0x1842 PF:  { %s5757_s1 = sld [smem:[#allocation5 + $0x1]] }
0x1848   :  { %p5758_p6 = scmp.eq.s32.totalorder %s5757_s1, 0 }
0x1849   :  { %s8828_s26 = sld [smem:[#allocation9_spill]] (!%p5758_p6) }
0x184a   :  { %1752 = sbr.rel (%p5758_p6) target bundleno = 6225 (0x1851), region = 85 }
0x184f   :  { %v5759_v18 = vld [vmem:[%s8828_s26 + $0x4] sm:$0xf] (!%p5758_p6) }
0x1850   :  { %1755 = vst.msk [vmem:[#allocation3] sm:$0xf] (!%p5758_p6), %vm1092_vm4, %v5759_v18 }
0x1851 PF:  { %6385 = vmatprep.subr.bf16.mxu0 %v7293_v1  ;;  %v6966_v19 = vld [vmem:[%s8793_s7] sm:$0xff]   ;;  %6389 = vmatprep.mubr.msk.bf16.mxu0 %vm7294_vm0, %v7293_v1  ;;  %v6967_v20 = vld [vmem:[%s8793_s7 + $0x8] sm:$0xff]   ;;  %s5781_s28 = sld [smem:[#allocation5 + $0x2]] }
0x1852   :  { %6393 = vmatprep.subr.bf16.mxu1 %v7293_v1  ;;  %6397 = vmatprep.mubr.msk.bf16.mxu1 %vm7294_vm0, %v7293_v1  ;;  %v6968_v62 = vld [vmem:[%s8797_s11] sm:$0xff]   ;;  %v6971_v3 = vld [vmem:[%s8798_s12 + $0x8] sm:$0xff]  }
0x1853   :  { %6386 = vmatpush3.bf16.msra.mxu0 %v6966_v19  ;;  %v6969_v60 = vld [vmem:[%s8798_s12] sm:$0xff]   ;;  %v6972_v4 = vld [vmem:[%s8803_s17 + $0x8] sm:$0xff]  }
0x1854   :  { %6387 = vmatprep.subr.bf16.mxu0 %v7293_v1  ;;  %6394 = vmatpush3.bf16.msra.mxu1 %v6969_v60  ;;  %v6970_v63 = vld [vmem:[%s8803_s17] sm:$0xff]  }
0x1855   :  { %6395 = vmatprep.subr.bf16.mxu1 %v7293_v1 }
0x1857   :  { %6388 = vmatpush3.bf16.msra.mxu0 %v6967_v20  ;;  %v7899_v61 = vld [vmem:[#allocation3] sm:$0xf]  ;;  %p5782_p7 = scmp.ne.s32.totalorder %s5781_s28, 0 }
0x1858   :  { %6401 = vmatprep.subr.bf16.mxu0 %v7293_v1  ;;  %6396 = vmatpush3.bf16.msra.mxu1 %v6971_v3  ;;  %s8829_s0 = sld [smem:[#allocation10_spill]] (!%p5782_p7)  ;;  %vm7303_vm12 = vmmov (!%p5782_p7), 0  }
0x1859   :  { %6407 = vmatprep.subr.bf16.mxu1 %v7293_v1 }
0x185a   :  { %6390 = vmatmul.mubr.msk.bf16.vlgmr.msra.gmra.mrb[0].mxu0 %vm125_vm2, %v7811_v32 }
0x185b   :  { %6403 = vmatprep.mubr.msk.bf16.mxu0 %vm7294_vm0, %v7293_v1  ;;  %6402 = vmatpush3.bf16.msra.mxu0 %v6968_v62 }
0x185c   :  { %6415 = vmatprep.subr.bf16.mxu0 %v7293_v1 }
0x1862   :  { %6404 = vmatmul.mubr.msk.bf16.vlgmr.msra.gmra.mrb[4].mxu0 %vm175_vm1, %v7899_v61 }
0x1863   :  { %6416 = vmatpush3.bf16.msra.mxu0 %v6970_v63  ;;  %6419 = vmatprep.mubr.msk.bf16.mxu0 %vm7294_vm0, %v7293_v1 }
0x1864   :  { %6417 = vmatprep.subr.bf16.mxu0 %v7293_v1 }
0x1867   :  { %6418 = vmatpush3.bf16.msra.mxu0 %v6972_v4 }
0x1868   :  { %6431 = vmatprep.subr.bf16.mxu0 %v7293_v1 }
0x192d   :  { %v1807_v22 = vpop.f32.mrb[0].mxu0 }
0x192e   :  { %v6391_v23 = vpop.f32.mrb[1].mxu0  ;;  %v1817_v28 = vadd.f32 %v1807_v22, %v7710_v39  ;;  %v1813_v30 = vadd.f32 %v1807_v22, %v7698_v24  ;;  %v1818_v31 = vadd.f32 %v1807_v22, %v7713_v43  ;;  %v1814_v34 = vadd.f32 %v1807_v22, %v7700_v25 }
0x192f   :  { %v1810_v59 = vpop.f32.mrb[2].mxu0  ;;  %v1816_v37 = vadd.f32 %v1807_v22, %v7704_v27  ;;  %v1815_v38 = vadd.f32 %v1807_v22, %v7702_v26 }
0x1930   :  { %v6392_v35 = vpop.f32.mrb[3].mxu0  ;;  %6978 = vtanh.f32 %v1817_v28 }
0x1931   :  { %6980 = vtanh.f32 %v1813_v30 }
0x1932   :  { %6982 = vtanh.f32 %v1818_v31 }
0x1933   :  { %6984 = vtanh.f32 %v1814_v34 }
0x1934   :  { %6986 = vtanh.f32 %v1816_v37 }
0x1935   :  { %6988 = vtanh.f32 %v1815_v38 }
0x193a   :  { %v6979_v40 = vpop.eup %6978 }
0x193b   :  { %v6981_v41 = vpop.eup %6980  ;;  %v1829_v42 = vmul.f32 %v6979_v40, %v7718_v45 }
0x193c   :  { %v6983_v44 = vpop.eup %6982  ;;  %v1825_v46 = vmul.f32 %v6981_v41, %v7718_v45 }
0x193d   :  { %v6985_v47 = vpop.eup %6984  ;;  %v1843_v9 = vsel %vm125_vm2, %v1829_v42, 0.0  ;;  %v1830_v49 = vmul.f32 %v6983_v44, %v7718_v45 }
0x193e   :  { %v6987_v50 = vpop.eup %6986  ;;  %1844 = vadd.xlane.f32.xlu1 %v1843_v9  ;;  %v1831_v51 = vsel %vm125_vm2, %v1825_v46, 0.0  ;;  %v1826_v52 = vmul.f32 %v6985_v47, %v7718_v45 }
0x193f   :  { %v6989_v53 = vpop.eup %6988  ;;  %1832 = vadd.xlane.f32.xlu0 %v1831_v51  ;;  %v1846_v33 = vsel %vm125_vm2, %v1830_v49, 0.0  ;;  %v1828_v29 = vmul.f32 %v6987_v50, %v7718_v45 }
0x1940   :  { %v1834_v54 = vsel %vm125_vm2, %v1826_v52, 0.0  ;;  %v1827_v55 = vmul.f32 %v6989_v53, %v7718_v45 }
0x1941   :  { %v1840_v56 = vsel %vm125_vm2, %v1828_v29, 0.0 }
0x1942   :  { %1847 = vadd.xlane.f32.xlu1 %v1846_v33  ;;  %v1837_v58 = vsel %vm125_vm2, %v1827_v55, 0.0 }
0x1943   :  { %1835 = vadd.xlane.f32.xlu0 %v1834_v54 }
0x1946   :  { %1841 = vadd.xlane.f32.xlu1 %v1840_v56 }
0x1947   :  { %1838 = vadd.xlane.f32.xlu0 %v1837_v58 }
0x19cb   :  { %v1845_v5 = vpop.xlane.xlu1 %1844 }
0x19cc   :  { %v1833_v11 = vpop.xlane.xlu0 %1832 }
0x19cd   :  { %v1849_v16 = vmax.f32 %v1833_v11, %v1845_v5 }
0x19cf   :  { %v1848_v10 = vpop.xlane.xlu1 %1847 }
0x19d0   :  { %v1836_v14 = vpop.xlane.xlu0 %1835 }
0x19d1   :  { %v1850_v15 = vmax.f32 %v1836_v14, %v1848_v10 }
0x19d3   :  { %v1842_v17 = vpop.xlane.xlu1 %1841  ;;  %v1851_v19 = vmax.f32 %v1849_v16, %v1850_v15 }
0x19d4   :  { %v1839_v18 = vpop.xlane.xlu0 %1838 }
0x19d5   :  { %v1852_v20 = vmax.f32 %v1839_v18, %v1842_v17 }
0x19d7   :  { %v1853_v22 = vmax.f32 %v1851_v19, %v1852_v20 }
0x19d9   :  { %v1854_v23 = vsub.f32 %v1833_v11, %v1853_v22  ;;  %v1855_v28 = vsub.f32 %v1836_v14, %v1853_v22  ;;  %v1856_v30 = vsub.f32 %v1839_v18, %v1853_v22  ;;  %v1857_v31 = vsub.f32 %v1842_v17, %v1853_v22 }
0x19da   :  { %v1858_v35 = vsub.f32 %v1845_v5, %v1853_v22  ;;  %v1859_v40 = vsub.f32 %v1848_v10, %v1853_v22 }
0x19db   :  { %v1860_v59 = vmul.f32 1.442695, %v1854_v23  ;;  %v1862_v34 = vmul.f32 1.442695, %v1855_v28  ;;  %v1864_v37 = vmul.f32 1.442695, %v1856_v30 }
0x19dc   :  { %v1866_v38 = vmul.f32 1.442695, %v1857_v31  ;;  %v1868_v41 = vmul.f32 1.442695, %v1858_v35  ;;  %v1870_v42 = vmul.f32 1.442695, %v1859_v40 }
0x19dd   :  { %6990 = vpow2.f32 %v1860_v59  ;;  %v6973_v59 = vld [vmem:[%s8799_s13] sm:$0xff]   ;;  %v6974_v35 = vld [vmem:[%s8799_s13 + $0x8] sm:$0xff]  }
0x19de   :  { %6992 = vpow2.f32 %v1862_v34 }
0x19df   :  { %6994 = vpow2.f32 %v1864_v37  ;;  %v2006_v37 = vpop.f32.mrb[4].mxu0 }
0x19e0   :  { %6996 = vpow2.f32 %v1866_v38  ;;  %v6405_v38 = vpop.f32.mrb[5].mxu0 }
0x19e1   :  { %6998 = vpow2.f32 %v1868_v41  ;;  %v2009_v40 = vpop.f32.mrb[6].mxu0 }
0x19e2   :  { %7000 = vpow2.f32 %v1870_v42  ;;  %v6406_v41 = vpop.f32.mrb[7].mxu0 }
0x19e7   :  { %v6991_v44 = vpop.eup %6990 }
0x19e8   :  { %v6993_v46 = vpop.eup %6992 }
0x19e9   :  { %v1872_v47 = vadd.f32 %v6993_v46, %v6991_v44  ;;  %v6995_v9 = vpop.eup %6994 }
0x19ea   :  { %v6997_v50 = vpop.eup %6996 }
0x19eb   :  { %v1873_v49 = vadd.f32 %v6995_v9, %v1872_v47  ;;  %v6999_v52 = vpop.eup %6998 }
0x19ec   :  { %v7001_v33 = vpop.eup %7000 }
0x19ed   :  { %v1874_v51 = vadd.f32 %v6997_v50, %v1873_v49 }
0x19ef   :  { %v1875_v53 = vadd.f32 %v6999_v52, %v1874_v51 }
0x19f1   :  { %v1876_v29 = vadd.f32 %v7001_v33, %v1875_v53 }
0x19f3   :  { %7002 = vrcp.f32 %v1876_v29 }
0x19fd   :  { %v7003_v54 = vpop.eup %7002 }
0x19fe   :  { %v1878_v55 = vmul.f32 %v7003_v54, %v6991_v44  ;;  %v1879_v56 = vmul.f32 %v7003_v54, %v6993_v46  ;;  %v1880_v58 = vmul.f32 %v7003_v54, %v6995_v9  ;;  %v1881_v62 = vmul.f32 %v7003_v54, %v6997_v50 }
0x19ff   :  { %v1882_v60 = vmul.f32 %v7003_v54, %v6999_v52  ;;  %v1883_v5 = vmul.f32 %v7003_v54, %v7001_v33 }
0x1a00   :  { %v1884_v63 = vmul.f32 %v1878_v55, %v7653_v0  ;;  %v1885_v3 = vmul.f32 %v1879_v56, %v7655_v2  ;;  %v1886_v4 = vmul.f32 %v1880_v58, %v7671_v7  ;;  %v1887_v11 = vmul.f32 %v1881_v62, %v7669_v6 }
0x1a01   :  { %v1888_v16 = vmul.f32 %v1882_v60, %v7683_v12  ;;  %v1889_v19 = vmul.f32 %v1883_v5, %v7685_v13 }
0x1a02   :  { %v1890_v10 = vsel %vm125_vm2, %v1884_v63, 0.0  ;;  %v1891_v14 = vsel %vm125_vm2, %v1885_v3, 0.0  ;;  %v1893_v17 = vsel %vm125_vm2, %v1886_v4, 0.0  ;;  %v1895_v20 = vsel %vm125_vm2, %v1887_v11, 0.0 }
0x1a03   :  { %v1892_v15 = vadd.f32 %v1891_v14, %v1890_v10  ;;  %v1897_v23 = vsel %vm125_vm2, %v1888_v16, 0.0  ;;  %v1899_v30 = vsel %vm125_vm2, %v1889_v19, 0.0  ;;  %v6975_v10 = vld [vmem:[%s8804_s18] sm:$0xff]  }
0x1a04   :  { %v6976_v14 = vld [vmem:[%s8802_s16] sm:$0xff]  }
0x1a05   :  { %v1894_v18 = vadd.f32 %v1893_v17, %v1892_v15  ;;  %v6977_v15 = vld [vmem:[%s8804_s18 + $0x8] sm:$0xff]  }
0x1a07   :  { %v1896_v22 = vadd.f32 %v1895_v20, %v1894_v18 }
0x1a09   :  { %v1898_v28 = vadd.f32 %v1897_v23, %v1896_v22 }
0x1a0b   :  { %v1900_v31 = vadd.f32 %v1899_v30, %v1898_v28 }
0x1a0d   :  { %v1901_v34 = vpack.c.bf16 %v1900_v31, %v1900_v31 }
0x1a0f   :  { %6398 = vmatmul.mubr.msk.bf16.vlgmr.msra.gmra.mrb[0].mxu1 %vm125_vm2, %v1901_v34  ;;  %6420 = vmatmul.mubr.msk.bf16.vlgmr.msra.gmra.mrb[8].mxu0 %vm125_vm2, %v1901_v34 }
0x1a10   :  { %6408 = vmatpush3.bf16.msra.mxu1 %v6973_v59  ;;  %6411 = vmatprep.mubr.msk.bf16.mxu1 %vm7294_vm0, %v7293_v1 }
0x1a11   :  { %6409 = vmatprep.subr.bf16.mxu1 %v7293_v1  ;;  %6433 = vmatprep.mubr.msk.bf16.mxu0 %vm7294_vm0, %v7293_v1 }
0x1a12   :  { %6432 = vmatpush3.bf16.msra.mxu0 %v6976_v14 }
0x1a14   :  { %6410 = vmatpush3.bf16.msra.mxu1 %v6974_v35 }
0x1a15   :  { %6423 = vmatprep.subr.bf16.mxu1 %v7293_v1 }
0x1a17   :  { %6412 = vmatmul.mubr.msk.bf16.vlgmr.msra.gmra.mrb[4].mxu1 %vm125_vm2, %v7811_v32  ;;  %6434 = vmatmul.mubr.msk.bf16.vlgmr.msra.gmra.mrb[12].mxu0 %vm175_vm1, %v7899_v61 }
0x1a18   :  { %6427 = vmatprep.mubr.msk.bf16.mxu1 %vm7294_vm0, %v7293_v1  ;;  %6424 = vmatpush3.bf16.msra.mxu1 %v6975_v10 }
0x1a19   :  { %6425 = vmatprep.subr.bf16.mxu1 %v7293_v1 }
0x1a1c   :  { %6426 = vmatpush3.bf16.msra.mxu1 %v6977_v15 }
0x1ae2   :  { %v1957_v42 = vpop.f32.mrb[0].mxu1  ;;  %v2150_v44 = vpop.f32.mrb[8].mxu0 }
0x1ae3   :  { %v2007_v46 = vadd.f32 %v2006_v37, %v1957_v42  ;;  %v6399_v47 = vpop.f32.mrb[1].mxu1  ;;  %v6421_v9 = vpop.f32.mrb[9].mxu0 }
0x1ae4   :  { %v1960_v49 = vpop.f32.mrb[2].mxu1  ;;  %v2153_v50 = vpop.f32.mrb[10].mxu0 }
0x1ae5   :  { %v6400_v51 = vpop.f32.mrb[3].mxu1  ;;  %v6422_v52 = vpop.f32.mrb[11].mxu0  ;;  %v2012_v55 = vadd.f32 %v7788_v48, %v2007_v46  ;;  %v7010_v49 = vld [vmem:[%s8829_s0] sm:$0xff] (!%p5782_p7)   ;;  %v7302_v50 = vmov (!%p5782_p7), 0.0  }
0x1ae6   :  { %6437 = vmatprep.subr.bf16.mxu0 (!%p5782_p7), %v7302_v50  ;;  %v7011_v51 = vld [vmem:[%s8829_s0 + $0x8] sm:$0xff] (!%p5782_p7)   ;;  %v7012_v52 = vld [vmem:[%s8829_s0 + $0x10] sm:$0xff] (!%p5782_p7)   ;;  %6453 = vmatprep.mubr.msk.bf16.mxu0 (!%p5782_p7), %vm7303_vm12, %v7302_v50 }
0x1ae7   :  { %6438 = vmatpush3.bf16.msra.mxu0 (!%p5782_p7), %v7010_v49 }
0x1ae8   :  { %6439 = vmatprep.subr.bf16.mxu0 (!%p5782_p7), %v7302_v50 }
0x1aea   :  { %v2063_v53 = vpop.f32.mrb[4].mxu1  ;;  %v2256_v28 = vpop.f32.mrb[12].mxu0 }
0x1aeb   :  { %v2064_v33 = vadd.f32 %v7735_v8, %v2063_v53  ;;  %v6413_v32 = vpop.f32.mrb[5].mxu1  ;;  %v6435_v30 = vpop.f32.mrb[13].mxu0  ;;  %6440 = vmatpush3.bf16.msra.mxu0 (!%p5782_p7), %v7011_v51  ;;  %v7013_v53 = vld [vmem:[%s8829_s0 + $0x18] sm:$0xff] (!%p5782_p7)  }
0x1aec   :  { %v2066_v29 = vpop.f32.mrb[6].mxu1  ;;  %v2259_v31 = vpop.f32.mrb[14].mxu0  ;;  %6441 = vmatprep.subr.bf16.mxu0 (!%p5782_p7), %v7302_v50  ;;  %v7015_v32 = vld [vmem:[%s8829_s0 + $0x28] sm:$0xff] (!%p5782_p7)  }
0x1aed   :  { %2077 = vrot.lane.b32.xlu0 %v2064_v33, %s7296_s24  ;;  %v6414_v54 = vpop.f32.mrb[7].mxu1  ;;  %v2069_v56 = vadd.f32 %v2064_v33, %v2012_v55  ;;  %v6436_v61 = vpop.f32.mrb[15].mxu0  ;;  %v7014_v33 = vld [vmem:[%s8829_s0 + $0x20] sm:$0xff] (!%p5782_p7)   ;;  %v7016_v29 = vld [vmem:[%s8829_s0 + $0x30] sm:$0xff] (!%p5782_p7)  }
0x1aef   :  { %v5771_v58 = vmul.f32 -1.442695, %v2069_v56  ;;  %6442 = vmatpush3.bf16.msra.mxu0 (!%p5782_p7), %v7012_v52 }
0x1af0   :  { %6443 = vmatprep.subr.bf16.mxu0 (!%p5782_p7), %v7302_v50 }
0x1af1   :  { %7004 = vpow2.f32 %v5771_v58 }
0x1af3   :  { %6444 = vmatpush3.bf16.msra.mxu0 (!%p5782_p7), %v7013_v53 }
0x1af4   :  { %6445 = vmatprep.subr.bf16.mxu0 (!%p5782_p7), %v7302_v50 }
0x1af7   :  { %6446 = vmatpush3.bf16.msra.mxu0 (!%p5782_p7), %v7014_v33 }
0x1af8   :  { %6447 = vmatprep.subr.bf16.mxu0 (!%p5782_p7), %v7302_v50 }
0x1afb   :  { %v7005_v62 = vpop.eup %7004  ;;  %6448 = vmatpush3.bf16.msra.mxu0 (!%p5782_p7), %v7015_v32 }
0x1afc   :  { %v2073_v60 = vadd.f32 1.0, %v7005_v62  ;;  %6449 = vmatprep.subr.bf16.mxu0 (!%p5782_p7), %v7302_v50  ;;  %v7017_v62 = vld [vmem:[%s8829_s0 + $0x38] sm:$0xff] (!%p5782_p7)  }
0x1afe   :  { %7006 = vrcp.f32 %v2073_v60 }
0x1aff   :  { %6450 = vmatpush3.bf16.msra.mxu0 (!%p5782_p7), %v7016_v29 }
0x1b00   :  { %6451 = vmatprep.subr.bf16.mxu0 (!%p5782_p7), %v7302_v50 }
0x1b03   :  { %6452 = vmatpush3.bf16.msra.mxu0 (!%p5782_p7), %v7017_v62 }
0x1b08   :  { %v7007_v63 = vpop.eup %7006 }
0x1b09   :  { %v2087_v17 = vsub.f32 1.0, %v7007_v63  ;;  %v2093_v20 = vmul.f32 %v7007_v63, %v7806_v21 }
0x1b5f   :  { %v2078_v3 = vpop.permute.xlu0 %2077 }
0x1b60   :  { %v2080_v4 = vmul.f32 %v7007_v63, %v2078_v3 }
0x1b62   :  { %2082 = vrot.lane.b32.xlu1 %v2080_v4, %s7296_s24 }
0x1bd4   :  { %v2083_v5 = vpop.permute.xlu1 %2082 }
0x1bd5   :  { %v2085_v11 = vadd.f32 %v2083_v5, %v2012_v55 }
0x1bd7   :  { %7008 = vtanh.f32 %v2085_v11  ;;  %v7304_v11 = vmov (!%p5782_p7), 1.0|1.0  }
0x1be1   :  { %v7009_v16 = vpop.eup %7008 }
0x1be2   :  { %2089 = vrot.lane.b32.xlu1 %v7009_v16, %s7298_s14 }
0x1c54   :  { %v2090_v18 = vpop.permute.xlu1 %2089 }
0x1c55   :  { %v2092_v19 = vmul.f32 %v2090_v18, %v2087_v17 }
0x1c57   :  { %v7967_v22 = vadd.f32 %v2093_v20, %v2092_v19 }
0x1c59   :  { %v2095_v23 = vpack.c.bf16 %v7967_v22, %v7967_v22 }
0x1c5b   :  { %2157 = vrot.lane.b32.xlu1 %v2095_v23, %s7298_s14 }
0x1ccd   :  { %v7972_v59 = vpop.permute.xlu1 %2157 }
0x1cce   :  { %6428 = vmatmul.mubr.msk.bf16.vlgmr.msra.gmra.mrb[8].mxu1 %vm125_vm2, %v7972_v59 }
0x1da1   :  { %v2208_v34 = vpop.f32.mrb[8].mxu1 }
0x1da2   :  { %v2209_v35 = vadd.f32 %v2208_v34, %v2150_v44  ;;  %v6429_v21 = vpop.f32.mrb[9].mxu1  ;;  %2270 = sbr.rel (%p5782_p7) target bundleno = 8248 (0x2038), region = 89 }
0x1da3   :  { %v2211_v37 = vpop.f32.mrb[10].mxu1 }
0x1da4   :  { %v2262_v38 = vadd.f32 %v2256_v28, %v2209_v35  ;;  %v6430_v40 = vpop.f32.mrb[11].mxu1 }
0x1da6   :  { %v2263_v41 = vadd.f32 %v7818_v36, %v2262_v38 }
0x1da8   :  { %5780 = vst [vmem:[%s8806_s20 + $0x10] sm:$0xff] %v2263_v41  ;;  %v2271_v42 = vsel (!%p5782_p7), %vm1090_vm3, %v2263_v41, -1e+30 }
0x1da9   :  { %2272 = vmax.xlane.f32.xlu0 %v2271_v42 }
0x1e36   :  { %v2273_v46 = vpop.xlane.xlu0 %2272 }
0x1e37   :  { %vm2274_vm10 = vcmp.ge.f32.partialorder %v2271_v42, %v2273_v46 }
0x1e38   :  { %v2275_v44 = vsel %vm2274_vm10, %v7636_v57, 128 }
0x1e39   :  { %v2277_v47 = vshra.s32 %v2275_v44, 16  ;;  %v2276_v54 = vand.u32 65535, %v2275_v44 }
0x1e3b   :  { %v2279_v9 = vcvt.s32.f32 %v2277_v47  ;;  %v2278_v56 = vcvt.s32.f32 %v2276_v54 }
0x1e3d   :  { %2280 = vmin.xlane.f32.xlu0 %v2279_v9 }
0x1eca   :  { %v2281_v55 = vpop.xlane.xlu0 %2280 }
0x1ecb   :  { %vm2282_vm11 = vcmp.eq.f32.partialorder %v2279_v9, %v2281_v55  ;;  %v2287_v60 = vcvt.f32.s32 %v2281_v55 }
0x1ecc   :  { %v2283_v58 = vsel %vm2282_vm11, %v2278_v56, inf }
0x1ecd   :  { %2284 = vmin.xlane.f32.xlu1 %v2283_v58  ;;  %v2288_v3 = vshll.u32 %v2287_v60, 16 }
0x1f5a   :  { %v2285_v63 = vpop.xlane.xlu1 %2284 }
0x1f5b   :  { %v2286_v4 = vcvt.f32.s32 %v2285_v63 }
0x1f5d   :  { %v2289_v5 = vadd.s32 %v2288_v3, %v2286_v4 }
0x1f5f   :  { %vm2290_vm13 = vcmp.eq.s32.totalorder %v7636_v57, %v2289_v5 }
0x1f60   :  { %vm5792_vm14 = vmpackc.low %vm2290_vm13, %vm2290_vm13 }
0x1f61   :  { %6454 = vmatmul.mubr.msk.bf16.vlgmr.msra.gmra.mrb[0].mxu0 %vm5792_vm14, %v7304_v11 }
0x2034   :  { %v2392_v10 = vpop.f32.mrb[0].mxu0 }
0x2035   :  { %v2398_v14 = vpack.c.bf16 %v2392_v10, %v2392_v10  ;;  %v6455_v15 = vpop.f32.mrb[1].mxu0 }
0x2036   :  { %v2395_v16 = vpop.f32.mrb[2].mxu0 }
0x2037   :  { %2399 = vst.msk [vmem:[#allocation3] sm:$0xf] %vm1092_vm4, %v2398_v14  ;;  %v6456_v17 = vpop.f32.mrb[3].mxu0 }
0x2038 PF:  { %s5794_s27 = sld [smem:[#allocation5 + $0x2]] }
0x203e   :  { %p5795_p8 = scmp.eq.s32.totalorder %s5794_s27, 0 }
0x203f   :  { %s8830_s6 = sld [smem:[#allocation9_spill]] (!%p5795_p8) }
0x2040   :  { %2404 = sbr.rel (%p5795_p8) target bundleno = 8263 (0x2047), region = 93 }
0x2045   :  { %v5796_v18 = vld [vmem:[%s8830_s6 + $0x8] sm:$0xf] (!%p5795_p8) }
0x2046   :  { %2407 = vst.msk [vmem:[#allocation3] sm:$0xf] (!%p5795_p8), %vm1092_vm4, %v5796_v18 }
0x2047 PF:  { %6457 = vmatprep.subr.bf16.mxu0 %v7293_v1  ;;  %v7018_v19 = vld [vmem:[%s8793_s7] sm:$0xff]   ;;  %6461 = vmatprep.mubr.msk.bf16.mxu0 %vm7294_vm0, %v7293_v1  ;;  %v7019_v20 = vld [vmem:[%s8793_s7 + $0x8] sm:$0xff]   ;;  %s5818_s9 = sld [smem:[#allocation5 + $0x3]] }
0x2048   :  { %6465 = vmatprep.subr.bf16.mxu1 %v7293_v1  ;;  %6469 = vmatprep.mubr.msk.bf16.mxu1 %vm7294_vm0, %v7293_v1  ;;  %v7020_v58 = vld [vmem:[%s8797_s11] sm:$0xff]   ;;  %v7023_v3 = vld [vmem:[%s8798_s12 + $0x8] sm:$0xff]  }
0x2049   :  { %6458 = vmatpush3.bf16.msra.mxu0 %v7018_v19  ;;  %v7021_v62 = vld [vmem:[%s8798_s12] sm:$0xff]   ;;  %v7024_v4 = vld [vmem:[%s8803_s17 + $0x8] sm:$0xff]  }
0x204a   :  { %6459 = vmatprep.subr.bf16.mxu0 %v7293_v1  ;;  %6466 = vmatpush3.bf16.msra.mxu1 %v7021_v62  ;;  %v7022_v63 = vld [vmem:[%s8803_s17] sm:$0xff]  }
0x204b   :  { %6467 = vmatprep.subr.bf16.mxu1 %v7293_v1 }
0x204d   :  { %6460 = vmatpush3.bf16.msra.mxu0 %v7019_v20  ;;  %v8055_v60 = vld [vmem:[#allocation3] sm:$0xf]  ;;  %p5819_p9 = scmp.ne.s32.totalorder %s5818_s9, 0 }
0x204e   :  { %6473 = vmatprep.subr.bf16.mxu0 %v7293_v1  ;;  %6468 = vmatpush3.bf16.msra.mxu1 %v7023_v3  ;;  %s8831_s2 = sld [smem:[#allocation10_spill]] (!%p5819_p9)  ;;  %vm7306_vm6 = vmmov (!%p5819_p9), 0  }
0x204f   :  { %6479 = vmatprep.subr.bf16.mxu1 %v7293_v1 }
0x2050   :  { %6462 = vmatmul.mubr.msk.bf16.vlgmr.msra.gmra.mrb[0].mxu0 %vm125_vm2, %v7972_v59 }
0x2051   :  { %6475 = vmatprep.mubr.msk.bf16.mxu0 %vm7294_vm0, %v7293_v1  ;;  %6474 = vmatpush3.bf16.msra.mxu0 %v7020_v58 }
0x2052   :  { %6487 = vmatprep.subr.bf16.mxu0 %v7293_v1 }
0x2058   :  { %6476 = vmatmul.mubr.msk.bf16.vlgmr.msra.gmra.mrb[4].mxu0 %vm175_vm1, %v8055_v60 }
0x2059   :  { %6488 = vmatpush3.bf16.msra.mxu0 %v7022_v63  ;;  %6491 = vmatprep.mubr.msk.bf16.mxu0 %vm7294_vm0, %v7293_v1 }
0x205a   :  { %6489 = vmatprep.subr.bf16.mxu0 %v7293_v1 }
0x205d   :  { %6490 = vmatpush3.bf16.msra.mxu0 %v7024_v4 }
0x205e   :  { %6503 = vmatprep.subr.bf16.mxu0 %v7293_v1 }
0x2123   :  { %v2459_v23 = vpop.f32.mrb[0].mxu0 }
0x2124   :  { %v6463_v28 = vpop.f32.mrb[1].mxu0  ;;  %v2469_v30 = vadd.f32 %v2459_v23, %v7710_v39  ;;  %v2465_v31 = vadd.f32 %v2459_v23, %v7698_v24  ;;  %v2470_v61 = vadd.f32 %v2459_v23, %v7713_v43  ;;  %v2466_v35 = vadd.f32 %v2459_v23, %v7700_v25 }
0x2125   :  { %v2462_v34 = vpop.f32.mrb[2].mxu0  ;;  %v2468_v37 = vadd.f32 %v2459_v23, %v7704_v27  ;;  %v2467_v38 = vadd.f32 %v2459_v23, %v7702_v26 }
0x2126   :  { %v6464_v21 = vpop.f32.mrb[3].mxu0  ;;  %7030 = vtanh.f32 %v2469_v30 }
0x2127   :  { %7032 = vtanh.f32 %v2465_v31 }
0x2128   :  { %7034 = vtanh.f32 %v2470_v61 }
0x2129   :  { %7036 = vtanh.f32 %v2466_v35 }
0x212a   :  { %7038 = vtanh.f32 %v2468_v37 }
0x212b   :  { %7040 = vtanh.f32 %v2467_v38 }
0x2130   :  { %v7031_v40 = vpop.eup %7030 }
0x2131   :  { %v7033_v41 = vpop.eup %7032  ;;  %v2481_v42 = vmul.f32 %v7031_v40, %v7718_v45 }
0x2132   :  { %v7035_v46 = vpop.eup %7034  ;;  %v2477_v44 = vmul.f32 %v7033_v41, %v7718_v45 }
0x2133   :  { %v7037_v47 = vpop.eup %7036  ;;  %v2495_v9 = vsel %vm125_vm2, %v2481_v42, 0.0  ;;  %v2482_v49 = vmul.f32 %v7035_v46, %v7718_v45 }
0x2134   :  { %v7039_v50 = vpop.eup %7038  ;;  %2496 = vadd.xlane.f32.xlu1 %v2495_v9  ;;  %v2483_v51 = vsel %vm125_vm2, %v2477_v44, 0.0  ;;  %v2478_v52 = vmul.f32 %v7037_v47, %v7718_v45 }
0x2135   :  { %v7041_v53 = vpop.eup %7040  ;;  %2484 = vadd.xlane.f32.xlu0 %v2483_v51  ;;  %v2498_v33 = vsel %vm125_vm2, %v2482_v49, 0.0  ;;  %v2480_v32 = vmul.f32 %v7039_v50, %v7718_v45 }
0x2136   :  { %v2486_v29 = vsel %vm125_vm2, %v2478_v52, 0.0  ;;  %v2479_v54 = vmul.f32 %v7041_v53, %v7718_v45 }
0x2137   :  { %v2492_v55 = vsel %vm125_vm2, %v2480_v32, 0.0 }
0x2138   :  { %2499 = vadd.xlane.f32.xlu1 %v2498_v33  ;;  %v2489_v56 = vsel %vm125_vm2, %v2479_v54, 0.0 }
0x2139   :  { %2487 = vadd.xlane.f32.xlu0 %v2486_v29 }
0x213c   :  { %2493 = vadd.xlane.f32.xlu1 %v2492_v55 }
0x213d   :  { %2490 = vadd.xlane.f32.xlu0 %v2489_v56 }
0x21c1   :  { %v2497_v5 = vpop.xlane.xlu1 %2496 }
0x21c2   :  { %v2485_v11 = vpop.xlane.xlu0 %2484 }
0x21c3   :  { %v2501_v16 = vmax.f32 %v2485_v11, %v2497_v5 }
0x21c5   :  { %v2500_v10 = vpop.xlane.xlu1 %2499 }
0x21c6   :  { %v2488_v14 = vpop.xlane.xlu0 %2487 }
0x21c7   :  { %v2502_v15 = vmax.f32 %v2488_v14, %v2500_v10 }
0x21c9   :  { %v2494_v17 = vpop.xlane.xlu1 %2493  ;;  %v2503_v19 = vmax.f32 %v2501_v16, %v2502_v15 }
0x21ca   :  { %v2491_v18 = vpop.xlane.xlu0 %2490 }
0x21cb   :  { %v2504_v20 = vmax.f32 %v2491_v18, %v2494_v17 }
0x21cd   :  { %v2505_v23 = vmax.f32 %v2503_v19, %v2504_v20 }
0x21cf   :  { %v2506_v28 = vsub.f32 %v2485_v11, %v2505_v23  ;;  %v2507_v30 = vsub.f32 %v2488_v14, %v2505_v23  ;;  %v2508_v31 = vsub.f32 %v2491_v18, %v2505_v23  ;;  %v2509_v61 = vsub.f32 %v2494_v17, %v2505_v23 }
0x21d0   :  { %v2510_v21 = vsub.f32 %v2497_v5, %v2505_v23  ;;  %v2511_v40 = vsub.f32 %v2500_v10, %v2505_v23 }
0x21d1   :  { %v2512_v34 = vmul.f32 1.442695, %v2506_v28  ;;  %v2514_v35 = vmul.f32 1.442695, %v2507_v30  ;;  %v2516_v37 = vmul.f32 1.442695, %v2508_v31 }
0x21d2   :  { %v2518_v38 = vmul.f32 1.442695, %v2509_v61  ;;  %v2520_v41 = vmul.f32 1.442695, %v2510_v21  ;;  %v2522_v42 = vmul.f32 1.442695, %v2511_v40 }
0x21d3   :  { %7042 = vpow2.f32 %v2512_v34  ;;  %v7025_v34 = vld [vmem:[%s8799_s13] sm:$0xff]   ;;  %v7026_v21 = vld [vmem:[%s8799_s13 + $0x8] sm:$0xff]  }
0x21d4   :  { %7044 = vpow2.f32 %v2514_v35 }
0x21d5   :  { %7046 = vpow2.f32 %v2516_v37  ;;  %v2658_v37 = vpop.f32.mrb[4].mxu0 }
0x21d6   :  { %7048 = vpow2.f32 %v2518_v38  ;;  %v6477_v38 = vpop.f32.mrb[5].mxu0 }
0x21d7   :  { %7050 = vpow2.f32 %v2520_v41  ;;  %v2661_v40 = vpop.f32.mrb[6].mxu0 }
0x21d8   :  { %7052 = vpow2.f32 %v2522_v42  ;;  %v6478_v41 = vpop.f32.mrb[7].mxu0 }
0x21dd   :  { %v7043_v46 = vpop.eup %7042 }
0x21de   :  { %v7045_v44 = vpop.eup %7044 }
0x21df   :  { %v2524_v47 = vadd.f32 %v7045_v44, %v7043_v46  ;;  %v7047_v9 = vpop.eup %7046 }
0x21e0   :  { %v7049_v50 = vpop.eup %7048 }
0x21e1   :  { %v2525_v49 = vadd.f32 %v7047_v9, %v2524_v47  ;;  %v7051_v52 = vpop.eup %7050 }
0x21e2   :  { %v7053_v33 = vpop.eup %7052 }
0x21e3   :  { %v2526_v51 = vadd.f32 %v7049_v50, %v2525_v49 }
0x21e5   :  { %v2527_v53 = vadd.f32 %v7051_v52, %v2526_v51 }
0x21e7   :  { %v2528_v32 = vadd.f32 %v7053_v33, %v2527_v53 }
0x21e9   :  { %7054 = vrcp.f32 %v2528_v32 }
0x21f3   :  { %v7055_v29 = vpop.eup %7054 }
0x21f4   :  { %v2530_v54 = vmul.f32 %v7055_v29, %v7043_v46  ;;  %v2531_v55 = vmul.f32 %v7055_v29, %v7045_v44  ;;  %v2532_v56 = vmul.f32 %v7055_v29, %v7047_v9  ;;  %v2533_v58 = vmul.f32 %v7055_v29, %v7049_v50 }
0x21f5   :  { %v2534_v62 = vmul.f32 %v7055_v29, %v7051_v52  ;;  %v2535_v5 = vmul.f32 %v7055_v29, %v7053_v33 }
0x21f6   :  { %v2536_v63 = vmul.f32 %v2530_v54, %v7653_v0  ;;  %v2537_v3 = vmul.f32 %v2531_v55, %v7655_v2  ;;  %v2538_v4 = vmul.f32 %v2532_v56, %v7671_v7  ;;  %v2539_v11 = vmul.f32 %v2533_v58, %v7669_v6 }
0x21f7   :  { %v2540_v16 = vmul.f32 %v2534_v62, %v7683_v12  ;;  %v2541_v19 = vmul.f32 %v2535_v5, %v7685_v13 }
0x21f8   :  { %v2542_v10 = vsel %vm125_vm2, %v2536_v63, 0.0  ;;  %v2543_v14 = vsel %vm125_vm2, %v2537_v3, 0.0  ;;  %v2545_v17 = vsel %vm125_vm2, %v2538_v4, 0.0  ;;  %v2547_v20 = vsel %vm125_vm2, %v2539_v11, 0.0 }
0x21f9   :  { %v2544_v15 = vadd.f32 %v2543_v14, %v2542_v10  ;;  %v2549_v28 = vsel %vm125_vm2, %v2540_v16, 0.0  ;;  %v2551_v31 = vsel %vm125_vm2, %v2541_v19, 0.0  ;;  %v7027_v10 = vld [vmem:[%s8804_s18] sm:$0xff]  }
0x21fa   :  { %v7028_v14 = vld [vmem:[%s8802_s16] sm:$0xff]  }
0x21fb   :  { %v2546_v18 = vadd.f32 %v2545_v17, %v2544_v15  ;;  %v7029_v15 = vld [vmem:[%s8804_s18 + $0x8] sm:$0xff]  }
0x21fd   :  { %v2548_v23 = vadd.f32 %v2547_v20, %v2546_v18 }
0x21ff   :  { %v2550_v30 = vadd.f32 %v2549_v28, %v2548_v23 }
0x2201   :  { %v2552_v61 = vadd.f32 %v2551_v31, %v2550_v30 }
0x2203   :  { %v2553_v35 = vpack.c.bf16 %v2552_v61, %v2552_v61 }
0x2205   :  { %6470 = vmatmul.mubr.msk.bf16.vlgmr.msra.gmra.mrb[0].mxu1 %vm125_vm2, %v2553_v35  ;;  %6492 = vmatmul.mubr.msk.bf16.vlgmr.msra.gmra.mrb[8].mxu0 %vm125_vm2, %v2553_v35 }
0x2206   :  { %6480 = vmatpush3.bf16.msra.mxu1 %v7025_v34  ;;  %6483 = vmatprep.mubr.msk.bf16.mxu1 %vm7294_vm0, %v7293_v1 }
0x2207   :  { %6481 = vmatprep.subr.bf16.mxu1 %v7293_v1  ;;  %6505 = vmatprep.mubr.msk.bf16.mxu0 %vm7294_vm0, %v7293_v1 }
0x2208   :  { %6504 = vmatpush3.bf16.msra.mxu0 %v7028_v14 }
0x220a   :  { %6482 = vmatpush3.bf16.msra.mxu1 %v7026_v21 }
0x220b   :  { %6495 = vmatprep.subr.bf16.mxu1 %v7293_v1 }
0x220d   :  { %6484 = vmatmul.mubr.msk.bf16.vlgmr.msra.gmra.mrb[4].mxu1 %vm125_vm2, %v7972_v59  ;;  %6506 = vmatmul.mubr.msk.bf16.vlgmr.msra.gmra.mrb[12].mxu0 %vm175_vm1, %v8055_v60 }
0x220e   :  { %6499 = vmatprep.mubr.msk.bf16.mxu1 %vm7294_vm0, %v7293_v1  ;;  %6496 = vmatpush3.bf16.msra.mxu1 %v7027_v10 }
0x220f   :  { %6497 = vmatprep.subr.bf16.mxu1 %v7293_v1 }
0x2212   :  { %6498 = vmatpush3.bf16.msra.mxu1 %v7029_v15 }
0x22d8   :  { %v2609_v42 = vpop.f32.mrb[0].mxu1  ;;  %v2802_v46 = vpop.f32.mrb[8].mxu0 }
0x22d9   :  { %v2659_v44 = vadd.f32 %v2658_v37, %v2609_v42  ;;  %v6471_v47 = vpop.f32.mrb[1].mxu1  ;;  %v6493_v9 = vpop.f32.mrb[9].mxu0 }
0x22da   :  { %v2612_v49 = vpop.f32.mrb[2].mxu1  ;;  %v2805_v50 = vpop.f32.mrb[10].mxu0 }
0x22db   :  { %v6472_v51 = vpop.f32.mrb[3].mxu1  ;;  %v6494_v52 = vpop.f32.mrb[11].mxu0  ;;  %v2664_v54 = vadd.f32 %v7788_v48, %v2659_v44  ;;  %v7062_v49 = vld [vmem:[%s8831_s2] sm:$0xff] (!%p5819_p9)   ;;  %v7305_v50 = vmov (!%p5819_p9), 0.0  }
0x22dc   :  { %6509 = vmatprep.subr.bf16.mxu0 (!%p5819_p9), %v7305_v50  ;;  %v7063_v51 = vld [vmem:[%s8831_s2 + $0x8] sm:$0xff] (!%p5819_p9)   ;;  %v7064_v52 = vld [vmem:[%s8831_s2 + $0x10] sm:$0xff] (!%p5819_p9)   ;;  %6525 = vmatprep.mubr.msk.bf16.mxu0 (!%p5819_p9), %vm7306_vm6, %v7305_v50 }
0x22dd   :  { %6510 = vmatpush3.bf16.msra.mxu0 (!%p5819_p9), %v7062_v49 }
0x22de   :  { %6511 = vmatprep.subr.bf16.mxu0 (!%p5819_p9), %v7305_v50 }
0x22e0   :  { %v2715_v53 = vpop.f32.mrb[4].mxu1  ;;  %v2908_v30 = vpop.f32.mrb[12].mxu0 }
0x22e1   :  { %v2716_v33 = vadd.f32 %v7735_v8, %v2715_v53  ;;  %v6485_v59 = vpop.f32.mrb[5].mxu1  ;;  %v6507_v31 = vpop.f32.mrb[13].mxu0  ;;  %6512 = vmatpush3.bf16.msra.mxu0 (!%p5819_p9), %v7063_v51  ;;  %v7065_v53 = vld [vmem:[%s8831_s2 + $0x18] sm:$0xff] (!%p5819_p9)  }
0x22e2   :  { %v2718_v32 = vpop.f32.mrb[6].mxu1  ;;  %v2911_v61 = vpop.f32.mrb[14].mxu0  ;;  %6513 = vmatprep.subr.bf16.mxu0 (!%p5819_p9), %v7305_v50  ;;  %v7067_v59 = vld [vmem:[%s8831_s2 + $0x28] sm:$0xff] (!%p5819_p9)  }
0x22e3   :  { %2729 = vrot.lane.b32.xlu0 %v2716_v33, %s7296_s24  ;;  %v6486_v29 = vpop.f32.mrb[7].mxu1  ;;  %v2721_v55 = vadd.f32 %v2716_v33, %v2664_v54  ;;  %v6508_v60 = vpop.f32.mrb[15].mxu0  ;;  %v7066_v33 = vld [vmem:[%s8831_s2 + $0x20] sm:$0xff] (!%p5819_p9)   ;;  %v7068_v32 = vld [vmem:[%s8831_s2 + $0x30] sm:$0xff] (!%p5819_p9)  }
0x22e5   :  { %v5808_v56 = vmul.f32 -1.442695, %v2721_v55  ;;  %6514 = vmatpush3.bf16.msra.mxu0 (!%p5819_p9), %v7064_v52 }
0x22e6   :  { %6515 = vmatprep.subr.bf16.mxu0 (!%p5819_p9), %v7305_v50 }
0x22e7   :  { %7056 = vpow2.f32 %v5808_v56 }
0x22e9   :  { %6516 = vmatpush3.bf16.msra.mxu0 (!%p5819_p9), %v7065_v53 }
0x22ea   :  { %6517 = vmatprep.subr.bf16.mxu0 (!%p5819_p9), %v7305_v50 }
0x22ed   :  { %6518 = vmatpush3.bf16.msra.mxu0 (!%p5819_p9), %v7066_v33 }
0x22ee   :  { %6519 = vmatprep.subr.bf16.mxu0 (!%p5819_p9), %v7305_v50 }
0x22f1   :  { %v7057_v58 = vpop.eup %7056  ;;  %6520 = vmatpush3.bf16.msra.mxu0 (!%p5819_p9), %v7067_v59 }
0x22f2   :  { %v2725_v62 = vadd.f32 1.0, %v7057_v58  ;;  %6521 = vmatprep.subr.bf16.mxu0 (!%p5819_p9), %v7305_v50  ;;  %v7069_v58 = vld [vmem:[%s8831_s2 + $0x38] sm:$0xff] (!%p5819_p9)  }
0x22f4   :  { %7058 = vrcp.f32 %v2725_v62 }
0x22f5   :  { %6522 = vmatpush3.bf16.msra.mxu0 (!%p5819_p9), %v7068_v32 }
0x22f6   :  { %6523 = vmatprep.subr.bf16.mxu0 (!%p5819_p9), %v7305_v50 }
0x22f9   :  { %6524 = vmatpush3.bf16.msra.mxu0 (!%p5819_p9), %v7069_v58 }
0x22fe   :  { %v7059_v63 = vpop.eup %7058 }
0x22ff   :  { %v2739_v17 = vsub.f32 1.0, %v7059_v63  ;;  %v2745_v20 = vmul.f32 %v7059_v63, %v7967_v22 }
0x2355   :  { %v2730_v3 = vpop.permute.xlu0 %2729 }
0x2356   :  { %v2732_v4 = vmul.f32 %v7059_v63, %v2730_v3 }
0x2358   :  { %2734 = vrot.lane.b32.xlu1 %v2732_v4, %s7296_s24 }
0x23ca   :  { %v2735_v5 = vpop.permute.xlu1 %2734 }
0x23cb   :  { %v2737_v11 = vadd.f32 %v2735_v5, %v2664_v54 }
0x23cd   :  { %7060 = vtanh.f32 %v2737_v11  ;;  %v7307_v11 = vmov (!%p5819_p9), 1.0|1.0  }
0x23d7   :  { %v7061_v16 = vpop.eup %7060 }
0x23d8   :  { %2741 = vrot.lane.b32.xlu1 %v7061_v16, %s7298_s14 }
0x244a   :  { %v2742_v18 = vpop.permute.xlu1 %2741 }
0x244b   :  { %v2744_v19 = vmul.f32 %v2742_v18, %v2739_v17 }
0x244d   :  { %v8123_v23 = vadd.f32 %v2745_v20, %v2744_v19 }
0x244f   :  { %v2747_v28 = vpack.c.bf16 %v8123_v23, %v8123_v23 }
0x2451   :  { %2809 = vrot.lane.b32.xlu1 %v2747_v28, %s7298_s14 }
0x24c3   :  { %v8128_v34 = vpop.permute.xlu1 %2809 }
0x24c4   :  { %6500 = vmatmul.mubr.msk.bf16.vlgmr.msra.gmra.mrb[8].mxu1 %vm125_vm2, %v8128_v34 }
0x2597   :  { %v2860_v35 = vpop.f32.mrb[8].mxu1 }
0x2598   :  { %v2861_v21 = vadd.f32 %v2860_v35, %v2802_v46  ;;  %v6501_v22 = vpop.f32.mrb[9].mxu1  ;;  %2922 = sbr.rel (%p5819_p9) target bundleno = 10286 (0x282e), region = 97 }
0x2599   :  { %v2863_v37 = vpop.f32.mrb[10].mxu1 }
0x259a   :  { %v2914_v38 = vadd.f32 %v2908_v30, %v2861_v21  ;;  %v6502_v40 = vpop.f32.mrb[11].mxu1 }
0x259c   :  { %v2915_v41 = vadd.f32 %v7818_v36, %v2914_v38 }
0x259e   :  { %5817 = vst [vmem:[%s8806_s20 + $0x18] sm:$0xff] %v2915_v41  ;;  %v2923_v42 = vsel (!%p5819_p9), %vm1090_vm3, %v2915_v41, -1e+30 }
0x259f   :  { %2924 = vmax.xlane.f32.xlu0 %v2923_v42 }
0x262c   :  { %v2925_v44 = vpop.xlane.xlu0 %2924 }
0x262d   :  { %vm2926_vm15 = vcmp.ge.f32.partialorder %v2923_v42, %v2925_v44 }
0x262e   :  { %v2927_v46 = vsel %vm2926_vm15, %v7636_v57, 128 }
0x262f   :  { %v2929_v47 = vshra.s32 %v2927_v46, 16  ;;  %v2928_v29 = vand.u32 65535, %v2927_v46 }
0x2631   :  { %v2931_v9 = vcvt.s32.f32 %v2929_v47  ;;  %v2930_v55 = vcvt.s32.f32 %v2928_v29 }
0x2633   :  { %2932 = vmin.xlane.f32.xlu0 %v2931_v9 }
0x26c0   :  { %v2933_v54 = vpop.xlane.xlu0 %2932 }
0x26c1   :  { %vm2934_vm5 = vcmp.eq.f32.partialorder %v2931_v9, %v2933_v54  ;;  %v2939_v62 = vcvt.f32.s32 %v2933_v54 }
0x26c2   :  { %v2935_v56 = vsel %vm2934_vm5, %v2930_v55, inf }
0x26c3   :  { %2936 = vmin.xlane.f32.xlu1 %v2935_v56  ;;  %v2940_v3 = vshll.u32 %v2939_v62, 16 }
0x2750   :  { %v2937_v63 = vpop.xlane.xlu1 %2936 }
0x2751   :  { %v2938_v4 = vcvt.f32.s32 %v2937_v63 }
0x2753   :  { %v2941_v5 = vadd.s32 %v2940_v3, %v2938_v4 }
0x2755   :  { %vm2942_vm7 = vcmp.eq.s32.totalorder %v7636_v57, %v2941_v5 }
0x2756   :  { %vm5829_vm8 = vmpackc.low %vm2942_vm7, %vm2942_vm7 }
0x2757   :  { %6526 = vmatmul.mubr.msk.bf16.vlgmr.msra.gmra.mrb[0].mxu0 %vm5829_vm8, %v7307_v11 }
0x282a   :  { %v3044_v10 = vpop.f32.mrb[0].mxu0 }
0x282b   :  { %v3050_v14 = vpack.c.bf16 %v3044_v10, %v3044_v10  ;;  %v6527_v15 = vpop.f32.mrb[1].mxu0 }
0x282c   :  { %v3047_v16 = vpop.f32.mrb[2].mxu0 }
0x282d   :  { %3051 = vst.msk [vmem:[#allocation3] sm:$0xf] %vm1092_vm4, %v3050_v14  ;;  %v6528_v17 = vpop.f32.mrb[3].mxu0 }
0x282e PF:  { %s5831_s0 = sld [smem:[#allocation5 + $0x3]] }
0x2834   :  { %p5832_p10 = scmp.eq.s32.totalorder %s5831_s0, 0 }
0x2835   :  { %s8832_s10 = sld [smem:[#allocation9_spill]] (!%p5832_p10) }
0x2836   :  { %3056 = sbr.rel (%p5832_p10) target bundleno = 10301 (0x283d), region = 101 }
0x283b   :  { %v5833_v18 = vld [vmem:[%s8832_s10 + $0xc] sm:$0xf] (!%p5832_p10) }
0x283c   :  { %3059 = vst.msk [vmem:[#allocation3] sm:$0xf] (!%p5832_p10), %vm1092_vm4, %v5833_v18 }
0x283d PF:  { %6529 = vmatprep.subr.bf16.mxu0 %v7293_v1  ;;  %v7070_v19 = vld [vmem:[%s8793_s7] sm:$0xff]   ;;  %6533 = vmatprep.mubr.msk.bf16.mxu0 %vm7294_vm0, %v7293_v1  ;;  %v7071_v20 = vld [vmem:[%s8793_s7 + $0x8] sm:$0xff]   ;;  %s5855_s5 = sld [smem:[#allocation5 + $0x4]] }
0x283e   :  { %6537 = vmatprep.subr.bf16.mxu1 %v7293_v1  ;;  %6541 = vmatprep.mubr.msk.bf16.mxu1 %vm7294_vm0, %v7293_v1  ;;  %v7072_v56 = vld [vmem:[%s8797_s11] sm:$0xff]   ;;  %v7075_v3 = vld [vmem:[%s8798_s12 + $0x8] sm:$0xff]  }
0x283f   :  { %6530 = vmatpush3.bf16.msra.mxu0 %v7070_v19  ;;  %v7073_v58 = vld [vmem:[%s8798_s12] sm:$0xff]   ;;  %v7076_v4 = vld [vmem:[%s8803_s17 + $0x8] sm:$0xff]  }
0x2840   :  { %6531 = vmatprep.subr.bf16.mxu0 %v7293_v1  ;;  %6538 = vmatpush3.bf16.msra.mxu1 %v7073_v58  ;;  %v7074_v63 = vld [vmem:[%s8803_s17] sm:$0xff]  }
0x2841   :  { %6539 = vmatprep.subr.bf16.mxu1 %v7293_v1 }
0x2843   :  { %6532 = vmatpush3.bf16.msra.mxu0 %v7071_v20  ;;  %v8211_v62 = vld [vmem:[#allocation3] sm:$0xf]  ;;  %p5856_p11 = scmp.ne.s32.totalorder %s5855_s5, 0 }
0x2844   :  { %6545 = vmatprep.subr.bf16.mxu0 %v7293_v1  ;;  %6540 = vmatpush3.bf16.msra.mxu1 %v7075_v3  ;;  %s8833_s26 = sld [smem:[#allocation10_spill]] (!%p5856_p11)  ;;  %vm7309_vm11 = vmmov (!%p5856_p11), 0  }
0x2845   :  { %6551 = vmatprep.subr.bf16.mxu1 %v7293_v1 }
0x2846   :  { %6534 = vmatmul.mubr.msk.bf16.vlgmr.msra.gmra.mrb[0].mxu0 %vm125_vm2, %v8128_v34 }
0x2847   :  { %6547 = vmatprep.mubr.msk.bf16.mxu0 %vm7294_vm0, %v7293_v1  ;;  %6546 = vmatpush3.bf16.msra.mxu0 %v7072_v56 }
0x2848   :  { %6559 = vmatprep.subr.bf16.mxu0 %v7293_v1 }
0x284e   :  { %6548 = vmatmul.mubr.msk.bf16.vlgmr.msra.gmra.mrb[4].mxu0 %vm175_vm1, %v8211_v62 }
0x284f   :  { %6560 = vmatpush3.bf16.msra.mxu0 %v7074_v63  ;;  %6563 = vmatprep.mubr.msk.bf16.mxu0 %vm7294_vm0, %v7293_v1 }
0x2850   :  { %6561 = vmatprep.subr.bf16.mxu0 %v7293_v1 }
0x2853   :  { %6562 = vmatpush3.bf16.msra.mxu0 %v7076_v4 }
0x2854   :  { %6575 = vmatprep.subr.bf16.mxu0 %v7293_v1 }
0x2919   :  { %v3111_v28 = vpop.f32.mrb[0].mxu0 }
0x291a   :  { %v6535_v30 = vpop.f32.mrb[1].mxu0  ;;  %v3121_v31 = vadd.f32 %v3111_v28, %v7710_v39  ;;  %v3117_v61 = vadd.f32 %v3111_v28, %v7698_v24  ;;  %v3122_v60 = vadd.f32 %v3111_v28, %v7713_v43  ;;  %v3118_v21 = vadd.f32 %v3111_v28, %v7700_v25 }
0x291b   :  { %v3114_v35 = vpop.f32.mrb[2].mxu0  ;;  %v3120_v37 = vadd.f32 %v3111_v28, %v7704_v27  ;;  %v3119_v38 = vadd.f32 %v3111_v28, %v7702_v26 }
0x291c   :  { %v6536_v22 = vpop.f32.mrb[3].mxu0  ;;  %7082 = vtanh.f32 %v3121_v31 }
0x291d   :  { %7084 = vtanh.f32 %v3117_v61 }
0x291e   :  { %7086 = vtanh.f32 %v3122_v60 }
0x291f   :  { %7088 = vtanh.f32 %v3118_v21 }
0x2920   :  { %7090 = vtanh.f32 %v3120_v37 }
0x2921   :  { %7092 = vtanh.f32 %v3119_v38 }
0x2926   :  { %v7083_v40 = vpop.eup %7082 }
0x2927   :  { %v7085_v41 = vpop.eup %7084  ;;  %v3133_v42 = vmul.f32 %v7083_v40, %v7718_v45 }
0x2928   :  { %v7087_v44 = vpop.eup %7086  ;;  %v3129_v46 = vmul.f32 %v7085_v41, %v7718_v45 }
0x2929   :  { %v7089_v47 = vpop.eup %7088  ;;  %v3147_v9 = vsel %vm125_vm2, %v3133_v42, 0.0  ;;  %v3134_v49 = vmul.f32 %v7087_v44, %v7718_v45 }
0x292a   :  { %v7091_v50 = vpop.eup %7090  ;;  %3148 = vadd.xlane.f32.xlu1 %v3147_v9  ;;  %v3135_v51 = vsel %vm125_vm2, %v3129_v46, 0.0  ;;  %v3130_v52 = vmul.f32 %v7089_v47, %v7718_v45 }
0x292b   :  { %v7093_v53 = vpop.eup %7092  ;;  %3136 = vadd.xlane.f32.xlu0 %v3135_v51  ;;  %v3150_v33 = vsel %vm125_vm2, %v3134_v49, 0.0  ;;  %v3132_v59 = vmul.f32 %v7091_v50, %v7718_v45 }
0x292c   :  { %v3138_v32 = vsel %vm125_vm2, %v3130_v52, 0.0  ;;  %v3131_v29 = vmul.f32 %v7093_v53, %v7718_v45 }
0x292d   :  { %v3144_v54 = vsel %vm125_vm2, %v3132_v59, 0.0 }
0x292e   :  { %3151 = vadd.xlane.f32.xlu1 %v3150_v33  ;;  %v3141_v55 = vsel %vm125_vm2, %v3131_v29, 0.0 }
0x292f   :  { %3139 = vadd.xlane.f32.xlu0 %v3138_v32 }
0x2932   :  { %3145 = vadd.xlane.f32.xlu1 %v3144_v54 }
0x2933   :  { %3142 = vadd.xlane.f32.xlu0 %v3141_v55 }
0x29b7   :  { %v3149_v5 = vpop.xlane.xlu1 %3148 }
0x29b8   :  { %v3137_v11 = vpop.xlane.xlu0 %3136 }
0x29b9   :  { %v3153_v16 = vmax.f32 %v3137_v11, %v3149_v5 }
0x29bb   :  { %v3152_v10 = vpop.xlane.xlu1 %3151 }
0x29bc   :  { %v3140_v14 = vpop.xlane.xlu0 %3139 }
0x29bd   :  { %v3154_v15 = vmax.f32 %v3140_v14, %v3152_v10 }
0x29bf   :  { %v3146_v17 = vpop.xlane.xlu1 %3145  ;;  %v3155_v19 = vmax.f32 %v3153_v16, %v3154_v15 }
0x29c0   :  { %v3143_v18 = vpop.xlane.xlu0 %3142 }
0x29c1   :  { %v3156_v20 = vmax.f32 %v3143_v18, %v3146_v17 }
0x29c3   :  { %v3157_v28 = vmax.f32 %v3155_v19, %v3156_v20 }
0x29c5   :  { %v3158_v30 = vsub.f32 %v3137_v11, %v3157_v28  ;;  %v3159_v31 = vsub.f32 %v3140_v14, %v3157_v28  ;;  %v3160_v61 = vsub.f32 %v3143_v18, %v3157_v28  ;;  %v3161_v60 = vsub.f32 %v3146_v17, %v3157_v28 }
0x29c6   :  { %v3162_v22 = vsub.f32 %v3149_v5, %v3157_v28  ;;  %v3163_v40 = vsub.f32 %v3152_v10, %v3157_v28 }
0x29c7   :  { %v3164_v35 = vmul.f32 1.442695, %v3158_v30  ;;  %v3166_v21 = vmul.f32 1.442695, %v3159_v31  ;;  %v3168_v37 = vmul.f32 1.442695, %v3160_v61 }
0x29c8   :  { %v3170_v38 = vmul.f32 1.442695, %v3161_v60  ;;  %v3172_v41 = vmul.f32 1.442695, %v3162_v22  ;;  %v3174_v42 = vmul.f32 1.442695, %v3163_v40 }
0x29c9   :  { %7094 = vpow2.f32 %v3164_v35  ;;  %v7077_v35 = vld [vmem:[%s8799_s13] sm:$0xff]   ;;  %v7078_v22 = vld [vmem:[%s8799_s13 + $0x8] sm:$0xff]  }
0x29ca   :  { %7096 = vpow2.f32 %v3166_v21 }
0x29cb   :  { %7098 = vpow2.f32 %v3168_v37  ;;  %v3310_v37 = vpop.f32.mrb[4].mxu0 }
0x29cc   :  { %7100 = vpow2.f32 %v3170_v38  ;;  %v6549_v38 = vpop.f32.mrb[5].mxu0 }
0x29cd   :  { %7102 = vpow2.f32 %v3172_v41  ;;  %v3313_v40 = vpop.f32.mrb[6].mxu0 }
0x29ce   :  { %7104 = vpow2.f32 %v3174_v42  ;;  %v6550_v41 = vpop.f32.mrb[7].mxu0 }
0x29d3   :  { %v7095_v44 = vpop.eup %7094 }
0x29d4   :  { %v7097_v46 = vpop.eup %7096 }
0x29d5   :  { %v3176_v47 = vadd.f32 %v7097_v46, %v7095_v44  ;;  %v7099_v9 = vpop.eup %7098 }
0x29d6   :  { %v7101_v50 = vpop.eup %7100 }
0x29d7   :  { %v3177_v49 = vadd.f32 %v7099_v9, %v3176_v47  ;;  %v7103_v52 = vpop.eup %7102 }
0x29d8   :  { %v7105_v33 = vpop.eup %7104 }
0x29d9   :  { %v3178_v51 = vadd.f32 %v7101_v50, %v3177_v49 }
0x29db   :  { %v3179_v53 = vadd.f32 %v7103_v52, %v3178_v51 }
0x29dd   :  { %v3180_v59 = vadd.f32 %v7105_v33, %v3179_v53 }
0x29df   :  { %7106 = vrcp.f32 %v3180_v59 }
0x29e9   :  { %v7107_v32 = vpop.eup %7106 }
0x29ea   :  { %v3182_v29 = vmul.f32 %v7107_v32, %v7095_v44  ;;  %v3183_v54 = vmul.f32 %v7107_v32, %v7097_v46  ;;  %v3184_v55 = vmul.f32 %v7107_v32, %v7099_v9  ;;  %v3185_v56 = vmul.f32 %v7107_v32, %v7101_v50 }
0x29eb   :  { %v3186_v58 = vmul.f32 %v7107_v32, %v7103_v52  ;;  %v3187_v5 = vmul.f32 %v7107_v32, %v7105_v33 }
0x29ec   :  { %v3188_v63 = vmul.f32 %v3182_v29, %v7653_v0  ;;  %v3189_v3 = vmul.f32 %v3183_v54, %v7655_v2  ;;  %v3190_v4 = vmul.f32 %v3184_v55, %v7671_v7  ;;  %v3191_v11 = vmul.f32 %v3185_v56, %v7669_v6 }
0x29ed   :  { %v3192_v16 = vmul.f32 %v3186_v58, %v7683_v12  ;;  %v3193_v19 = vmul.f32 %v3187_v5, %v7685_v13 }
0x29ee   :  { %v3194_v10 = vsel %vm125_vm2, %v3188_v63, 0.0  ;;  %v3195_v14 = vsel %vm125_vm2, %v3189_v3, 0.0  ;;  %v3197_v17 = vsel %vm125_vm2, %v3190_v4, 0.0  ;;  %v3199_v20 = vsel %vm125_vm2, %v3191_v11, 0.0 }
0x29ef   :  { %v3196_v15 = vadd.f32 %v3195_v14, %v3194_v10  ;;  %v3201_v30 = vsel %vm125_vm2, %v3192_v16, 0.0  ;;  %v3203_v61 = vsel %vm125_vm2, %v3193_v19, 0.0  ;;  %v7079_v10 = vld [vmem:[%s8804_s18] sm:$0xff]  }
0x29f0   :  { %v7080_v14 = vld [vmem:[%s8802_s16] sm:$0xff]  }
0x29f1   :  { %v3198_v18 = vadd.f32 %v3197_v17, %v3196_v15  ;;  %v7081_v15 = vld [vmem:[%s8804_s18 + $0x8] sm:$0xff]  }
0x29f3   :  { %v3200_v28 = vadd.f32 %v3199_v20, %v3198_v18 }
0x29f5   :  { %v3202_v31 = vadd.f32 %v3201_v30, %v3200_v28 }
0x29f7   :  { %v3204_v60 = vadd.f32 %v3203_v61, %v3202_v31 }
0x29f9   :  { %v3205_v21 = vpack.c.bf16 %v3204_v60, %v3204_v60 }
0x29fb   :  { %6542 = vmatmul.mubr.msk.bf16.vlgmr.msra.gmra.mrb[0].mxu1 %vm125_vm2, %v3205_v21  ;;  %6564 = vmatmul.mubr.msk.bf16.vlgmr.msra.gmra.mrb[8].mxu0 %vm125_vm2, %v3205_v21 }
0x29fc   :  { %6552 = vmatpush3.bf16.msra.mxu1 %v7077_v35  ;;  %6555 = vmatprep.mubr.msk.bf16.mxu1 %vm7294_vm0, %v7293_v1 }
0x29fd   :  { %6553 = vmatprep.subr.bf16.mxu1 %v7293_v1  ;;  %6577 = vmatprep.mubr.msk.bf16.mxu0 %vm7294_vm0, %v7293_v1 }
0x29fe   :  { %6576 = vmatpush3.bf16.msra.mxu0 %v7080_v14 }
0x2a00   :  { %6554 = vmatpush3.bf16.msra.mxu1 %v7078_v22 }
0x2a01   :  { %6567 = vmatprep.subr.bf16.mxu1 %v7293_v1 }
0x2a03   :  { %6556 = vmatmul.mubr.msk.bf16.vlgmr.msra.gmra.mrb[4].mxu1 %vm125_vm2, %v8128_v34  ;;  %6578 = vmatmul.mubr.msk.bf16.vlgmr.msra.gmra.mrb[12].mxu0 %vm175_vm1, %v8211_v62 }
0x2a04   :  { %6571 = vmatprep.mubr.msk.bf16.mxu1 %vm7294_vm0, %v7293_v1  ;;  %6568 = vmatpush3.bf16.msra.mxu1 %v7079_v10 }
0x2a05   :  { %6569 = vmatprep.subr.bf16.mxu1 %v7293_v1 }
0x2a08   :  { %6570 = vmatpush3.bf16.msra.mxu1 %v7081_v15 }
0x2ace   :  { %v3261_v42 = vpop.f32.mrb[0].mxu1  ;;  %v3454_v44 = vpop.f32.mrb[8].mxu0 }
0x2acf   :  { %v3311_v46 = vadd.f32 %v3310_v37, %v3261_v42  ;;  %v6543_v47 = vpop.f32.mrb[1].mxu1  ;;  %v6565_v9 = vpop.f32.mrb[9].mxu0 }
0x2ad0   :  { %v3264_v49 = vpop.f32.mrb[2].mxu1  ;;  %v3457_v50 = vpop.f32.mrb[10].mxu0 }
0x2ad1   :  { %v6544_v51 = vpop.f32.mrb[3].mxu1  ;;  %v6566_v52 = vpop.f32.mrb[11].mxu0  ;;  %v3316_v29 = vadd.f32 %v7788_v48, %v3311_v46  ;;  %v7114_v49 = vld [vmem:[%s8833_s26] sm:$0xff] (!%p5856_p11)   ;;  %v7308_v50 = vmov (!%p5856_p11), 0.0  }
0x2ad2   :  { %6581 = vmatprep.subr.bf16.mxu0 (!%p5856_p11), %v7308_v50  ;;  %v7115_v51 = vld [vmem:[%s8833_s26 + $0x8] sm:$0xff] (!%p5856_p11)   ;;  %v7116_v52 = vld [vmem:[%s8833_s26 + $0x10] sm:$0xff] (!%p5856_p11)   ;;  %6597 = vmatprep.mubr.msk.bf16.mxu0 (!%p5856_p11), %vm7309_vm11, %v7308_v50 }
0x2ad3   :  { %6582 = vmatpush3.bf16.msra.mxu0 (!%p5856_p11), %v7114_v49 }
0x2ad4   :  { %6583 = vmatprep.subr.bf16.mxu0 (!%p5856_p11), %v7308_v50 }
0x2ad6   :  { %v3367_v53 = vpop.f32.mrb[4].mxu1  ;;  %v3560_v31 = vpop.f32.mrb[12].mxu0 }
0x2ad7   :  { %v3368_v33 = vadd.f32 %v7735_v8, %v3367_v53  ;;  %v6557_v34 = vpop.f32.mrb[5].mxu1  ;;  %v6579_v61 = vpop.f32.mrb[13].mxu0  ;;  %6584 = vmatpush3.bf16.msra.mxu0 (!%p5856_p11), %v7115_v51  ;;  %v7117_v53 = vld [vmem:[%s8833_s26 + $0x18] sm:$0xff] (!%p5856_p11)  }
0x2ad8   :  { %v3370_v59 = vpop.f32.mrb[6].mxu1  ;;  %v3563_v60 = vpop.f32.mrb[14].mxu0  ;;  %6585 = vmatprep.subr.bf16.mxu0 (!%p5856_p11), %v7308_v50  ;;  %v7119_v34 = vld [vmem:[%s8833_s26 + $0x28] sm:$0xff] (!%p5856_p11)  }
0x2ad9   :  { %3381 = vrot.lane.b32.xlu0 %v3368_v33, %s7296_s24  ;;  %v6558_v32 = vpop.f32.mrb[7].mxu1  ;;  %v3373_v54 = vadd.f32 %v3368_v33, %v3316_v29  ;;  %v6580_v62 = vpop.f32.mrb[15].mxu0  ;;  %v7118_v33 = vld [vmem:[%s8833_s26 + $0x20] sm:$0xff] (!%p5856_p11)   ;;  %v7120_v59 = vld [vmem:[%s8833_s26 + $0x30] sm:$0xff] (!%p5856_p11)  }
0x2adb   :  { %v5845_v55 = vmul.f32 -1.442695, %v3373_v54  ;;  %6586 = vmatpush3.bf16.msra.mxu0 (!%p5856_p11), %v7116_v52 }
0x2adc   :  { %6587 = vmatprep.subr.bf16.mxu0 (!%p5856_p11), %v7308_v50 }
0x2add   :  { %7108 = vpow2.f32 %v5845_v55 }
0x2adf   :  { %6588 = vmatpush3.bf16.msra.mxu0 (!%p5856_p11), %v7117_v53 }
0x2ae0   :  { %6589 = vmatprep.subr.bf16.mxu0 (!%p5856_p11), %v7308_v50 }
0x2ae3   :  { %6590 = vmatpush3.bf16.msra.mxu0 (!%p5856_p11), %v7118_v33 }
0x2ae4   :  { %6591 = vmatprep.subr.bf16.mxu0 (!%p5856_p11), %v7308_v50 }
0x2ae7   :  { %v7109_v56 = vpop.eup %7108  ;;  %6592 = vmatpush3.bf16.msra.mxu0 (!%p5856_p11), %v7119_v34 }
0x2ae8   :  { %v3377_v58 = vadd.f32 1.0, %v7109_v56  ;;  %6593 = vmatprep.subr.bf16.mxu0 (!%p5856_p11), %v7308_v50  ;;  %v7121_v56 = vld [vmem:[%s8833_s26 + $0x38] sm:$0xff] (!%p5856_p11)  }
0x2aea   :  { %7110 = vrcp.f32 %v3377_v58 }
0x2aeb   :  { %6594 = vmatpush3.bf16.msra.mxu0 (!%p5856_p11), %v7120_v59 }
0x2aec   :  { %6595 = vmatprep.subr.bf16.mxu0 (!%p5856_p11), %v7308_v50 }
0x2aef   :  { %6596 = vmatpush3.bf16.msra.mxu0 (!%p5856_p11), %v7121_v56 }
0x2af4   :  { %v7111_v63 = vpop.eup %7110 }
0x2af5   :  { %v3391_v17 = vsub.f32 1.0, %v7111_v63  ;;  %v3397_v20 = vmul.f32 %v7111_v63, %v8123_v23 }
0x2b4b   :  { %v3382_v3 = vpop.permute.xlu0 %3381 }
0x2b4c   :  { %v3384_v4 = vmul.f32 %v7111_v63, %v3382_v3 }
0x2b4e   :  { %3386 = vrot.lane.b32.xlu1 %v3384_v4, %s7296_s24 }
0x2bc0   :  { %v3387_v5 = vpop.permute.xlu1 %3386 }
0x2bc1   :  { %v3389_v11 = vadd.f32 %v3387_v5, %v3316_v29 }
0x2bc3   :  { %7112 = vtanh.f32 %v3389_v11  ;;  %v7310_v11 = vmov (!%p5856_p11), 1.0|1.0  }
0x2bcd   :  { %v7113_v16 = vpop.eup %7112 }
0x2bce   :  { %3393 = vrot.lane.b32.xlu1 %v7113_v16, %s7298_s14 }
0x2c40   :  { %v3394_v18 = vpop.permute.xlu1 %3393 }
0x2c41   :  { %v3396_v19 = vmul.f32 %v3394_v18, %v3391_v17 }
0x2c43   :  { %v8279_v28 = vadd.f32 %v3397_v20, %v3396_v19 }
0x2c45   :  { %v3399_v30 = vpack.c.bf16 %v8279_v28, %v8279_v28 }
0x2c47   :  { %3461 = vrot.lane.b32.xlu1 %v3399_v30, %s7298_s14 }
0x2cb9   :  { %v8284_v35 = vpop.permute.xlu1 %3461 }
0x2cba   :  { %6572 = vmatmul.mubr.msk.bf16.vlgmr.msra.gmra.mrb[8].mxu1 %vm125_vm2, %v8284_v35 }
0x2d8d   :  { %v3512_v21 = vpop.f32.mrb[8].mxu1 }
0x2d8e   :  { %v3513_v22 = vadd.f32 %v3512_v21, %v3454_v44  ;;  %v6573_v23 = vpop.f32.mrb[9].mxu1  ;;  %3574 = sbr.rel (%p5856_p11) target bundleno = 12324 (0x3024), region = 105 }
0x2d8f   :  { %v3515_v37 = vpop.f32.mrb[10].mxu1 }
0x2d90   :  { %v3566_v38 = vadd.f32 %v3560_v31, %v3513_v22  ;;  %v6574_v40 = vpop.f32.mrb[11].mxu1 }
0x2d92   :  { %v3567_v41 = vadd.f32 %v7818_v36, %v3566_v38 }
0x2d94   :  { %5854 = vst [vmem:[%s8806_s20 + $0x20] sm:$0xff] %v3567_v41  ;;  %v3575_v42 = vsel (!%p5856_p11), %vm1090_vm3, %v3567_v41, -1e+30 }
0x2d95   :  { %3576 = vmax.xlane.f32.xlu0 %v3575_v42 }
0x2e22   :  { %v3577_v46 = vpop.xlane.xlu0 %3576 }
0x2e23   :  { %vm3578_vm9 = vcmp.ge.f32.partialorder %v3575_v42, %v3577_v46 }
0x2e24   :  { %v3579_v44 = vsel %vm3578_vm9, %v7636_v57, 128 }
0x2e25   :  { %v3581_v47 = vshra.s32 %v3579_v44, 16  ;;  %v3580_v32 = vand.u32 65535, %v3579_v44 }
0x2e27   :  { %v3583_v9 = vcvt.s32.f32 %v3581_v47  ;;  %v3582_v54 = vcvt.s32.f32 %v3580_v32 }
0x2e29   :  { %3584 = vmin.xlane.f32.xlu0 %v3583_v9 }
0x2eb6   :  { %v3585_v29 = vpop.xlane.xlu0 %3584 }
0x2eb7   :  { %vm3586_vm10 = vcmp.eq.f32.partialorder %v3583_v9, %v3585_v29  ;;  %v3591_v58 = vcvt.f32.s32 %v3585_v29 }
0x2eb8   :  { %v3587_v55 = vsel %vm3586_vm10, %v3582_v54, inf }
0x2eb9   :  { %3588 = vmin.xlane.f32.xlu1 %v3587_v55  ;;  %v3592_v3 = vshll.u32 %v3591_v58, 16 }
0x2f46   :  { %v3589_v63 = vpop.xlane.xlu1 %3588 }
0x2f47   :  { %v3590_v4 = vcvt.f32.s32 %v3589_v63 }
0x2f49   :  { %v3593_v5 = vadd.s32 %v3592_v3, %v3590_v4 }
0x2f4b   :  { %vm3594_vm12 = vcmp.eq.s32.totalorder %v7636_v57, %v3593_v5 }
0x2f4c   :  { %vm5866_vm13 = vmpackc.low %vm3594_vm12, %vm3594_vm12 }
0x2f4d   :  { %6598 = vmatmul.mubr.msk.bf16.vlgmr.msra.gmra.mrb[0].mxu0 %vm5866_vm13, %v7310_v11 }
0x3020   :  { %v3696_v10 = vpop.f32.mrb[0].mxu0 }
0x3021   :  { %v3702_v14 = vpack.c.bf16 %v3696_v10, %v3696_v10  ;;  %v6599_v15 = vpop.f32.mrb[1].mxu0 }
0x3022   :  { %v3699_v16 = vpop.f32.mrb[2].mxu0 }
0x3023   :  { %3703 = vst.msk [vmem:[#allocation3] sm:$0xf] %vm1092_vm4, %v3702_v14  ;;  %v6600_v17 = vpop.f32.mrb[3].mxu0 }
0x3024 PF:  { %s5868_s2 = sld [smem:[#allocation5 + $0x4]] }
0x302a   :  { %p5869_p12 = scmp.eq.s32.totalorder %s5868_s2, 0 }
0x302b   :  { %s8834_s1 = sld [smem:[#allocation9_spill]] (!%p5869_p12) }
0x302c   :  { %3708 = sbr.rel (%p5869_p12) target bundleno = 12339 (0x3033), region = 109 }
0x3031   :  { %v5870_v18 = vld [vmem:[%s8834_s1 + $0x10] sm:$0xf] (!%p5869_p12) }
0x3032   :  { %3711 = vst.msk [vmem:[#allocation3] sm:$0xf] (!%p5869_p12), %vm1092_vm4, %v5870_v18 }
0x3033 PF:  { %6601 = vmatprep.subr.bf16.mxu0 %v7293_v1  ;;  %v7122_v19 = vld [vmem:[%s8793_s7] sm:$0xff]   ;;  %6605 = vmatprep.mubr.msk.bf16.mxu0 %vm7294_vm0, %v7293_v1  ;;  %v7123_v20 = vld [vmem:[%s8793_s7 + $0x8] sm:$0xff]   ;;  %s5892_s19 = sld [smem:[#allocation5 + $0x5]] }
0x3034   :  { %6609 = vmatprep.subr.bf16.mxu1 %v7293_v1  ;;  %6613 = vmatprep.mubr.msk.bf16.mxu1 %vm7294_vm0, %v7293_v1  ;;  %v7124_v55 = vld [vmem:[%s8797_s11] sm:$0xff]   ;;  %v7127_v3 = vld [vmem:[%s8798_s12 + $0x8] sm:$0xff]  }
0x3035   :  { %6602 = vmatpush3.bf16.msra.mxu0 %v7122_v19  ;;  %v7125_v56 = vld [vmem:[%s8798_s12] sm:$0xff]   ;;  %v7128_v4 = vld [vmem:[%s8803_s17 + $0x8] sm:$0xff]  }
0x3036   :  { %6603 = vmatprep.subr.bf16.mxu0 %v7293_v1  ;;  %6610 = vmatpush3.bf16.msra.mxu1 %v7125_v56  ;;  %v7126_v63 = vld [vmem:[%s8803_s17] sm:$0xff]  }
0x3037   :  { %6611 = vmatprep.subr.bf16.mxu1 %v7293_v1 }
0x3039   :  { %6604 = vmatpush3.bf16.msra.mxu0 %v7123_v20  ;;  %v8367_v58 = vld [vmem:[#allocation3] sm:$0xf]  ;;  %p5893_p13 = scmp.ne.s32.totalorder %s5892_s19, 0 }
0x303a   :  { %6617 = vmatprep.subr.bf16.mxu0 %v7293_v1  ;;  %6612 = vmatpush3.bf16.msra.mxu1 %v7127_v3  ;;  %s8835_s6 = sld [smem:[#allocation10_spill]] (!%p5893_p13)  ;;  %vm7312_vm5 = vmmov (!%p5893_p13), 0  }
0x303b   :  { %6623 = vmatprep.subr.bf16.mxu1 %v7293_v1 }
0x303c   :  { %6606 = vmatmul.mubr.msk.bf16.vlgmr.msra.gmra.mrb[0].mxu0 %vm125_vm2, %v8284_v35 }
0x303d   :  { %6619 = vmatprep.mubr.msk.bf16.mxu0 %vm7294_vm0, %v7293_v1  ;;  %6618 = vmatpush3.bf16.msra.mxu0 %v7124_v55 }
0x303e   :  { %6631 = vmatprep.subr.bf16.mxu0 %v7293_v1 }
0x3044   :  { %6620 = vmatmul.mubr.msk.bf16.vlgmr.msra.gmra.mrb[4].mxu0 %vm175_vm1, %v8367_v58 }
0x3045   :  { %6632 = vmatpush3.bf16.msra.mxu0 %v7126_v63  ;;  %6635 = vmatprep.mubr.msk.bf16.mxu0 %vm7294_vm0, %v7293_v1 }
0x3046   :  { %6633 = vmatprep.subr.bf16.mxu0 %v7293_v1 }
0x3049   :  { %6634 = vmatpush3.bf16.msra.mxu0 %v7128_v4 }
0x304a   :  { %6647 = vmatprep.subr.bf16.mxu0 %v7293_v1 }
0x310f   :  { %v3763_v30 = vpop.f32.mrb[0].mxu0 }
0x3110   :  { %v6607_v31 = vpop.f32.mrb[1].mxu0  ;;  %v3773_v61 = vadd.f32 %v3763_v30, %v7710_v39  ;;  %v3769_v60 = vadd.f32 %v3763_v30, %v7698_v24  ;;  %v3774_v62 = vadd.f32 %v3763_v30, %v7713_v43  ;;  %v3770_v22 = vadd.f32 %v3763_v30, %v7700_v25 }
0x3111   :  { %v3766_v21 = vpop.f32.mrb[2].mxu0  ;;  %v3772_v37 = vadd.f32 %v3763_v30, %v7704_v27  ;;  %v3771_v38 = vadd.f32 %v3763_v30, %v7702_v26 }
0x3112   :  { %v6608_v23 = vpop.f32.mrb[3].mxu0  ;;  %7134 = vtanh.f32 %v3773_v61 }
0x3113   :  { %7136 = vtanh.f32 %v3769_v60 }
0x3114   :  { %7138 = vtanh.f32 %v3774_v62 }
0x3115   :  { %7140 = vtanh.f32 %v3770_v22 }
0x3116   :  { %7142 = vtanh.f32 %v3772_v37 }
0x3117   :  { %7144 = vtanh.f32 %v3771_v38 }
0x311c   :  { %v7135_v40 = vpop.eup %7134 }
0x311d   :  { %v7137_v41 = vpop.eup %7136  ;;  %v3785_v42 = vmul.f32 %v7135_v40, %v7718_v45 }
0x311e   :  { %v7139_v46 = vpop.eup %7138  ;;  %v3781_v44 = vmul.f32 %v7137_v41, %v7718_v45 }
0x311f   :  { %v7141_v47 = vpop.eup %7140  ;;  %v3799_v9 = vsel %vm125_vm2, %v3785_v42, 0.0  ;;  %v3786_v49 = vmul.f32 %v7139_v46, %v7718_v45 }
0x3120   :  { %v7143_v50 = vpop.eup %7142  ;;  %3800 = vadd.xlane.f32.xlu1 %v3799_v9  ;;  %v3787_v51 = vsel %vm125_vm2, %v3781_v44, 0.0  ;;  %v3782_v52 = vmul.f32 %v7141_v47, %v7718_v45 }
0x3121   :  { %v7145_v53 = vpop.eup %7144  ;;  %3788 = vadd.xlane.f32.xlu0 %v3787_v51  ;;  %v3802_v33 = vsel %vm125_vm2, %v3786_v49, 0.0  ;;  %v3784_v34 = vmul.f32 %v7143_v50, %v7718_v45 }
0x3122   :  { %v3790_v59 = vsel %vm125_vm2, %v3782_v52, 0.0  ;;  %v3783_v32 = vmul.f32 %v7145_v53, %v7718_v45 }
0x3123   :  { %v3796_v29 = vsel %vm125_vm2, %v3784_v34, 0.0 }
0x3124   :  { %3803 = vadd.xlane.f32.xlu1 %v3802_v33  ;;  %v3793_v54 = vsel %vm125_vm2, %v3783_v32, 0.0 }
0x3125   :  { %3791 = vadd.xlane.f32.xlu0 %v3790_v59 }
0x3128   :  { %3797 = vadd.xlane.f32.xlu1 %v3796_v29 }
0x3129   :  { %3794 = vadd.xlane.f32.xlu0 %v3793_v54 }
0x31ad   :  { %v3801_v5 = vpop.xlane.xlu1 %3800 }
0x31ae   :  { %v3789_v11 = vpop.xlane.xlu0 %3788 }
0x31af   :  { %v3805_v16 = vmax.f32 %v3789_v11, %v3801_v5 }
0x31b1   :  { %v3804_v10 = vpop.xlane.xlu1 %3803 }
0x31b2   :  { %v3792_v14 = vpop.xlane.xlu0 %3791 }
0x31b3   :  { %v3806_v15 = vmax.f32 %v3792_v14, %v3804_v10 }
0x31b5   :  { %v3798_v17 = vpop.xlane.xlu1 %3797  ;;  %v3807_v19 = vmax.f32 %v3805_v16, %v3806_v15 }
0x31b6   :  { %v3795_v18 = vpop.xlane.xlu0 %3794 }
0x31b7   :  { %v3808_v20 = vmax.f32 %v3795_v18, %v3798_v17 }
0x31b9   :  { %v3809_v30 = vmax.f32 %v3807_v19, %v3808_v20 }
0x31bb   :  { %v3810_v31 = vsub.f32 %v3789_v11, %v3809_v30  ;;  %v3811_v61 = vsub.f32 %v3792_v14, %v3809_v30  ;;  %v3812_v60 = vsub.f32 %v3795_v18, %v3809_v30  ;;  %v3813_v62 = vsub.f32 %v3798_v17, %v3809_v30 }
0x31bc   :  { %v3814_v23 = vsub.f32 %v3801_v5, %v3809_v30  ;;  %v3815_v40 = vsub.f32 %v3804_v10, %v3809_v30 }
0x31bd   :  { %v3816_v21 = vmul.f32 1.442695, %v3810_v31  ;;  %v3818_v22 = vmul.f32 1.442695, %v3811_v61  ;;  %v3820_v37 = vmul.f32 1.442695, %v3812_v60 }
0x31be   :  { %v3822_v38 = vmul.f32 1.442695, %v3813_v62  ;;  %v3824_v41 = vmul.f32 1.442695, %v3814_v23  ;;  %v3826_v42 = vmul.f32 1.442695, %v3815_v40 }
0x31bf   :  { %7146 = vpow2.f32 %v3816_v21  ;;  %v7129_v21 = vld [vmem:[%s8799_s13] sm:$0xff]   ;;  %v7130_v23 = vld [vmem:[%s8799_s13 + $0x8] sm:$0xff]  }
0x31c0   :  { %7148 = vpow2.f32 %v3818_v22 }
0x31c1   :  { %7150 = vpow2.f32 %v3820_v37  ;;  %v3962_v37 = vpop.f32.mrb[4].mxu0 }
0x31c2   :  { %7152 = vpow2.f32 %v3822_v38  ;;  %v6621_v38 = vpop.f32.mrb[5].mxu0 }
0x31c3   :  { %7154 = vpow2.f32 %v3824_v41  ;;  %v3965_v40 = vpop.f32.mrb[6].mxu0 }
0x31c4   :  { %7156 = vpow2.f32 %v3826_v42  ;;  %v6622_v41 = vpop.f32.mrb[7].mxu0 }
0x31c9   :  { %v7147_v46 = vpop.eup %7146 }
0x31ca   :  { %v7149_v44 = vpop.eup %7148 }
0x31cb   :  { %v3828_v47 = vadd.f32 %v7149_v44, %v7147_v46  ;;  %v7151_v9 = vpop.eup %7150 }
0x31cc   :  { %v7153_v50 = vpop.eup %7152 }
0x31cd   :  { %v3829_v49 = vadd.f32 %v7151_v9, %v3828_v47  ;;  %v7155_v52 = vpop.eup %7154 }
0x31ce   :  { %v7157_v33 = vpop.eup %7156 }
0x31cf   :  { %v3830_v51 = vadd.f32 %v7153_v50, %v3829_v49 }
0x31d1   :  { %v3831_v53 = vadd.f32 %v7155_v52, %v3830_v51 }
0x31d3   :  { %v3832_v34 = vadd.f32 %v7157_v33, %v3831_v53 }
0x31d5   :  { %7158 = vrcp.f32 %v3832_v34 }
0x31df   :  { %v7159_v59 = vpop.eup %7158 }
0x31e0   :  { %v3834_v32 = vmul.f32 %v7159_v59, %v7147_v46  ;;  %v3835_v29 = vmul.f32 %v7159_v59, %v7149_v44  ;;  %v3836_v54 = vmul.f32 %v7159_v59, %v7151_v9  ;;  %v3837_v55 = vmul.f32 %v7159_v59, %v7153_v50 }
0x31e1   :  { %v3838_v56 = vmul.f32 %v7159_v59, %v7155_v52  ;;  %v3839_v5 = vmul.f32 %v7159_v59, %v7157_v33 }
0x31e2   :  { %v3840_v63 = vmul.f32 %v3834_v32, %v7653_v0  ;;  %v3841_v3 = vmul.f32 %v3835_v29, %v7655_v2  ;;  %v3842_v4 = vmul.f32 %v3836_v54, %v7671_v7  ;;  %v3843_v11 = vmul.f32 %v3837_v55, %v7669_v6 }
0x31e3   :  { %v3844_v16 = vmul.f32 %v3838_v56, %v7683_v12  ;;  %v3845_v19 = vmul.f32 %v3839_v5, %v7685_v13 }
0x31e4   :  { %v3846_v10 = vsel %vm125_vm2, %v3840_v63, 0.0  ;;  %v3847_v14 = vsel %vm125_vm2, %v3841_v3, 0.0  ;;  %v3849_v17 = vsel %vm125_vm2, %v3842_v4, 0.0  ;;  %v3851_v20 = vsel %vm125_vm2, %v3843_v11, 0.0 }
0x31e5   :  { %v3848_v15 = vadd.f32 %v3847_v14, %v3846_v10  ;;  %v3853_v31 = vsel %vm125_vm2, %v3844_v16, 0.0  ;;  %v3855_v60 = vsel %vm125_vm2, %v3845_v19, 0.0  ;;  %v7131_v10 = vld [vmem:[%s8804_s18] sm:$0xff]  }
0x31e6   :  { %v7132_v14 = vld [vmem:[%s8802_s16] sm:$0xff]  }
0x31e7   :  { %v3850_v18 = vadd.f32 %v3849_v17, %v3848_v15  ;;  %v7133_v15 = vld [vmem:[%s8804_s18 + $0x8] sm:$0xff]  }
0x31e9   :  { %v3852_v30 = vadd.f32 %v3851_v20, %v3850_v18 }
0x31eb   :  { %v3854_v61 = vadd.f32 %v3853_v31, %v3852_v30 }
0x31ed   :  { %v3856_v62 = vadd.f32 %v3855_v60, %v3854_v61 }
0x31ef   :  { %v3857_v22 = vpack.c.bf16 %v3856_v62, %v3856_v62 }
0x31f1   :  { %6614 = vmatmul.mubr.msk.bf16.vlgmr.msra.gmra.mrb[0].mxu1 %vm125_vm2, %v3857_v22  ;;  %6636 = vmatmul.mubr.msk.bf16.vlgmr.msra.gmra.mrb[8].mxu0 %vm125_vm2, %v3857_v22 }
0x31f2   :  { %6624 = vmatpush3.bf16.msra.mxu1 %v7129_v21  ;;  %6627 = vmatprep.mubr.msk.bf16.mxu1 %vm7294_vm0, %v7293_v1 }
0x31f3   :  { %6625 = vmatprep.subr.bf16.mxu1 %v7293_v1  ;;  %6649 = vmatprep.mubr.msk.bf16.mxu0 %vm7294_vm0, %v7293_v1 }
0x31f4   :  { %6648 = vmatpush3.bf16.msra.mxu0 %v7132_v14 }
0x31f6   :  { %6626 = vmatpush3.bf16.msra.mxu1 %v7130_v23 }
0x31f7   :  { %6639 = vmatprep.subr.bf16.mxu1 %v7293_v1 }
0x31f9   :  { %6628 = vmatmul.mubr.msk.bf16.vlgmr.msra.gmra.mrb[4].mxu1 %vm125_vm2, %v8284_v35  ;;  %6650 = vmatmul.mubr.msk.bf16.vlgmr.msra.gmra.mrb[12].mxu0 %vm175_vm1, %v8367_v58 }
0x31fa   :  { %6643 = vmatprep.mubr.msk.bf16.mxu1 %vm7294_vm0, %v7293_v1  ;;  %6640 = vmatpush3.bf16.msra.mxu1 %v7131_v10 }
0x31fb   :  { %6641 = vmatprep.subr.bf16.mxu1 %v7293_v1 }
0x31fe   :  { %6642 = vmatpush3.bf16.msra.mxu1 %v7133_v15 }
0x32c4   :  { %v3913_v42 = vpop.f32.mrb[0].mxu1  ;;  %v4106_v46 = vpop.f32.mrb[8].mxu0 }
0x32c5   :  { %v3963_v44 = vadd.f32 %v3962_v37, %v3913_v42  ;;  %v6615_v47 = vpop.f32.mrb[1].mxu1  ;;  %v6637_v9 = vpop.f32.mrb[9].mxu0 }
0x32c6   :  { %v3916_v49 = vpop.f32.mrb[2].mxu1  ;;  %v4109_v50 = vpop.f32.mrb[10].mxu0 }
0x32c7   :  { %v6616_v51 = vpop.f32.mrb[3].mxu1  ;;  %v6638_v52 = vpop.f32.mrb[11].mxu0  ;;  %v3968_v32 = vadd.f32 %v7788_v48, %v3963_v44  ;;  %v7166_v49 = vld [vmem:[%s8835_s6] sm:$0xff] (!%p5893_p13)   ;;  %v7311_v50 = vmov (!%p5893_p13), 0.0  }
0x32c8   :  { %6653 = vmatprep.subr.bf16.mxu0 (!%p5893_p13), %v7311_v50  ;;  %v7167_v51 = vld [vmem:[%s8835_s6 + $0x8] sm:$0xff] (!%p5893_p13)   ;;  %v7168_v52 = vld [vmem:[%s8835_s6 + $0x10] sm:$0xff] (!%p5893_p13)   ;;  %6669 = vmatprep.mubr.msk.bf16.mxu0 (!%p5893_p13), %vm7312_vm5, %v7311_v50 }
0x32c9   :  { %6654 = vmatpush3.bf16.msra.mxu0 (!%p5893_p13), %v7166_v49 }
0x32ca   :  { %6655 = vmatprep.subr.bf16.mxu0 (!%p5893_p13), %v7311_v50 }
0x32cc   :  { %v4019_v53 = vpop.f32.mrb[4].mxu1  ;;  %v4212_v61 = vpop.f32.mrb[12].mxu0 }
0x32cd   :  { %v4020_v33 = vadd.f32 %v7735_v8, %v4019_v53  ;;  %v6629_v35 = vpop.f32.mrb[5].mxu1  ;;  %v6651_v60 = vpop.f32.mrb[13].mxu0  ;;  %6656 = vmatpush3.bf16.msra.mxu0 (!%p5893_p13), %v7167_v51  ;;  %v7169_v53 = vld [vmem:[%s8835_s6 + $0x18] sm:$0xff] (!%p5893_p13)  }
0x32ce   :  { %v4022_v34 = vpop.f32.mrb[6].mxu1  ;;  %v4215_v62 = vpop.f32.mrb[14].mxu0  ;;  %6657 = vmatprep.subr.bf16.mxu0 (!%p5893_p13), %v7311_v50  ;;  %v7171_v35 = vld [vmem:[%s8835_s6 + $0x28] sm:$0xff] (!%p5893_p13)  }
0x32cf   :  { %4033 = vrot.lane.b32.xlu0 %v4020_v33, %s7296_s24  ;;  %v6630_v59 = vpop.f32.mrb[7].mxu1  ;;  %v4025_v29 = vadd.f32 %v4020_v33, %v3968_v32  ;;  %v6652_v58 = vpop.f32.mrb[15].mxu0  ;;  %v7170_v33 = vld [vmem:[%s8835_s6 + $0x20] sm:$0xff] (!%p5893_p13)   ;;  %v7172_v34 = vld [vmem:[%s8835_s6 + $0x30] sm:$0xff] (!%p5893_p13)  }
0x32d1   :  { %v5882_v54 = vmul.f32 -1.442695, %v4025_v29  ;;  %6658 = vmatpush3.bf16.msra.mxu0 (!%p5893_p13), %v7168_v52 }
0x32d2   :  { %6659 = vmatprep.subr.bf16.mxu0 (!%p5893_p13), %v7311_v50 }
0x32d3   :  { %7160 = vpow2.f32 %v5882_v54 }
0x32d5   :  { %6660 = vmatpush3.bf16.msra.mxu0 (!%p5893_p13), %v7169_v53 }
0x32d6   :  { %6661 = vmatprep.subr.bf16.mxu0 (!%p5893_p13), %v7311_v50 }
0x32d9   :  { %6662 = vmatpush3.bf16.msra.mxu0 (!%p5893_p13), %v7170_v33 }
0x32da   :  { %6663 = vmatprep.subr.bf16.mxu0 (!%p5893_p13), %v7311_v50 }
0x32dd   :  { %v7161_v55 = vpop.eup %7160  ;;  %6664 = vmatpush3.bf16.msra.mxu0 (!%p5893_p13), %v7171_v35 }
0x32de   :  { %v4029_v56 = vadd.f32 1.0, %v7161_v55  ;;  %6665 = vmatprep.subr.bf16.mxu0 (!%p5893_p13), %v7311_v50  ;;  %v7173_v55 = vld [vmem:[%s8835_s6 + $0x38] sm:$0xff] (!%p5893_p13)  }
0x32e0   :  { %7162 = vrcp.f32 %v4029_v56 }
0x32e1   :  { %6666 = vmatpush3.bf16.msra.mxu0 (!%p5893_p13), %v7172_v34 }
0x32e2   :  { %6667 = vmatprep.subr.bf16.mxu0 (!%p5893_p13), %v7311_v50 }
0x32e5   :  { %6668 = vmatpush3.bf16.msra.mxu0 (!%p5893_p13), %v7173_v55 }
0x32ea   :  { %v7163_v63 = vpop.eup %7162 }
0x32eb   :  { %v4043_v17 = vsub.f32 1.0, %v7163_v63  ;;  %v4049_v20 = vmul.f32 %v7163_v63, %v8279_v28 }
0x3341   :  { %v4034_v3 = vpop.permute.xlu0 %4033 }
0x3342   :  { %v4036_v4 = vmul.f32 %v7163_v63, %v4034_v3 }
0x3344   :  { %4038 = vrot.lane.b32.xlu1 %v4036_v4, %s7296_s24 }
0x33b6   :  { %v4039_v5 = vpop.permute.xlu1 %4038 }
0x33b7   :  { %v4041_v11 = vadd.f32 %v4039_v5, %v3968_v32 }
0x33b9   :  { %7164 = vtanh.f32 %v4041_v11  ;;  %v7313_v11 = vmov (!%p5893_p13), 1.0|1.0  }
0x33c3   :  { %v7165_v16 = vpop.eup %7164 }
0x33c4   :  { %4045 = vrot.lane.b32.xlu1 %v7165_v16, %s7298_s14 }
0x3436   :  { %v4046_v18 = vpop.permute.xlu1 %4045 }
0x3437   :  { %v4048_v19 = vmul.f32 %v4046_v18, %v4043_v17 }
0x3439   :  { %v8435_v30 = vadd.f32 %v4049_v20, %v4048_v19 }
0x343b   :  { %v4051_v31 = vpack.c.bf16 %v8435_v30, %v8435_v30 }
0x343d   :  { %4113 = vrot.lane.b32.xlu1 %v4051_v31, %s7298_s14 }
0x34af   :  { %v8440_v21 = vpop.permute.xlu1 %4113 }
0x34b0   :  { %6644 = vmatmul.mubr.msk.bf16.vlgmr.msra.gmra.mrb[8].mxu1 %vm125_vm2, %v8440_v21 }
0x3583   :  { %v4164_v22 = vpop.f32.mrb[8].mxu1 }
0x3584   :  { %v4165_v23 = vadd.f32 %v4164_v22, %v4106_v46  ;;  %v6645_v28 = vpop.f32.mrb[9].mxu1  ;;  %4226 = sbr.rel (%p5893_p13) target bundleno = 14362 (0x381a), region = 113 }
0x3585   :  { %v4167_v37 = vpop.f32.mrb[10].mxu1 }
0x3586   :  { %v4218_v38 = vadd.f32 %v4212_v61, %v4165_v23  ;;  %v6646_v40 = vpop.f32.mrb[11].mxu1 }
0x3588   :  { %v4219_v41 = vadd.f32 %v7818_v36, %v4218_v38 }
0x358a   :  { %5891 = vst [vmem:[%s8806_s20 + $0x28] sm:$0xff] %v4219_v41  ;;  %v4227_v42 = vsel (!%p5893_p13), %vm1090_vm3, %v4219_v41, -1e+30 }
0x358b   :  { %4228 = vmax.xlane.f32.xlu0 %v4227_v42 }
0x3618   :  { %v4229_v44 = vpop.xlane.xlu0 %4228 }
0x3619   :  { %vm4230_vm14 = vcmp.ge.f32.partialorder %v4227_v42, %v4229_v44 }
0x361a   :  { %v4231_v46 = vsel %vm4230_vm14, %v7636_v57, 128 }
0x361b   :  { %v4233_v47 = vshra.s32 %v4231_v46, 16  ;;  %v4232_v59 = vand.u32 65535, %v4231_v46 }
0x361d   :  { %v4235_v9 = vcvt.s32.f32 %v4233_v47  ;;  %v4234_v29 = vcvt.s32.f32 %v4232_v59 }
0x361f   :  { %4236 = vmin.xlane.f32.xlu0 %v4235_v9 }
0x36ac   :  { %v4237_v32 = vpop.xlane.xlu0 %4236 }
0x36ad   :  { %vm4238_vm15 = vcmp.eq.f32.partialorder %v4235_v9, %v4237_v32  ;;  %v4243_v56 = vcvt.f32.s32 %v4237_v32 }
0x36ae   :  { %v4239_v54 = vsel %vm4238_vm15, %v4234_v29, inf }
0x36af   :  { %4240 = vmin.xlane.f32.xlu1 %v4239_v54  ;;  %v4244_v3 = vshll.u32 %v4243_v56, 16 }
0x373c   :  { %v4241_v63 = vpop.xlane.xlu1 %4240 }
0x373d   :  { %v4242_v4 = vcvt.f32.s32 %v4241_v63 }
0x373f   :  { %v4245_v5 = vadd.s32 %v4244_v3, %v4242_v4 }
0x3741   :  { %vm4246_vm6 = vcmp.eq.s32.totalorder %v7636_v57, %v4245_v5 }
0x3742   :  { %vm5903_vm7 = vmpackc.low %vm4246_vm6, %vm4246_vm6 }
0x3743   :  { %6670 = vmatmul.mubr.msk.bf16.vlgmr.msra.gmra.mrb[0].mxu0 %vm5903_vm7, %v7313_v11 }
0x3816   :  { %v4348_v10 = vpop.f32.mrb[0].mxu0 }
0x3817   :  { %v4354_v14 = vpack.c.bf16 %v4348_v10, %v4348_v10  ;;  %v6671_v15 = vpop.f32.mrb[1].mxu0 }
0x3818   :  { %v4351_v16 = vpop.f32.mrb[2].mxu0 }
0x3819   :  { %4355 = vst.msk [vmem:[#allocation3] sm:$0xf] %vm1092_vm4, %v4354_v14  ;;  %v6672_v17 = vpop.f32.mrb[3].mxu0 }
0x381a PF:  { %s5905_s26 = sld [smem:[#allocation5 + $0x5]] }
0x3820   :  { %p5906_p0 = scmp.eq.s32.totalorder %s5905_s26, 0 }
0x3821   :  { %s8836_s27 = sld [smem:[#allocation9_spill]] (!%p5906_p0) }
0x3822   :  { %4360 = sbr.rel (%p5906_p0) target bundleno = 14377 (0x3829), region = 117 }
0x3827   :  { %v5907_v18 = vld [vmem:[%s8836_s27 + $0x14] sm:$0xf] (!%p5906_p0) }
0x3828   :  { %4363 = vst.msk [vmem:[#allocation3] sm:$0xf] (!%p5906_p0), %vm1092_vm4, %v5907_v18 }
0x3829 PF:  { %6673 = vmatprep.subr.bf16.mxu0 %v7293_v1  ;;  %v7174_v19 = vld [vmem:[%s8793_s7] sm:$0xff]   ;;  %6677 = vmatprep.mubr.msk.bf16.mxu0 %vm7294_vm0, %v7293_v1  ;;  %v7175_v20 = vld [vmem:[%s8793_s7 + $0x8] sm:$0xff]   ;;  %s5929_s29 = sld [smem:[#allocation5 + $0x6]] }
0x382a   :  { %6681 = vmatprep.subr.bf16.mxu1 %v7293_v1  ;;  %6685 = vmatprep.mubr.msk.bf16.mxu1 %vm7294_vm0, %v7293_v1  ;;  %v7176_v54 = vld [vmem:[%s8797_s11] sm:$0xff]   ;;  %v7179_v3 = vld [vmem:[%s8798_s12 + $0x8] sm:$0xff]  }
0x382b   :  { %6674 = vmatpush3.bf16.msra.mxu0 %v7174_v19  ;;  %v7177_v55 = vld [vmem:[%s8798_s12] sm:$0xff]   ;;  %v7180_v4 = vld [vmem:[%s8803_s17 + $0x8] sm:$0xff]  }
0x382c   :  { %6675 = vmatprep.subr.bf16.mxu0 %v7293_v1  ;;  %6682 = vmatpush3.bf16.msra.mxu1 %v7177_v55  ;;  %v7178_v63 = vld [vmem:[%s8803_s17] sm:$0xff]  }
0x382d   :  { %6683 = vmatprep.subr.bf16.mxu1 %v7293_v1 }
0x382f   :  { %6676 = vmatpush3.bf16.msra.mxu0 %v7175_v20  ;;  %v8523_v56 = vld [vmem:[#allocation3] sm:$0xf]  ;;  %p5930_p1 = scmp.ne.s32.totalorder %s5929_s29, 0 }
0x3830   :  { %6689 = vmatprep.subr.bf16.mxu0 %v7293_v1  ;;  %6684 = vmatpush3.bf16.msra.mxu1 %v7179_v3  ;;  %s8837_s10 = sld [smem:[#allocation10_spill]] (!%p5930_p1)  ;;  %vm7315_vm10 = vmmov (!%p5930_p1), 0  }
0x3831   :  { %6695 = vmatprep.subr.bf16.mxu1 %v7293_v1 }
0x3832   :  { %6678 = vmatmul.mubr.msk.bf16.vlgmr.msra.gmra.mrb[0].mxu0 %vm125_vm2, %v8440_v21 }
0x3833   :  { %6691 = vmatprep.mubr.msk.bf16.mxu0 %vm7294_vm0, %v7293_v1  ;;  %6690 = vmatpush3.bf16.msra.mxu0 %v7176_v54 }
0x3834   :  { %6703 = vmatprep.subr.bf16.mxu0 %v7293_v1 }
0x383a   :  { %6692 = vmatmul.mubr.msk.bf16.vlgmr.msra.gmra.mrb[4].mxu0 %vm175_vm1, %v8523_v56 }
0x383b   :  { %6704 = vmatpush3.bf16.msra.mxu0 %v7178_v63  ;;  %6707 = vmatprep.mubr.msk.bf16.mxu0 %vm7294_vm0, %v7293_v1 }
0x383c   :  { %6705 = vmatprep.subr.bf16.mxu0 %v7293_v1 }
0x383f   :  { %6706 = vmatpush3.bf16.msra.mxu0 %v7180_v4 }
0x3840   :  { %6719 = vmatprep.subr.bf16.mxu0 %v7293_v1 }
0x3905   :  { %v4415_v31 = vpop.f32.mrb[0].mxu0 }
0x3906   :  { %v6679_v61 = vpop.f32.mrb[1].mxu0  ;;  %v4425_v60 = vadd.f32 %v4415_v31, %v7710_v39  ;;  %v4421_v62 = vadd.f32 %v4415_v31, %v7698_v24  ;;  %v4426_v58 = vadd.f32 %v4415_v31, %v7713_v43  ;;  %v4422_v23 = vadd.f32 %v4415_v31, %v7700_v25 }
0x3907   :  { %v4418_v22 = vpop.f32.mrb[2].mxu0  ;;  %v4424_v37 = vadd.f32 %v4415_v31, %v7704_v27  ;;  %v4423_v38 = vadd.f32 %v4415_v31, %v7702_v26 }
0x3908   :  { %v6680_v28 = vpop.f32.mrb[3].mxu0  ;;  %7186 = vtanh.f32 %v4425_v60 }
0x3909   :  { %7188 = vtanh.f32 %v4421_v62 }
0x390a   :  { %7190 = vtanh.f32 %v4426_v58 }
0x390b   :  { %7192 = vtanh.f32 %v4422_v23 }
0x390c   :  { %7194 = vtanh.f32 %v4424_v37 }
0x390d   :  { %7196 = vtanh.f32 %v4423_v38 }
0x3912   :  { %v7187_v40 = vpop.eup %7186 }
0x3913   :  { %v7189_v41 = vpop.eup %7188  ;;  %v4437_v42 = vmul.f32 %v7187_v40, %v7718_v45 }
0x3914   :  { %v7191_v44 = vpop.eup %7190  ;;  %v4433_v46 = vmul.f32 %v7189_v41, %v7718_v45 }
0x3915   :  { %v7193_v47 = vpop.eup %7192  ;;  %v4451_v9 = vsel %vm125_vm2, %v4437_v42, 0.0  ;;  %v4438_v49 = vmul.f32 %v7191_v44, %v7718_v45 }
0x3916   :  { %v7195_v50 = vpop.eup %7194  ;;  %4452 = vadd.xlane.f32.xlu1 %v4451_v9  ;;  %v4439_v51 = vsel %vm125_vm2, %v4433_v46, 0.0  ;;  %v4434_v52 = vmul.f32 %v7193_v47, %v7718_v45 }
0x3917   :  { %v7197_v53 = vpop.eup %7196  ;;  %4440 = vadd.xlane.f32.xlu0 %v4439_v51  ;;  %v4454_v33 = vsel %vm125_vm2, %v4438_v49, 0.0  ;;  %v4436_v35 = vmul.f32 %v7195_v50, %v7718_v45 }
0x3918   :  { %v4442_v34 = vsel %vm125_vm2, %v4434_v52, 0.0  ;;  %v4435_v59 = vmul.f32 %v7197_v53, %v7718_v45 }
0x3919   :  { %v4448_v32 = vsel %vm125_vm2, %v4436_v35, 0.0 }
0x391a   :  { %4455 = vadd.xlane.f32.xlu1 %v4454_v33  ;;  %v4445_v29 = vsel %vm125_vm2, %v4435_v59, 0.0 }
0x391b   :  { %4443 = vadd.xlane.f32.xlu0 %v4442_v34 }
0x391e   :  { %4449 = vadd.xlane.f32.xlu1 %v4448_v32 }
0x391f   :  { %4446 = vadd.xlane.f32.xlu0 %v4445_v29 }
0x39a3   :  { %v4453_v5 = vpop.xlane.xlu1 %4452 }
0x39a4   :  { %v4441_v11 = vpop.xlane.xlu0 %4440 }
0x39a5   :  { %v4457_v16 = vmax.f32 %v4441_v11, %v4453_v5 }
0x39a7   :  { %v4456_v10 = vpop.xlane.xlu1 %4455 }
0x39a8   :  { %v4444_v14 = vpop.xlane.xlu0 %4443 }
0x39a9   :  { %v4458_v15 = vmax.f32 %v4444_v14, %v4456_v10 }
0x39ab   :  { %v4450_v17 = vpop.xlane.xlu1 %4449  ;;  %v4459_v19 = vmax.f32 %v4457_v16, %v4458_v15 }
0x39ac   :  { %v4447_v18 = vpop.xlane.xlu0 %4446 }
0x39ad   :  { %v4460_v20 = vmax.f32 %v4447_v18, %v4450_v17 }
0x39af   :  { %v4461_v31 = vmax.f32 %v4459_v19, %v4460_v20 }
0x39b1   :  { %v4462_v61 = vsub.f32 %v4441_v11, %v4461_v31  ;;  %v4463_v60 = vsub.f32 %v4444_v14, %v4461_v31  ;;  %v4464_v62 = vsub.f32 %v4447_v18, %v4461_v31  ;;  %v4465_v58 = vsub.f32 %v4450_v17, %v4461_v31 }
0x39b2   :  { %v4466_v28 = vsub.f32 %v4453_v5, %v4461_v31  ;;  %v4467_v40 = vsub.f32 %v4456_v10, %v4461_v31 }
0x39b3   :  { %v4468_v22 = vmul.f32 1.442695, %v4462_v61  ;;  %v4470_v23 = vmul.f32 1.442695, %v4463_v60  ;;  %v4472_v37 = vmul.f32 1.442695, %v4464_v62 }
0x39b4   :  { %v4474_v38 = vmul.f32 1.442695, %v4465_v58  ;;  %v4476_v41 = vmul.f32 1.442695, %v4466_v28  ;;  %v4478_v42 = vmul.f32 1.442695, %v4467_v40 }
0x39b5   :  { %7198 = vpow2.f32 %v4468_v22  ;;  %v7181_v22 = vld [vmem:[%s8799_s13] sm:$0xff]   ;;  %v7182_v28 = vld [vmem:[%s8799_s13 + $0x8] sm:$0xff]  }
0x39b6   :  { %7200 = vpow2.f32 %v4470_v23 }
0x39b7   :  { %7202 = vpow2.f32 %v4472_v37  ;;  %v4614_v37 = vpop.f32.mrb[4].mxu0 }
0x39b8   :  { %7204 = vpow2.f32 %v4474_v38  ;;  %v6693_v38 = vpop.f32.mrb[5].mxu0 }
0x39b9   :  { %7206 = vpow2.f32 %v4476_v41  ;;  %v4617_v40 = vpop.f32.mrb[6].mxu0 }
0x39ba   :  { %7208 = vpow2.f32 %v4478_v42  ;;  %v6694_v41 = vpop.f32.mrb[7].mxu0 }
0x39bf   :  { %v7199_v44 = vpop.eup %7198 }
0x39c0   :  { %v7201_v46 = vpop.eup %7200 }
0x39c1   :  { %v4480_v47 = vadd.f32 %v7201_v46, %v7199_v44  ;;  %v7203_v9 = vpop.eup %7202 }
0x39c2   :  { %v7205_v50 = vpop.eup %7204 }
0x39c3   :  { %v4481_v49 = vadd.f32 %v7203_v9, %v4480_v47  ;;  %v7207_v52 = vpop.eup %7206 }
0x39c4   :  { %v7209_v33 = vpop.eup %7208 }
0x39c5   :  { %v4482_v51 = vadd.f32 %v7205_v50, %v4481_v49 }
0x39c7   :  { %v4483_v53 = vadd.f32 %v7207_v52, %v4482_v51 }
0x39c9   :  { %v4484_v35 = vadd.f32 %v7209_v33, %v4483_v53 }
0x39cb   :  { %7210 = vrcp.f32 %v4484_v35 }
0x39d5   :  { %v7211_v34 = vpop.eup %7210 }
0x39d6   :  { %v4486_v59 = vmul.f32 %v7211_v34, %v7199_v44  ;;  %v4487_v32 = vmul.f32 %v7211_v34, %v7201_v46  ;;  %v4488_v29 = vmul.f32 %v7211_v34, %v7203_v9  ;;  %v4489_v54 = vmul.f32 %v7211_v34, %v7205_v50 }
0x39d7   :  { %v4490_v55 = vmul.f32 %v7211_v34, %v7207_v52  ;;  %v4491_v5 = vmul.f32 %v7211_v34, %v7209_v33 }
0x39d8   :  { %v4492_v63 = vmul.f32 %v4486_v59, %v7653_v0  ;;  %v4493_v3 = vmul.f32 %v4487_v32, %v7655_v2  ;;  %v4494_v4 = vmul.f32 %v4488_v29, %v7671_v7  ;;  %v4495_v11 = vmul.f32 %v4489_v54, %v7669_v6 }
0x39d9   :  { %v4496_v16 = vmul.f32 %v4490_v55, %v7683_v12  ;;  %v4497_v19 = vmul.f32 %v4491_v5, %v7685_v13 }
0x39da   :  { %v4498_v10 = vsel %vm125_vm2, %v4492_v63, 0.0  ;;  %v4499_v14 = vsel %vm125_vm2, %v4493_v3, 0.0  ;;  %v4501_v17 = vsel %vm125_vm2, %v4494_v4, 0.0  ;;  %v4503_v20 = vsel %vm125_vm2, %v4495_v11, 0.0 }
0x39db   :  { %v4500_v15 = vadd.f32 %v4499_v14, %v4498_v10  ;;  %v4505_v61 = vsel %vm125_vm2, %v4496_v16, 0.0  ;;  %v4507_v62 = vsel %vm125_vm2, %v4497_v19, 0.0  ;;  %v7183_v10 = vld [vmem:[%s8804_s18] sm:$0xff]  }
0x39dc   :  { %v7184_v14 = vld [vmem:[%s8802_s16] sm:$0xff]  }
0x39dd   :  { %v4502_v18 = vadd.f32 %v4501_v17, %v4500_v15  ;;  %v7185_v15 = vld [vmem:[%s8804_s18 + $0x8] sm:$0xff]  }
0x39df   :  { %v4504_v31 = vadd.f32 %v4503_v20, %v4502_v18 }
0x39e1   :  { %v4506_v60 = vadd.f32 %v4505_v61, %v4504_v31 }
0x39e3   :  { %v4508_v58 = vadd.f32 %v4507_v62, %v4506_v60 }
0x39e5   :  { %v4509_v23 = vpack.c.bf16 %v4508_v58, %v4508_v58 }
0x39e7   :  { %6686 = vmatmul.mubr.msk.bf16.vlgmr.msra.gmra.mrb[0].mxu1 %vm125_vm2, %v4509_v23  ;;  %6708 = vmatmul.mubr.msk.bf16.vlgmr.msra.gmra.mrb[8].mxu0 %vm125_vm2, %v4509_v23 }
0x39e8   :  { %6696 = vmatpush3.bf16.msra.mxu1 %v7181_v22  ;;  %6699 = vmatprep.mubr.msk.bf16.mxu1 %vm7294_vm0, %v7293_v1 }
0x39e9   :  { %6697 = vmatprep.subr.bf16.mxu1 %v7293_v1  ;;  %6721 = vmatprep.mubr.msk.bf16.mxu0 %vm7294_vm0, %v7293_v1 }
0x39ea   :  { %6720 = vmatpush3.bf16.msra.mxu0 %v7184_v14 }
0x39ec   :  { %6698 = vmatpush3.bf16.msra.mxu1 %v7182_v28 }
0x39ed   :  { %6711 = vmatprep.subr.bf16.mxu1 %v7293_v1 }
0x39ef   :  { %6700 = vmatmul.mubr.msk.bf16.vlgmr.msra.gmra.mrb[4].mxu1 %vm125_vm2, %v8440_v21  ;;  %6722 = vmatmul.mubr.msk.bf16.vlgmr.msra.gmra.mrb[12].mxu0 %vm175_vm1, %v8523_v56 }
0x39f0   :  { %6715 = vmatprep.mubr.msk.bf16.mxu1 %vm7294_vm0, %v7293_v1  ;;  %6712 = vmatpush3.bf16.msra.mxu1 %v7183_v10 }
0x39f1   :  { %6713 = vmatprep.subr.bf16.mxu1 %v7293_v1 }
0x39f4   :  { %6714 = vmatpush3.bf16.msra.mxu1 %v7185_v15 }
0x3aba   :  { %v4565_v42 = vpop.f32.mrb[0].mxu1  ;;  %v4758_v44 = vpop.f32.mrb[8].mxu0 }
0x3abb   :  { %v4615_v46 = vadd.f32 %v4614_v37, %v4565_v42  ;;  %v6687_v47 = vpop.f32.mrb[1].mxu1  ;;  %v6709_v9 = vpop.f32.mrb[9].mxu0 }
0x3abc   :  { %v4568_v49 = vpop.f32.mrb[2].mxu1  ;;  %v4761_v50 = vpop.f32.mrb[10].mxu0 }
0x3abd   :  { %v6688_v51 = vpop.f32.mrb[3].mxu1  ;;  %v6710_v52 = vpop.f32.mrb[11].mxu0  ;;  %v4620_v59 = vadd.f32 %v7788_v48, %v4615_v46  ;;  %v7218_v49 = vld [vmem:[%s8837_s10] sm:$0xff] (!%p5930_p1)   ;;  %v7314_v50 = vmov (!%p5930_p1), 0.0  }
0x3abe   :  { %6725 = vmatprep.subr.bf16.mxu0 (!%p5930_p1), %v7314_v50  ;;  %v7219_v51 = vld [vmem:[%s8837_s10 + $0x8] sm:$0xff] (!%p5930_p1)   ;;  %v7220_v52 = vld [vmem:[%s8837_s10 + $0x10] sm:$0xff] (!%p5930_p1)   ;;  %6741 = vmatprep.mubr.msk.bf16.mxu0 (!%p5930_p1), %vm7315_vm10, %v7314_v50 }
0x3abf   :  { %6726 = vmatpush3.bf16.msra.mxu0 (!%p5930_p1), %v7218_v49 }
0x3ac0   :  { %6727 = vmatprep.subr.bf16.mxu0 (!%p5930_p1), %v7314_v50 }
0x3ac2   :  { %v4671_v53 = vpop.f32.mrb[4].mxu1  ;;  %v4864_v60 = vpop.f32.mrb[12].mxu0 }
0x3ac3   :  { %v4672_v33 = vadd.f32 %v7735_v8, %v4671_v53  ;;  %v6701_v21 = vpop.f32.mrb[5].mxu1  ;;  %v6723_v62 = vpop.f32.mrb[13].mxu0  ;;  %6728 = vmatpush3.bf16.msra.mxu0 (!%p5930_p1), %v7219_v51  ;;  %v7221_v53 = vld [vmem:[%s8837_s10 + $0x18] sm:$0xff] (!%p5930_p1)  }
0x3ac4   :  { %v4674_v35 = vpop.f32.mrb[6].mxu1  ;;  %v4867_v58 = vpop.f32.mrb[14].mxu0  ;;  %6729 = vmatprep.subr.bf16.mxu0 (!%p5930_p1), %v7314_v50  ;;  %v7223_v21 = vld [vmem:[%s8837_s10 + $0x28] sm:$0xff] (!%p5930_p1)  }
0x3ac5   :  { %4685 = vrot.lane.b32.xlu0 %v4672_v33, %s7296_s24  ;;  %v6702_v34 = vpop.f32.mrb[7].mxu1  ;;  %v4677_v32 = vadd.f32 %v4672_v33, %v4620_v59  ;;  %v6724_v56 = vpop.f32.mrb[15].mxu0  ;;  %v7222_v33 = vld [vmem:[%s8837_s10 + $0x20] sm:$0xff] (!%p5930_p1)   ;;  %v7224_v35 = vld [vmem:[%s8837_s10 + $0x30] sm:$0xff] (!%p5930_p1)  }
0x3ac7   :  { %v5919_v29 = vmul.f32 -1.442695, %v4677_v32  ;;  %6730 = vmatpush3.bf16.msra.mxu0 (!%p5930_p1), %v7220_v52 }
0x3ac8   :  { %6731 = vmatprep.subr.bf16.mxu0 (!%p5930_p1), %v7314_v50 }
0x3ac9   :  { %7212 = vpow2.f32 %v5919_v29 }
0x3acb   :  { %6732 = vmatpush3.bf16.msra.mxu0 (!%p5930_p1), %v7221_v53 }
0x3acc   :  { %6733 = vmatprep.subr.bf16.mxu0 (!%p5930_p1), %v7314_v50 }
0x3acf   :  { %6734 = vmatpush3.bf16.msra.mxu0 (!%p5930_p1), %v7222_v33 }
0x3ad0   :  { %6735 = vmatprep.subr.bf16.mxu0 (!%p5930_p1), %v7314_v50 }
0x3ad3   :  { %v7213_v54 = vpop.eup %7212  ;;  %6736 = vmatpush3.bf16.msra.mxu0 (!%p5930_p1), %v7223_v21 }
0x3ad4   :  { %v4681_v55 = vadd.f32 1.0, %v7213_v54  ;;  %6737 = vmatprep.subr.bf16.mxu0 (!%p5930_p1), %v7314_v50  ;;  %v7225_v54 = vld [vmem:[%s8837_s10 + $0x38] sm:$0xff] (!%p5930_p1)  }
0x3ad6   :  { %7214 = vrcp.f32 %v4681_v55 }
0x3ad7   :  { %6738 = vmatpush3.bf16.msra.mxu0 (!%p5930_p1), %v7224_v35 }
0x3ad8   :  { %6739 = vmatprep.subr.bf16.mxu0 (!%p5930_p1), %v7314_v50 }
0x3adb   :  { %6740 = vmatpush3.bf16.msra.mxu0 (!%p5930_p1), %v7225_v54 }
0x3ae0   :  { %v7215_v63 = vpop.eup %7214 }
0x3ae1   :  { %v4695_v17 = vsub.f32 1.0, %v7215_v63  ;;  %v4701_v20 = vmul.f32 %v7215_v63, %v8435_v30 }
0x3b37   :  { %v4686_v3 = vpop.permute.xlu0 %4685 }
0x3b38   :  { %v4688_v4 = vmul.f32 %v7215_v63, %v4686_v3 }
0x3b3a   :  { %4690 = vrot.lane.b32.xlu1 %v4688_v4, %s7296_s24 }
0x3bac   :  { %v4691_v5 = vpop.permute.xlu1 %4690 }
0x3bad   :  { %v4693_v11 = vadd.f32 %v4691_v5, %v4620_v59 }
0x3baf   :  { %7216 = vtanh.f32 %v4693_v11  ;;  %v7316_v11 = vmov (!%p5930_p1), 1.0|1.0  }
0x3bb9   :  { %v7217_v16 = vpop.eup %7216 }
0x3bba   :  { %4697 = vrot.lane.b32.xlu1 %v7217_v16, %s7298_s14 }
0x3c2c   :  { %v4698_v18 = vpop.permute.xlu1 %4697 }
0x3c2d   :  { %v4700_v19 = vmul.f32 %v4698_v18, %v4695_v17 }
0x3c2f   :  { %v8591_v31 = vadd.f32 %v4701_v20, %v4700_v19 }
0x3c31   :  { %v4703_v61 = vpack.c.bf16 %v8591_v31, %v8591_v31 }
0x3c33   :  { %4765 = vrot.lane.b32.xlu1 %v4703_v61, %s7298_s14 }
0x3ca5   :  { %v8596_v22 = vpop.permute.xlu1 %4765 }
0x3ca6   :  { %6716 = vmatmul.mubr.msk.bf16.vlgmr.msra.gmra.mrb[8].mxu1 %vm125_vm2, %v8596_v22 }
0x3d79   :  { %v4816_v23 = vpop.f32.mrb[8].mxu1 }
0x3d7a   :  { %v4817_v28 = vadd.f32 %v4816_v23, %v4758_v44  ;;  %v6717_v30 = vpop.f32.mrb[9].mxu1  ;;  %4878 = sbr.rel (%p5930_p1) target bundleno = 16400 (0x4010), region = 121 }
0x3d7b   :  { %v4819_v37 = vpop.f32.mrb[10].mxu1 }
0x3d7c   :  { %v4870_v38 = vadd.f32 %v4864_v60, %v4817_v28  ;;  %v6718_v40 = vpop.f32.mrb[11].mxu1 }
0x3d7e   :  { %v4871_v41 = vadd.f32 %v7818_v36, %v4870_v38 }
0x3d80   :  { %5928 = vst [vmem:[%s8806_s20 + $0x30] sm:$0xff] %v4871_v41  ;;  %v4879_v42 = vsel (!%p5930_p1), %vm1090_vm3, %v4871_v41, -1e+30 }
0x3d81   :  { %4880 = vmax.xlane.f32.xlu0 %v4879_v42 }
0x3e0e   :  { %v4881_v46 = vpop.xlane.xlu0 %4880 }
0x3e0f   :  { %vm4882_vm8 = vcmp.ge.f32.partialorder %v4879_v42, %v4881_v46 }
0x3e10   :  { %v4883_v44 = vsel %vm4882_vm8, %v7636_v57, 128 }
0x3e11   :  { %v4885_v47 = vshra.s32 %v4883_v44, 16  ;;  %v4884_v34 = vand.u32 65535, %v4883_v44 }
0x3e13   :  { %v4887_v9 = vcvt.s32.f32 %v4885_v47  ;;  %v4886_v32 = vcvt.s32.f32 %v4884_v34 }
0x3e15   :  { %4888 = vmin.xlane.f32.xlu0 %v4887_v9 }
0x3ea2   :  { %v4889_v59 = vpop.xlane.xlu0 %4888 }
0x3ea3   :  { %vm4890_vm9 = vcmp.eq.f32.partialorder %v4887_v9, %v4889_v59  ;;  %v4895_v55 = vcvt.f32.s32 %v4889_v59 }
0x3ea4   :  { %v4891_v29 = vsel %vm4890_vm9, %v4886_v32, inf }
0x3ea5   :  { %4892 = vmin.xlane.f32.xlu1 %v4891_v29  ;;  %v4896_v3 = vshll.u32 %v4895_v55, 16 }
0x3f32   :  { %v4893_v63 = vpop.xlane.xlu1 %4892 }
0x3f33   :  { %v4894_v4 = vcvt.f32.s32 %v4893_v63 }
0x3f35   :  { %v4897_v5 = vadd.s32 %v4896_v3, %v4894_v4 }
0x3f37   :  { %vm4898_vm11 = vcmp.eq.s32.totalorder %v7636_v57, %v4897_v5 }
0x3f38   :  { %vm5940_vm12 = vmpackc.low %vm4898_vm11, %vm4898_vm11 }
0x3f39   :  { %6742 = vmatmul.mubr.msk.bf16.vlgmr.msra.gmra.mrb[0].mxu0 %vm5940_vm12, %v7316_v11 }
0x400c   :  { %v5000_v10 = vpop.f32.mrb[0].mxu0 }
0x400d   :  { %v5006_v14 = vpack.c.bf16 %v5000_v10, %v5000_v10  ;;  %v6743_v15 = vpop.f32.mrb[1].mxu0 }
0x400e   :  { %v5003_v16 = vpop.f32.mrb[2].mxu0 }
0x400f   :  { %5007 = vst.msk [vmem:[#allocation3] sm:$0xf] %vm1092_vm4, %v5006_v14  ;;  %v6744_v17 = vpop.f32.mrb[3].mxu0 }
0x4010 PF:  { %s5942_s6 = sld [smem:[#allocation5 + $0x6]] }
0x4016   :  { %p5943_p2 = scmp.eq.s32.totalorder %s5942_s6, 0 }
0x4017   :  { %s8838_s0 = sld [smem:[#allocation9_spill]] (!%p5943_p2) }
0x4018   :  { %5012 = sbr.rel (%p5943_p2) target bundleno = 16415 (0x401f), region = 125 }
0x401d   :  { %v5944_v18 = vld [vmem:[%s8838_s0 + $0x18] sm:$0xf] (!%p5943_p2) }
0x401e   :  { %5015 = vst.msk [vmem:[#allocation3] sm:$0xf] (!%p5943_p2), %vm1092_vm4, %v5944_v18 }
0x401f PF:  { %6745 = vmatprep.subr.bf16.mxu0 %v7293_v1  ;;  %v7226_v19 = vld [vmem:[%s8793_s7] sm:$0xff]   ;;  %6749 = vmatprep.mubr.msk.bf16.mxu0 %vm7294_vm0, %v7293_v1  ;;  %v7227_v20 = vld [vmem:[%s8793_s7 + $0x8] sm:$0xff]  }
0x4020   :  { %6753 = vmatprep.subr.bf16.mxu1 %v7293_v1  ;;  %6757 = vmatprep.mubr.msk.bf16.mxu1 %vm7294_vm0, %v7293_v1  ;;  %v7228_v33 = vld [vmem:[%s8797_s11] sm:$0xff]   ;;  %v7231_v34 = vld [vmem:[%s8798_s12 + $0x8] sm:$0xff]  }
0x4021   :  { %6746 = vmatpush3.bf16.msra.mxu0 %v7226_v19  ;;  %v7229_v21 = vld [vmem:[%s8798_s12] sm:$0xff]   ;;  %v7232_v59 = vld [vmem:[%s8803_s17 + $0x8] sm:$0xff]  }
0x4022   :  { %6747 = vmatprep.subr.bf16.mxu0 %v7293_v1  ;;  %6754 = vmatpush3.bf16.msra.mxu1 %v7229_v21 }
0x4023   :  { %6755 = vmatprep.subr.bf16.mxu1 %v7293_v1 }
0x4025   :  { %6748 = vmatpush3.bf16.msra.mxu0 %v7227_v20  ;;  %v8679_v35 = vld [vmem:[#allocation3] sm:$0xf] }
0x4026   :  { %6761 = vmatprep.subr.bf16.mxu0 %v7293_v1  ;;  %6756 = vmatpush3.bf16.msra.mxu1 %v7231_v34 }
0x4027   :  { %6767 = vmatprep.subr.bf16.mxu1 %v7293_v1 }
0x4028   :  { %6750 = vmatmul.mubr.msk.bf16.vlgmr.msra.gmra.mrb[0].mxu0 %vm125_vm2, %v8596_v22 }
0x4029   :  { %6763 = vmatprep.mubr.msk.bf16.mxu0 %vm7294_vm0, %v7293_v1  ;;  %6762 = vmatpush3.bf16.msra.mxu0 %v7228_v33 }
0x402a   :  { %6775 = vmatprep.subr.bf16.mxu0 %v7293_v1 }
0x4030   :  { %6764 = vmatmul.mubr.msk.bf16.vlgmr.msra.gmra.mrb[4].mxu0 %vm175_vm1, %v8679_v35 }
0x4031   :  { %6779 = vmatprep.mubr.msk.bf16.mxu0 %vm7294_vm0, %v7293_v1 }
0x40fb   :  { %v5067_v61 = vpop.f32.mrb[0].mxu0 }
0x40fc   :  { %v6751_v60 = vpop.f32.mrb[1].mxu0  ;;  %v5077_v62 = vadd.f32 %v5067_v61, %v7710_v39  ;;  %v5073_v58 = vadd.f32 %v5067_v61, %v7698_v24  ;;  %v5078_v56 = vadd.f32 %v5067_v61, %v7713_v43  ;;  %v5074_v28 = vadd.f32 %v5067_v61, %v7700_v25 }
0x40fd   :  { %v5070_v23 = vpop.f32.mrb[2].mxu0  ;;  %v5076_v37 = vadd.f32 %v5067_v61, %v7704_v27  ;;  %v5075_v38 = vadd.f32 %v5067_v61, %v7702_v26 }
0x40fe   :  { %v6752_v30 = vpop.f32.mrb[3].mxu0  ;;  %7238 = vtanh.f32 %v5077_v62 }
0x40ff   :  { %7240 = vtanh.f32 %v5073_v58 }
0x4100   :  { %7242 = vtanh.f32 %v5078_v56 }
0x4101   :  { %7244 = vtanh.f32 %v5074_v28 }
0x4102   :  { %7246 = vtanh.f32 %v5076_v37 }
0x4103   :  { %7248 = vtanh.f32 %v5075_v38 }
0x4108   :  { %v7239_v40 = vpop.eup %7238 }
0x4109   :  { %v7241_v39 = vpop.eup %7240  ;;  %v5089_v24 = vmul.f32 %v7239_v40, %v7718_v45 }
0x410a   :  { %v7243_v41 = vpop.eup %7242  ;;  %v5085_v43 = vmul.f32 %v7241_v39, %v7718_v45 }
0x410b   :  { %v7245_v42 = vpop.eup %7244  ;;  %v5103_v25 = vsel %vm125_vm2, %v5089_v24, 0.0  ;;  %v5090_v46 = vmul.f32 %v7243_v41, %v7718_v45 }
0x410c   :  { %v7247_v27 = vpop.eup %7246  ;;  %5104 = vadd.xlane.f32.xlu1 %v5103_v25  ;;  %v5091_v26 = vsel %vm125_vm2, %v5085_v43, 0.0  ;;  %v5086_v44 = vmul.f32 %v7245_v42, %v7718_v45 }
0x410d   :  { %v7249_v47 = vpop.eup %7248  ;;  %5092 = vadd.xlane.f32.xlu0 %v5091_v26  ;;  %v5106_v9 = vsel %vm125_vm2, %v5090_v46, 0.0  ;;  %v5088_v49 = vmul.f32 %v7247_v27, %v7718_v45 }
0x410e   :  { %v5094_v50 = vsel %vm125_vm2, %v5086_v44, 0.0  ;;  %v5087_v51 = vmul.f32 %v7249_v47, %v7718_v45  ;;  %v7230_v45 = vld [vmem:[%s8803_s17] sm:$0xff]  }
0x410f   :  { %v5100_v52 = vsel %vm125_vm2, %v5088_v49, 0.0  ;;  %6776 = vmatpush3.bf16.msra.mxu0 %v7230_v45 }
0x4110   :  { %5107 = vadd.xlane.f32.xlu1 %v5106_v9  ;;  %v5097_v53 = vsel %vm125_vm2, %v5087_v51, 0.0  ;;  %6777 = vmatprep.subr.bf16.mxu0 %v7293_v1 }
0x4111   :  { %5095 = vadd.xlane.f32.xlu0 %v5094_v50 }
0x4113   :  { %6778 = vmatpush3.bf16.msra.mxu0 %v7232_v59 }
0x4114   :  { %5101 = vadd.xlane.f32.xlu1 %v5100_v52  ;;  %6791 = vmatprep.subr.bf16.mxu0 %v7293_v1 }
0x4115   :  { %5098 = vadd.xlane.f32.xlu0 %v5097_v53 }
0x4199   :  { %v5105_v32 = vpop.xlane.xlu1 %5104 }
0x419a   :  { %v5093_v29 = vpop.xlane.xlu0 %5092 }
0x419b   :  { %v5109_v3 = vmax.f32 %v5093_v29, %v5105_v32 }
0x419d   :  { %v5108_v54 = vpop.xlane.xlu1 %5107 }
0x419e   :  { %v5096_v55 = vpop.xlane.xlu0 %5095 }
0x419f   :  { %v5110_v63 = vmax.f32 %v5096_v55, %v5108_v54 }
0x41a1   :  { %v5102_v4 = vpop.xlane.xlu1 %5101  ;;  %v5111_v11 = vmax.f32 %v5109_v3, %v5110_v63  ;;  %v7233_v63 = vld [vmem:[%s8799_s13] sm:$0xff]  }
0x41a2   :  { %v5099_v5 = vpop.xlane.xlu0 %5098 }
0x41a3   :  { %v5112_v10 = vmax.f32 %v5099_v5, %v5102_v4 }
0x41a5   :  { %v5113_v14 = vmax.f32 %v5111_v11, %v5112_v10 }
0x41a7   :  { %v5114_v15 = vsub.f32 %v5093_v29, %v5113_v14  ;;  %v5115_v16 = vsub.f32 %v5096_v55, %v5113_v14  ;;  %v5116_v17 = vsub.f32 %v5099_v5, %v5113_v14  ;;  %v5117_v18 = vsub.f32 %v5102_v4, %v5113_v14 }
0x41a8   :  { %v5118_v61 = vsub.f32 %v5105_v32, %v5113_v14  ;;  %v5119_v58 = vsub.f32 %v5108_v54, %v5113_v14 }
0x41a9   :  { %v5120_v19 = vmul.f32 1.442695, %v5114_v15  ;;  %v5122_v20 = vmul.f32 1.442695, %v5115_v16  ;;  %v5124_v60 = vmul.f32 1.442695, %v5116_v17 }
0x41aa   :  { %v5126_v62 = vmul.f32 1.442695, %v5117_v18  ;;  %v5128_v56 = vmul.f32 1.442695, %v5118_v61  ;;  %v5130_v23 = vmul.f32 1.442695, %v5119_v58 }
0x41ab   :  { %7250 = vpow2.f32 %v5120_v19 }
0x41ac   :  { %7252 = vpow2.f32 %v5122_v20 }
0x41ad   :  { %7254 = vpow2.f32 %v5124_v60 }
0x41ae   :  { %7256 = vpow2.f32 %v5126_v62 }
0x41af   :  { %7258 = vpow2.f32 %v5128_v56 }
0x41b0   :  { %7260 = vpow2.f32 %v5130_v23 }
0x41b5   :  { %v7251_v28 = vpop.eup %7250 }
0x41b6   :  { %v7253_v30 = vpop.eup %7252 }
0x41b7   :  { %v5132_v37 = vadd.f32 %v7253_v30, %v7251_v28  ;;  %v7255_v38 = vpop.eup %7254 }
0x41b8   :  { %v7257_v39 = vpop.eup %7256 }
0x41b9   :  { %v5133_v40 = vadd.f32 %v7255_v38, %v5132_v37  ;;  %v7259_v41 = vpop.eup %7258 }
0x41ba   :  { %v7261_v42 = vpop.eup %7260 }
0x41bb   :  { %v5134_v24 = vadd.f32 %v7257_v39, %v5133_v40 }
0x41bd   :  { %v5135_v43 = vadd.f32 %v7259_v41, %v5134_v24 }
0x41bf   :  { %v5136_v25 = vadd.f32 %v7261_v42, %v5135_v43  ;;  %v7235_v43 = vld [vmem:[%s8804_s18] sm:$0xff]  }
0x41c1   :  { %7262 = vrcp.f32 %v5136_v25 }
0x41cb   :  { %v7263_v46 = vpop.eup %7262 }
0x41cc   :  { %v5138_v27 = vmul.f32 %v7263_v46, %v7251_v28  ;;  %v5139_v26 = vmul.f32 %v7263_v46, %v7253_v30  ;;  %v5140_v44 = vmul.f32 %v7263_v46, %v7255_v38  ;;  %v5141_v47 = vmul.f32 %v7263_v46, %v7257_v39 }
0x41cd   :  { %v5142_v9 = vmul.f32 %v7263_v46, %v7259_v41  ;;  %v5143_v52 = vmul.f32 %v7263_v46, %v7261_v42  ;;  %v7237_v42 = vld [vmem:[%s8804_s18 + $0x8] sm:$0xff]  }
0x41ce   :  { %v5144_v49 = vmul.f32 %v5138_v27, %v7653_v0  ;;  %v5145_v50 = vmul.f32 %v5139_v26, %v7655_v2  ;;  %v5146_v51 = vmul.f32 %v5140_v44, %v7671_v7  ;;  %v5147_v53 = vmul.f32 %v5141_v47, %v7669_v6 }
0x41cf   :  { %v5148_v34 = vmul.f32 %v5142_v9, %v7683_v12  ;;  %v5149_v29 = vmul.f32 %v5143_v52, %v7685_v13  ;;  %v7234_v12 = vld [vmem:[%s8799_s13 + $0x8] sm:$0xff]   ;;  %v5266_v13 = vpop.f32.mrb[4].mxu0 }
0x41d0   :  { %v5150_v33 = vsel %vm125_vm2, %v5144_v49, 0.0  ;;  %v5151_v21 = vsel %vm125_vm2, %v5145_v50, 0.0  ;;  %v5153_v59 = vsel %vm125_vm2, %v5146_v51, 0.0  ;;  %v5155_v0 = vsel %vm125_vm2, %v5147_v53, 0.0  ;;  %v6765_v4 = vpop.f32.mrb[5].mxu0 }
0x41d1   :  { %v5152_v45 = vadd.f32 %v5151_v21, %v5150_v33  ;;  %v5157_v7 = vsel %vm125_vm2, %v5148_v34, 0.0  ;;  %v5159_v6 = vsel %vm125_vm2, %v5149_v29, 0.0  ;;  %v5269_v5 = vpop.f32.mrb[6].mxu0 }
0x41d2   :  { %v6766_v11 = vpop.f32.mrb[7].mxu0 }
0x41d3   :  { %v5154_v32 = vadd.f32 %v5153_v59, %v5152_v45 }
0x41d5   :  { %v5156_v2 = vadd.f32 %v5155_v0, %v5154_v32 }
0x41d7   :  { %v5158_v54 = vadd.f32 %v5157_v7, %v5156_v2 }
0x41d9   :  { %v5160_v55 = vadd.f32 %v5159_v6, %v5158_v54 }
0x41db   :  { %v5161_v3 = vpack.c.bf16 %v5160_v55, %v5160_v55 }
0x41dd   :  { %6758 = vmatmul.mubr.msk.bf16.vlgmr.msra.gmra.mrb[0].mxu1 %vm125_vm2, %v5161_v3  ;;  %6780 = vmatmul.mubr.msk.bf16.vlgmr.msra.gmra.mrb[8].mxu0 %vm125_vm2, %v5161_v3 }
0x41de   :  { %6768 = vmatpush3.bf16.msra.mxu1 %v7233_v63  ;;  %6771 = vmatprep.mubr.msk.bf16.mxu1 %vm7294_vm0, %v7293_v1 }
0x41df   :  { %6769 = vmatprep.subr.bf16.mxu1 %v7293_v1  ;;  %6793 = vmatprep.mubr.msk.bf16.mxu0 %vm7294_vm0, %v7293_v1 }
0x41e2   :  { %6770 = vmatpush3.bf16.msra.mxu1 %v7234_v12 }
0x41e3   :  { %6783 = vmatprep.subr.bf16.mxu1 %v7293_v1 }
0x41e5   :  { %6772 = vmatmul.mubr.msk.bf16.vlgmr.msra.gmra.mrb[4].mxu1 %vm125_vm2, %v8596_v22 }
0x41e6   :  { %6787 = vmatprep.mubr.msk.bf16.mxu1 %vm7294_vm0, %v7293_v1  ;;  %6784 = vmatpush3.bf16.msra.mxu1 %v7235_v43 }
0x41e7   :  { %6785 = vmatprep.subr.bf16.mxu1 %v7293_v1 }
0x41ea   :  { %6786 = vmatpush3.bf16.msra.mxu1 %v7237_v42 }
0x42b0   :  { %v5217_v10 = vpop.f32.mrb[0].mxu1  ;;  %v5410_v14 = vpop.f32.mrb[8].mxu0 }
0x42b1   :  { %v5267_v15 = vadd.f32 %v5266_v13, %v5217_v10  ;;  %v6759_v16 = vpop.f32.mrb[1].mxu1  ;;  %v6781_v17 = vpop.f32.mrb[9].mxu0 }
0x42b2   :  { %v5220_v18 = vpop.f32.mrb[2].mxu1  ;;  %v5413_v19 = vpop.f32.mrb[10].mxu0 }
0x42b3   :  { %v6760_v20 = vpop.f32.mrb[3].mxu1  ;;  %v6782_v61 = vpop.f32.mrb[11].mxu0  ;;  %v5272_v23 = vadd.f32 %v7788_v48, %v5267_v15  ;;  %v7236_v48 = vld [vmem:[%s8802_s16] sm:$0xff]   ;;  %s5966_s16 = sld [smem:[#allocation5 + $0x7]] }
0x42b4   :  { %6792 = vmatpush3.bf16.msra.mxu0 %v7236_v48 }
0x42b7   :  { %6794 = vmatmul.mubr.msk.bf16.vlgmr.msra.gmra.mrb[12].mxu0 %vm175_vm1, %v8679_v35 }
0x42b8   :  { %v5323_v60 = vpop.f32.mrb[4].mxu1 }
0x42b9   :  { %v5324_v62 = vadd.f32 %v7735_v8, %v5323_v60  ;;  %v6773_v22 = vpop.f32.mrb[5].mxu1  ;;  %p5967_p3 = scmp.ne.s32.totalorder %s5966_s16, 0 }
0x42ba   :  { %v5326_v58 = vpop.f32.mrb[6].mxu1  ;;  %s8839_s0 = sld [smem:[#allocation10_spill]] (!%p5967_p3)  ;;  %v7317_v7 = vmov (!%p5967_p3), 0.0   ;;  %v7319_v19 = vmov (!%p5967_p3), 1.0|1.0  }
0x42bb   :  { %5337 = vrot.lane.b32.xlu0 %v5324_v62, %s7296_s24  ;;  %v6774_v56 = vpop.f32.mrb[7].mxu1  ;;  %v5329_v28 = vadd.f32 %v5324_v62, %v5272_v23  ;;  %6797 = vmatprep.subr.bf16.mxu0 (!%p5967_p3), %v7317_v7 }
0x42bd   :  { %v5956_v30 = vmul.f32 -1.442695, %v5329_v28 }
0x42bf   :  { %7264 = vpow2.f32 %v5956_v30 }
0x42c0   :  { %v7271_v54 = vld [vmem:[%s8839_s0 + $0x8] sm:$0xff] (!%p5967_p3)   ;;  %v7272_v6 = vld [vmem:[%s8839_s0 + $0x10] sm:$0xff] (!%p5967_p3)   ;;  %v7273_v55 = vld [vmem:[%s8839_s0 + $0x18] sm:$0xff] (!%p5967_p3)  }
0x42c1   :  { %v7274_v63 = vld [vmem:[%s8839_s0 + $0x20] sm:$0xff] (!%p5967_p3)   ;;  %v7275_v3 = vld [vmem:[%s8839_s0 + $0x28] sm:$0xff] (!%p5967_p3)   ;;  %v7276_v12 = vld [vmem:[%s8839_s0 + $0x30] sm:$0xff] (!%p5967_p3)  }
0x42c2   :  { %v7277_v10 = vld [vmem:[%s8839_s0 + $0x38] sm:$0xff] (!%p5967_p3)  }
0x42c9   :  { %v7265_v37 = vpop.eup %7264 }
0x42ca   :  { %v5333_v38 = vadd.f32 1.0, %v7265_v37 }
0x42cc   :  { %7266 = vrcp.f32 %v5333_v38 }
0x42d6   :  { %v7267_v40 = vpop.eup %7266 }
0x42d7   :  { %v5347_v46 = vsub.f32 1.0, %v7267_v40  ;;  %v5353_v44 = vmul.f32 %v7267_v40, %v8591_v31 }
0x432d   :  { %v5338_v39 = vpop.permute.xlu0 %5337 }
0x432e   :  { %v5340_v24 = vmul.f32 %v7267_v40, %v5338_v39 }
0x4330   :  { %5342 = vrot.lane.b32.xlu1 %v5340_v24, %s7296_s24 }
0x438a   :  { %v5516_v49 = vpop.f32.mrb[12].mxu0 }
0x438b   :  { %v6795_v50 = vpop.f32.mrb[13].mxu0 }
0x438c   :  { %v5519_v51 = vpop.f32.mrb[14].mxu0 }
0x438d   :  { %v6796_v1 = vpop.f32.mrb[15].mxu0 }
0x43a2   :  { %v5343_v41 = vpop.permute.xlu1 %5342 }
0x43a3   :  { %v5345_v8 = vadd.f32 %v5343_v41, %v5272_v23 }
0x43a5   :  { %7268 = vtanh.f32 %v5345_v8 }
0x43af   :  { %v7269_v25 = vpop.eup %7268 }
0x43b0   :  { %5349 = vrot.lane.b32.xlu1 %v7269_v25, %s7298_s14 }
0x4422   :  { %v5350_v27 = vpop.permute.xlu1 %5349 }
0x4423   :  { %v5352_v26 = vmul.f32 %v5350_v27, %v5347_v46 }
0x4425   :  { %v5354_v47 = vadd.f32 %v5353_v44, %v5352_v26 }
0x4427   :  { %v5355_v9 = vpack.c.bf16 %v5354_v47, %v5354_v47 }
0x4429   :  { %5417 = vrot.lane.b32.xlu1 %v5355_v9, %s7298_s14 }
0x449b   :  { %v5418_v52 = vpop.permute.xlu1 %5417 }
0x449c   :  { %6788 = vmatmul.mubr.msk.bf16.vlgmr.msra.gmra.mrb[8].mxu1 %vm125_vm2, %v5418_v52  ;;  %vm7318_vm2 = vmmov (!%p5967_p3), 0  }
0x449d   :  { %6813 = vmatprep.mubr.msk.bf16.mxu0 (!%p5967_p3), %vm7318_vm2, %v7317_v7 }
0x456f   :  { %v5468_v35 = vpop.f32.mrb[8].mxu1 }
0x4570   :  { %v5469_v53 = vadd.f32 %v5468_v35, %v5410_v14  ;;  %v6789_v33 = vpop.f32.mrb[9].mxu1  ;;  %5530 = sbr.rel (%p5967_p3) target bundleno = 18438 (0x4806), region = 129 }
0x4571   :  { %v5471_v21 = vpop.f32.mrb[10].mxu1 }
0x4572   :  { %v5522_v45 = vadd.f32 %v5516_v49, %v5469_v53  ;;  %v6790_v34 = vpop.f32.mrb[11].mxu1 }
0x4574   :  { %v5523_v31 = vadd.f32 %v7818_v36, %v5522_v45  ;;  %v7270_v36 = vld [vmem:[%s8839_s0] sm:$0xff] (!%p5967_p3)  }
0x4575   :  { %6798 = vmatpush3.bf16.msra.mxu0 (!%p5967_p3), %v7270_v36 }
0x4576   :  { %5965 = vst [vmem:[%s8806_s20 + $0x38] sm:$0xff] %v5523_v31  ;;  %v5531_v59 = vsel (!%p5967_p3), %vm1090_vm3, %v5523_v31, -1e+30  ;;  %6799 = vmatprep.subr.bf16.mxu0 (!%p5967_p3), %v7317_v7 }
0x4577   :  { %5532 = vmax.xlane.f32.xlu0 %v5531_v59 }
0x4579   :  { %6800 = vmatpush3.bf16.msra.mxu0 %v7271_v54 }
0x457a   :  { %6801 = vmatprep.subr.bf16.mxu0 %v7317_v7 }
0x457d   :  { %6802 = vmatpush3.bf16.msra.mxu0 %v7272_v6 }
0x457e   :  { %6803 = vmatprep.subr.bf16.mxu0 %v7317_v7 }
0x4581   :  { %6804 = vmatpush3.bf16.msra.mxu0 %v7273_v55 }
0x4582   :  { %6805 = vmatprep.subr.bf16.mxu0 %v7317_v7 }
0x4585   :  { %6806 = vmatpush3.bf16.msra.mxu0 %v7274_v63 }
0x4586   :  { %6807 = vmatprep.subr.bf16.mxu0 %v7317_v7 }
0x4589   :  { %6808 = vmatpush3.bf16.msra.mxu0 %v7275_v3 }
0x458a   :  { %6809 = vmatprep.subr.bf16.mxu0 %v7317_v7 }
0x458d   :  { %6810 = vmatpush3.bf16.msra.mxu0 %v7276_v12 }
0x458e   :  { %6811 = vmatprep.subr.bf16.mxu0 %v7317_v7 }
0x4591   :  { %6812 = vmatpush3.bf16.msra.mxu0 %v7277_v10 }
0x4604   :  { %v5533_v32 = vpop.xlane.xlu0 %5532 }
0x4605   :  { %vm5534_vm0 = vcmp.ge.f32.partialorder %v5531_v59, %v5533_v32 }
0x4606   :  { %v5535_v29 = vsel %vm5534_vm0, %v7636_v57, 128 }
0x4607   :  { %v5537_v0 = vshra.s32 %v5535_v29, 16  ;;  %v5536_v13 = vand.u32 65535, %v5535_v29 }
0x4609   :  { %v5539_v2 = vcvt.s32.f32 %v5537_v0  ;;  %v5538_v5 = vcvt.s32.f32 %v5536_v13 }
0x460b   :  { %5540 = vmin.xlane.f32.xlu0 %v5539_v2 }
0x4698   :  { %v5541_v4 = vpop.xlane.xlu0 %5540 }
0x4699   :  { %vm5542_vm1 = vcmp.eq.f32.partialorder %v5539_v2, %v5541_v4  ;;  %v5547_v14 = vcvt.f32.s32 %v5541_v4 }
0x469a   :  { %v5543_v11 = vsel %vm5542_vm1, %v5538_v5, inf }
0x469b   :  { %5544 = vmin.xlane.f32.xlu1 %v5543_v11  ;;  %v5548_v16 = vshll.u32 %v5547_v14, 16 }
0x4728   :  { %v5545_v15 = vpop.xlane.xlu1 %5544 }
0x4729   :  { %v5546_v17 = vcvt.f32.s32 %v5545_v15 }
0x472b   :  { %v5549_v18 = vadd.s32 %v5548_v16, %v5546_v17 }
0x472d   :  { %vm5550_vm3 = vcmp.eq.s32.totalorder %v7636_v57, %v5549_v18 }
0x472e   :  { %vm5977_vm13 = vmpackc.low %vm5550_vm3, %vm5550_vm3 }
0x472f   :  { %6814 = vmatmul.mubr.msk.bf16.vlgmr.msra.gmra.mrb[0].mxu0 %vm5977_vm13, %v7319_v19 }
0x4802   :  { %v5652_v20 = vpop.f32.mrb[0].mxu0 }
0x4803   :  { %v5658_v61 = vpack.c.bf16 %v5652_v20, %v5652_v20  ;;  %v6815_v60 = vpop.f32.mrb[1].mxu0 }
0x4804   :  { %v5655_v62 = vpop.f32.mrb[2].mxu0 }
0x4805   :  { %5659 = vst.msk [vmem:[#allocation3] sm:$0xf] %vm1092_vm4, %v5658_v61  ;;  %v6816_v22 = vpop.f32.mrb[3].mxu0 }
0x4806 PF:  { %s5979_s26 = sld [smem:[#allocation5 + $0x7]] }
0x480c   :  { %p5980_p4 = scmp.eq.s32.totalorder %s5979_s26, 0 }
0x480d   :  { %s8840_s19 = sld [smem:[#allocation9_spill]] (!%p5980_p4) }
0x480e   :  { %5664 = sbr.rel (%p5980_p4) target bundleno = 18453 (0x4815), region = 133 }
0x4813   :  { %v5981_v58 = vld [vmem:[%s8840_s19 + $0x1c] sm:$0xf] (!%p5980_p4) }
0x4814   :  { %5667 = vst.msk [vmem:[#allocation3] sm:$0xf] (!%p5980_p4), %vm1092_vm4, %v5981_v58 }
0x4815 PF:  {}

</bundles_post_ra>
